<compile_context>
chip_gen: v7x
topology: tpu7x:2x2x1
jax: 0.10.0
libtpu: 0.0.40
codegen_flags: <defaults>
</compile_context>

<pallas_src>
import jax
import jax.numpy as jnp
from jax.experimental import pallas as pl
from jax.experimental.pallas import tpu as pltpu

NUM_CLASSES = 8
NCH, NCH1, NCH2 = 128, 256, 512   # nChannels, nChannels1, nChannels2
BN_EPS = 1e-5
FC_PAD = 128                      # lane-dense padded fc output width


# --------------------------------------------------------------------------- #
# Kernel: whole forward pass, fully resident in VMEM, one grid step.
# --------------------------------------------------------------------------- #
def fused_model_kernel(x_ref, w1_ref, b1_ref, w2_ref, b2_ref, w3_ref, b3_ref,
                       wfc_ref, bfc_ref, o_ref):
    """x_ref : (M, 9*NCH1) bf16   im2col patches, M = 2*N*H*W.
       Rows are ordered [branch, image, pixel] (branch outermost).
       w*_ref: bf16 weights with the eval-mode BN scale folded in.
       b*_ref: (1, C) f32 BN shifts.
       wfc/bfc: padded (2*NCH, FC_PAD) bf16 / (1, FC_PAD) f32 Linear params.
       o_ref : (N, FC_PAD) f32 padded logits."""
    m = x_ref.shape[0]
    n = o_ref.shape[0]
    hw = m // (2 * n)

    # 3x3 conv as one im2col matmul (bf16 operands, f32 MXU accumulation).
    h = jnp.dot(x_ref[...], w1_ref[...], preferred_element_type=jnp.float32)
    h = jnp.maximum(h + b1_ref[...], 0.0)                         # (M, 512) f32

    # 1x1 convs are plain matmuls.
    h = jnp.dot(h.astype(jnp.bfloat16), w2_ref[...],
                preferred_element_type=jnp.float32)
    h = jnp.maximum(h + b2_ref[...], 0.0)                         # (M, 256) f32

    h = jnp.dot(h.astype(jnp.bfloat16), w3_ref[...],
                preferred_element_type=jnp.float32)
    h = jnp.maximum(h + b3_ref[...], 0.0)                         # (M, 128) f32

    # Global average pooling: one reshape (sublane split, hw multiple of 8)
    # + one reduce over the pixel axis.  pooled[b] is branch b's (N, 128) features.
    pooled = jnp.mean(h.reshape(2, n, hw, NCH), axis=2)           # (2, N, 128) f32

    # torch.cat((block(x1), block(x2)), dim=1) followed by the Linear, all in VMEM.
    feat = jnp.concatenate([pooled[0], pooled[1]], axis=-1)       # (N, 256) f32
    logits = jnp.dot(feat.astype(jnp.bfloat16), wfc_ref[...],
                     preferred_element_type=jnp.float32) + bfc_ref[...]
    o_ref[...] = logits                                           # (N, 128) lane-dense


# --------------------------------------------------------------------------- #
# Wrapper glue (plain JAX: layout prep only, no heavy compute)
# --------------------------------------------------------------------------- #
def _im2col_3x3(x_nhwc_bf16):
    """(B,H,W,C) bf16 -> (B*H*W, 9*C) bf16 patches ('SAME' zero padding).
    Tap order is (ky, kx) row-major with channel innermost, matching the row-major
    reshape of an HWIO (3,3,C,Cout) weight to (9*C, Cout)."""
    B, H, W, C = x_nhwc_bf16.shape
    xp = jnp.pad(x_nhwc_bf16, ((0, 0), (1, 1), (1, 1), (0, 0)))
    taps = [xp[:, ky:ky + H, kx:kx + W, :] for ky in range(3) for kx in range(3)]
    cols = jnp.concatenate(taps, axis=-1)                         # (B, H, W, 9C)
    return cols.reshape(B * H * W, 9 * C)


def te_aet_forward(x1_nchw, x2_nchw, kp):
    n = x1_nchw.shape[0]
    # Stack both branches along batch, cast to bf16 up front (halves prep bytes),
    # then one fused transpose + pad + tap + reshape pass for the im2col patches.
    x = jnp.concatenate([x1_nchw, x2_nchw], axis=0).astype(jnp.bfloat16)   # (2N,C,H,W)
    x = jnp.transpose(x, (0, 2, 3, 1))                                     # (2N,H,W,C)
    h_, w_ = x.shape[1], x.shape[2]
    hw = h_ * w_
    m = 2 * n * hw
    assert m % 8 == 0, "2*N*H*W must be sublane-aligned"
    assert hw % 8 == 0, "H*W must be sublane-aligned for the pooling reshape"

    cols = _im2col_3x3(x)                                                  # (M, 9*NCH1)

    flops = 2 * m * (9 * NCH1 * NCH2 + NCH2 * NCH1 + NCH1 * NCH) \
        + 2 * n * (2 * NCH) * FC_PAD
    bytes_accessed = (
        m * 9 * NCH1 * 2                                   # im2col patches (bf16)
        + (9 * NCH1 * NCH2 + NCH2 * NCH1 + NCH1 * NCH + 2 * NCH * FC_PAD) * 2  # weights
        + (NCH2 + NCH1 + NCH + FC_PAD) * 4                 # shifts / fc bias
        + n * FC_PAD * 4)                                  # padded logits

    logits_pad = pl.pallas_call(
        fused_model_kernel,
        out_shape=jax.ShapeDtypeStruct((n, FC_PAD), jnp.float32),
        grid=(1,),   # single step: weights DMA'd once, no cross-TC weight re-fetch
        in_specs=[
            pl.BlockSpec((m, 9 * NCH1), lambda i: (0, 0)),
            pl.BlockSpec((9 * NCH1, NCH2), lambda i: (0, 0)),
            pl.BlockSpec((1, NCH2), lambda i: (0, 0)),
            pl.BlockSpec((NCH2, NCH1), lambda i: (0, 0)),
            pl.BlockSpec((1, NCH1), lambda i: (0, 0)),
            pl.BlockSpec((NCH1, NCH), lambda i: (0, 0)),
            pl.BlockSpec((1, NCH), lambda i: (0, 0)),
            pl.BlockSpec((2 * NCH, FC_PAD), lambda i: (0, 0)),
            pl.BlockSpec((1, FC_PAD), lambda i: (0, 0)),
        ],
        out_specs=pl.BlockSpec((n, FC_PAD), lambda i: (0, 0)),
        compiler_params=pltpu.CompilerParams(vmem_limit_bytes=32 * 1024 * 1024),
        cost_estimate=pl.CostEstimate(flops=flops, transcendentals=0,
                                      bytes_accessed=bytes_accessed),
    )(cols, kp["w1"], kp["b1"], kp["w2"], kp["b2"], kp["w3"], kp["b3"],
      kp["wfc"], kp["bfc"])

    return logits_pad[:, :NUM_CLASSES]


# --------------------------------------------------------------------------- #
# Parameters
# --------------------------------------------------------------------------- #
def _fold_bn(gamma, beta, mean, var):
    scale = gamma / jnp.sqrt(var + BN_EPS)
    shift = beta - mean * scale
    return scale, shift


def init_raw_params(key):
    """Module-faithful raw parameters (f32, eval-mode BN running stats)."""
    ks = jax.random.split(key, 16)

    def bn(kg, kb, km, kv, c):
        gamma = 1.0 + 0.1 * jax.random.normal(kg, (c,), jnp.float32)
        beta = 0.1 * jax.random.normal(kb, (c,), jnp.float32)
        mean = 0.1 * jax.random.normal(km, (c,), jnp.float32)
        var = jax.random.uniform(kv, (c,), jnp.float32, 0.5, 1.5)
        return gamma, beta, mean, var

    p = {}
    p["w1"] = 0.05 * jax.random.normal(ks[0], (3, 3, NCH1, NCH2), jnp.float32)  # HWIO
    p["bn1"] = bn(ks[1], ks[2], ks[3], ks[4], NCH2)
    p["w2"] = 0.05 * jax.random.normal(ks[5], (NCH2, NCH1), jnp.float32)        # 1x1
    p["bn2"] = bn(ks[6], ks[7], ks[8], ks[9], NCH1)
    p["w3"] = 0.05 * jax.random.normal(ks[10], (NCH1, NCH), jnp.float32)        # 1x1
    p["bn3"] = bn(ks[11], ks[12], ks[13], ks[14], NCH)
    p["wfc"] = 0.05 * jax.random.normal(ks[15], (2 * NCH, NUM_CLASSES), jnp.float32)
    p["bfc"] = jnp.zeros((NUM_CLASSES,), jnp.float32)   # Linear bias zeroed in __init__
    return p


def prepare_params(p):
    """Fold eval-mode BN scale into the conv weights (exact algebraic identity),
    keep the per-channel shift, cast matmul operands to bf16, and reshape / pad
    for the kernel."""
    kp = {}

    s1, sh1 = _fold_bn(*p["bn1"])
    w1 = (p["w1"] * s1).astype(jnp.bfloat16)                     # (3,3,256,512)
    kp["w1_hwio"] = w1                                           # for the reference
    kp["w1"] = w1.reshape(9 * NCH1, NCH2)
    kp["b1"] = sh1.reshape(1, NCH2).astype(jnp.float32)

    s2, sh2 = _fold_bn(*p["bn2"])
    kp["w2"] = (p["w2"] * s2).astype(jnp.bfloat16)
    kp["b2"] = sh2.reshape(1, NCH1).astype(jnp.float32)

    s3, sh3 = _fold_bn(*p["bn3"])
    kp["w3"] = (p["w3"] * s3).astype(jnp.bfloat16)
    kp["b3"] = sh3.reshape(1, NCH).astype(jnp.float32)

    wfc = jnp.zeros((2 * NCH, FC_PAD), jnp.float32).at[:, :NUM_CLASSES].set(p["wfc"])
    kp["wfc"] = wfc.astype(jnp.bfloat16)
    kp["bfc"] = jnp.zeros((1, FC_PAD), jnp.float32).at[0, :NUM_CLASSES].set(p["bfc"])
    return kp


# --------------------------------------------------------------------------- #
# Pure-JAX (XLA) reference: same module structure (shared conv block, shift,
# ReLU, GAP, concat, Linear) with the same mixed precision (bf16 operands,
# f32 accumulation) for a tight correctness check of the Pallas kernel.
# --------------------------------------------------------------------------- #
def ref_forward(x1_nchw, x2_nchw, kp):
    def branch(x_nchw):
        x = jnp.transpose(x_nchw, (0, 2, 3, 1)).astype(jnp.bfloat16)
        y = jax.lax.conv_general_dilated(
            x, kp["w1_hwio"], (1, 1), "SAME",
            dimension_numbers=("NHWC", "HWIO", "NHWC"),
            preferred_element_type=jnp.float32)
        y = jnp.maximum(y + kp["b1"], 0.0)
        y = jnp.einsum("nhwc,cd->nhwd", y.astype(jnp.bfloat16), kp["w2"],
                       preferred_element_type=jnp.float32)
        y = jnp.maximum(y + kp["b2"], 0.0)
        y = jnp.einsum("nhwc,cd->nhwd", y.astype(jnp.bfloat16), kp["w3"],
                       preferred_element_type=jnp.float32)
        y = jnp.maximum(y + kp["b3"], 0.0)
        return jnp.mean(y, axis=(1, 2))

    feat = jnp.concatenate([branch(x1_nchw), branch(x2_nchw)], axis=1)
    logits = jnp.dot(feat.astype(jnp.bfloat16), kp["wfc"],
                     preferred_element_type=jnp.float32) + kp["bfc"]
    return logits[:, :NUM_CLASSES]


# --------------------------------------------------------------------------- #
if __name__ == "__main__":
    key = jax.random.PRNGKey(0)
    kx1, kx2, kparam = jax.random.split(key, 3)

    N, C, H, W = 2, 256, 8, 8      # input_Channel must be 256 (module assert)
    x1 = jax.random.normal(kx1, (N, C, H, W), jnp.float32)
    x2 = jax.random.normal(kx2, (N, C, H, W), jnp.float32)

    raw = init_raw_params(kparam)
    params = prepare_params(raw)

    fwd = jax.jit(te_aet_forward)
    out = jax.block_until_ready(fwd(x1, x2, params))
    assert out.shape == (N, NUM_CLASSES)

    ref = jax.block_until_ready(ref_forward(x1, x2, params))
    max_diff = float(jnp.max(jnp.abs(out - ref)))
    assert jnp.allclose(out, ref, rtol=1e-2, atol=1e-2), f"max abs diff {max_diff}"

    print("KERNEL_OK")
</pallas_src>

<mosaic_0001>
module attributes {stable_mosaic.version = 11 : i64} {
  func.func @fused_model_kernel(%arg0: i32, %arg1: memref<256x2304xbf16, #tpu.memory_space<vmem>>, %arg2: memref<2304x512xbf16, #tpu.memory_space<vmem>>, %arg3: memref<1x512xf32, #tpu.memory_space<vmem>>, %arg4: memref<512x256xbf16, #tpu.memory_space<vmem>>, %arg5: memref<1x256xf32, #tpu.memory_space<vmem>>, %arg6: memref<256x128xbf16, #tpu.memory_space<vmem>>, %arg7: memref<1x128xf32, #tpu.memory_space<vmem>>, %arg8: memref<256x128xbf16, #tpu.memory_space<vmem>>, %arg9: memref<1x128xf32, #tpu.memory_space<vmem>>, %arg10: memref<2x128xf32, #tpu.memory_space<vmem>>) attributes {dimension_semantics = [#tpu.dimension_semantics<arbitrary>], iteration_bounds = array<i64: 1>, scalar_prefetch = 0 : i64, scratch_operands = 0 : i64, tpu.core_type = #tpu.core_type<tc>, window_params = [{pipeline_mode = #tpu.pipeline_mode<synchronous>, transform_indices = @transform_0, window_bounds = array<i64: 256, 2304>}, {pipeline_mode = #tpu.pipeline_mode<synchronous>, transform_indices = @transform_1, window_bounds = array<i64: 2304, 512>}, {pipeline_mode = #tpu.pipeline_mode<synchronous>, transform_indices = @transform_2, window_bounds = array<i64: 1, 512>}, {pipeline_mode = #tpu.pipeline_mode<synchronous>, transform_indices = @transform_3, window_bounds = array<i64: 512, 256>}, {pipeline_mode = #tpu.pipeline_mode<synchronous>, transform_indices = @transform_4, window_bounds = array<i64: 1, 256>}, {pipeline_mode = #tpu.pipeline_mode<synchronous>, transform_indices = @transform_5, window_bounds = array<i64: 256, 128>}, {pipeline_mode = #tpu.pipeline_mode<synchronous>, transform_indices = @transform_6, window_bounds = array<i64: 1, 128>}, {pipeline_mode = #tpu.pipeline_mode<synchronous>, transform_indices = @transform_7, window_bounds = array<i64: 256, 128>}, {pipeline_mode = #tpu.pipeline_mode<synchronous>, transform_indices = @transform_8, window_bounds = array<i64: 1, 128>}, {pipeline_mode = #tpu.pipeline_mode<synchronous>, transform_indices = @transform_9, window_bounds = array<i64: 2, 128>}]} {
    %c0 = arith.constant 0 : index
    %c0_0 = arith.constant 0 : index
    %0 = vector.load %arg1[%c0, %c0_0] : memref<256x2304xbf16, #tpu.memory_space<vmem>>, vector<256x2304xbf16>
    %c0_1 = arith.constant 0 : index
    %c0_2 = arith.constant 0 : index
    %1 = vector.load %arg2[%c0_1, %c0_2] : memref<2304x512xbf16, #tpu.memory_space<vmem>>, vector<2304x512xbf16>
    %cst = arith.constant dense<0.000000e+00> : vector<256x512xf32>
    %2 = tpu.matmul %0, %1, %cst {dimension_numbers = #tpu.dot_dimension_numbers<[1], [0], [0], [1], [0, 0, 1, 1], [], []>} : vector<256x2304xbf16>, vector<2304x512xbf16>, vector<256x512xf32> -> vector<256x512xf32>
    %c0_3 = arith.constant 0 : index
    %c0_4 = arith.constant 0 : index
    %3 = vector.load %arg3[%c0_3, %c0_4] : memref<1x512xf32, #tpu.memory_space<vmem>>, vector<1x512xf32>
    %4 = vector.broadcast %3 : vector<1x512xf32> to vector<256x512xf32>
    %5 = arith.addf %2, %4 : vector<256x512xf32>
    %cst_5 = arith.constant 0.000000e+00 : f32
    %6 = vector.broadcast %cst_5 : f32 to vector<256x512xf32>
    %7 = arith.maximumf %5, %6 : vector<256x512xf32>
    %8 = arith.truncf %7 : vector<256x512xf32> to vector<256x512xbf16>
    %c0_6 = arith.constant 0 : index
    %c0_7 = arith.constant 0 : index
    %9 = vector.load %arg4[%c0_6, %c0_7] : memref<512x256xbf16, #tpu.memory_space<vmem>>, vector<512x256xbf16>
    %cst_8 = arith.constant dense<0.000000e+00> : vector<256x256xf32>
    %10 = tpu.matmul %8, %9, %cst_8 {dimension_numbers = #tpu.dot_dimension_numbers<[1], [0], [0], [1], [0, 0, 1, 1], [], []>} : vector<256x512xbf16>, vector<512x256xbf16>, vector<256x256xf32> -> vector<256x256xf32>
    %c0_9 = arith.constant 0 : index
    %c0_10 = arith.constant 0 : index
    %11 = vector.load %arg5[%c0_9, %c0_10] : memref<1x256xf32, #tpu.memory_space<vmem>>, vector<1x256xf32>
    %12 = vector.broadcast %11 : vector<1x256xf32> to vector<256x256xf32>
    %13 = arith.addf %10, %12 : vector<256x256xf32>
    %cst_11 = arith.constant 0.000000e+00 : f32
    %14 = vector.broadcast %cst_11 : f32 to vector<256x256xf32>
    %15 = arith.maximumf %13, %14 : vector<256x256xf32>
    %16 = arith.truncf %15 : vector<256x256xf32> to vector<256x256xbf16>
    %c0_12 = arith.constant 0 : index
    %c0_13 = arith.constant 0 : index
    %17 = vector.load %arg6[%c0_12, %c0_13] : memref<256x128xbf16, #tpu.memory_space<vmem>>, vector<256x128xbf16>
    %cst_14 = arith.constant dense<0.000000e+00> : vector<256x128xf32>
    %18 = tpu.matmul %16, %17, %cst_14 {dimension_numbers = #tpu.dot_dimension_numbers<[1], [0], [0], [1], [0, 0, 1, 1], [], []>} : vector<256x256xbf16>, vector<256x128xbf16>, vector<256x128xf32> -> vector<256x128xf32>
    %c0_15 = arith.constant 0 : index
    %c0_16 = arith.constant 0 : index
    %19 = vector.load %arg7[%c0_15, %c0_16] : memref<1x128xf32, #tpu.memory_space<vmem>>, vector<1x128xf32>
    %20 = vector.broadcast %19 : vector<1x128xf32> to vector<256x128xf32>
    %21 = arith.addf %18, %20 : vector<256x128xf32>
    %cst_17 = arith.constant 0.000000e+00 : f32
    %22 = vector.broadcast %cst_17 : f32 to vector<256x128xf32>
    %23 = arith.maximumf %21, %22 : vector<256x128xf32>
    %24 = vector.shape_cast %23 : vector<256x128xf32> to vector<2x2x64x128xf32>
    %cst_18 = arith.constant dense<0.000000e+00> : vector<2x2x128xf32>
    %25 = vector.multi_reduction <add>, %24, %cst_18 [2] : vector<2x2x64x128xf32> to vector<2x2x128xf32>
    %cst_19 = arith.constant 6.400000e+01 : f32
    %26 = vector.broadcast %cst_19 : f32 to vector<2x2x128xf32>
    %27 = arith.divf %25, %26 : vector<2x2x128xf32>
    %28 = vector.extract_strided_slice %27 {offsets = [0, 0, 0], sizes = [1, 2, 128], strides = [1, 1, 1]} : vector<2x2x128xf32> to vector<1x2x128xf32>
    %29 = vector.shape_cast %28 : vector<1x2x128xf32> to vector<2x128xf32>
    %30 = vector.extract_strided_slice %27 {offsets = [1, 0, 0], sizes = [1, 2, 128], strides = [1, 1, 1]} : vector<2x2x128xf32> to vector<1x2x128xf32>
    %31 = vector.shape_cast %30 : vector<1x2x128xf32> to vector<2x128xf32>
    %32 = tpu.concatenate %29, %31 in 1 : vector<2x128xf32>, vector<2x128xf32> -> vector<2x256xf32>
    %33 = arith.truncf %32 : vector<2x256xf32> to vector<2x256xbf16>
    %c0_20 = arith.constant 0 : index
    %c0_21 = arith.constant 0 : index
    %34 = vector.load %arg8[%c0_20, %c0_21] : memref<256x128xbf16, #tpu.memory_space<vmem>>, vector<256x128xbf16>
    %cst_22 = arith.constant dense<0.000000e+00> : vector<2x128xf32>
    %35 = tpu.matmul %33, %34, %cst_22 {dimension_numbers = #tpu.dot_dimension_numbers<[1], [0], [0], [1], [0, 0, 1, 1], [], []>} : vector<2x256xbf16>, vector<256x128xbf16>, vector<2x128xf32> -> vector<2x128xf32>
    %c0_23 = arith.constant 0 : index
    %c0_24 = arith.constant 0 : index
    %36 = vector.load %arg9[%c0_23, %c0_24] : memref<1x128xf32, #tpu.memory_space<vmem>>, vector<1x128xf32>
    %37 = vector.broadcast %36 : vector<1x128xf32> to vector<2x128xf32>
    %38 = arith.addf %35, %37 : vector<2x128xf32>
    %c0_25 = arith.constant 0 : index
    %c0_26 = arith.constant 0 : index
    %39 = vector.load %arg10[%c0_25, %c0_26] : memref<2x128xf32, #tpu.memory_space<vmem>>, vector<2x128xf32>
    tpu.vector_store %arg10[%c0_25, %c0_26], %38 {strides = array<i32>} : memref<2x128xf32, #tpu.memory_space<vmem>>, vector<2x128xf32>,
    return
  }
  func.func @transform_0(%arg0: i32) -> (i32, i32) {
    %c0_i32 = arith.constant 0 : i32
    %c0_i32_0 = arith.constant 0 : i32
    %c0_i32_1 = arith.constant 0 : i32
    return %c0_i32, %c0_i32_0 : i32, i32
  }
  func.func @transform_1(%arg0: i32) -> (i32, i32) {
    %c0_i32 = arith.constant 0 : i32
    %c0_i32_0 = arith.constant 0 : i32
    %c0_i32_1 = arith.constant 0 : i32
    return %c0_i32, %c0_i32_0 : i32, i32
  }
  func.func @transform_2(%arg0: i32) -> (i32, i32) {
    %c0_i32 = arith.constant 0 : i32
    %c0_i32_0 = arith.constant 0 : i32
    %c0_i32_1 = arith.constant 0 : i32
    return %c0_i32, %c0_i32_0 : i32, i32
  }
  func.func @transform_3(%arg0: i32) -> (i32, i32) {
    %c0_i32 = arith.constant 0 : i32
    %c0_i32_0 = arith.constant 0 : i32
    %c0_i32_1 = arith.constant 0 : i32
    return %c0_i32, %c0_i32_0 : i32, i32
  }
  func.func @transform_4(%arg0: i32) -> (i32, i32) {
    %c0_i32 = arith.constant 0 : i32
    %c0_i32_0 = arith.constant 0 : i32
    %c0_i32_1 = arith.constant 0 : i32
    return %c0_i32, %c0_i32_0 : i32, i32
  }
  func.func @transform_5(%arg0: i32) -> (i32, i32) {
    %c0_i32 = arith.constant 0 : i32
    %c0_i32_0 = arith.constant 0 : i32
    %c0_i32_1 = arith.constant 0 : i32
    return %c0_i32, %c0_i32_0 : i32, i32
  }
  func.func @transform_6(%arg0: i32) -> (i32, i32) {
    %c0_i32 = arith.constant 0 : i32
    %c0_i32_0 = arith.constant 0 : i32
    %c0_i32_1 = arith.constant 0 : i32
    return %c0_i32, %c0_i32_0 : i32, i32
  }
  func.func @transform_7(%arg0: i32) -> (i32, i32) {
    %c0_i32 = arith.constant 0 : i32
    %c0_i32_0 = arith.constant 0 : i32
    %c0_i32_1 = arith.constant 0 : i32
    return %c0_i32, %c0_i32_0 : i32, i32
  }
  func.func @transform_8(%arg0: i32) -> (i32, i32) {
    %c0_i32 = arith.constant 0 : i32
    %c0_i32_0 = arith.constant 0 : i32
    %c0_i32_1 = arith.constant 0 : i32
    return %c0_i32, %c0_i32_0 : i32, i32
  }
  func.func @transform_9(%arg0: i32) -> (i32, i32) {
    %c0_i32 = arith.constant 0 : i32
    %c0_i32_0 = arith.constant 0 : i32
    %c0_i32_1 = arith.constant 0 : i32
    return %c0_i32, %c0_i32_0 : i32, i32
  }
}

</mosaic_0001>

<bundles_post_ra>
// kernel: te_aet_forward.1
= control target key start
LH: loop header
LB: loop body
LE: loop exit
PB: predicated region body
PF: predicated region fallthrough
CT: control target
= control target key end

     0   :  { %s18694_s0 = inlined_call_operand.vmem [shape: bf16[256,2304], index: 0, kind: input, shape index: {}]   ;;  %s18695_s1 = inlined_call_operand.vmem [shape: bf16[2304,512], index: 1, kind: input, shape index: {}]   ;;  %s18696_s2 = inlined_call_operand.vmem [shape: f32[1,512], index: 2, kind: input, shape index: {}]   ;;  %s18697_s3 = inlined_call_operand.vmem [shape: bf16[512,256], index: 3, kind: input, shape index: {}]   ;;  %s18698_s4 = inlined_call_operand.vmem [shape: f32[1,256], index: 4, kind: input, shape index: {}]   ;;  %s18699_s5 = inlined_call_operand.vmem [shape: bf16[256,128], index: 5, kind: input, shape index: {}]   ;;  %s18700_s6 = inlined_call_operand.vmem [shape: f32[1,128], index: 6, kind: input, shape index: {}]   ;;  %s18701_s7 = inlined_call_operand.vmem [shape: bf16[256,128], index: 7, kind: input, shape index: {}]   ;;  %s18702_s8 = inlined_call_operand.vmem [shape: f32[1,128], index: 8, kind: input, shape index: {}]   ;;  %s18703_s9 = inlined_call_operand.hbm [shape: f32[2,128], index: 9, kind: output, shape index: {}]  }
   0x1   :  { %v12779_v0 = vld [vmem:[%s18695_s1 + $0x4] ss:$16 sps:$4 sm:$0xff]   ;;  %v12781_v1 = vld [vmem:[%s18695_s1] ss:$16 sps:$4 sm:$0xff]   ;;  %v12838_v36 = vld [vmem:[%s18695_s1 + $0xc] ss:$16 sps:$4 sm:$0xff]  }
   0x2   :  { %5240 = vmatprep.subr.bf16.mxu0 %v12779_v0  ;;  %11466 = vmatprep.subr.bf16.mxu1 %v12779_v0  ;;  %v12782_v2 = vld [vmem:[%s18695_s1 + $0x24] ss:$16 sps:$4 sm:$0xff]   ;;  %v12784_v3 = vld [vmem:[%s18695_s1 + $0x20] ss:$16 sps:$4 sm:$0xff]   ;;  %v12836_v39 = vld [vmem:[%s18695_s1 + $0x8] ss:$16 sps:$4 sm:$0xff]  }
   0x3   :  { %5241 = vmatpush1.bf16.msra.mxu0 %v12781_v1  ;;  %11482 = vmatpush1.bf16.msra.mxu1 %v12781_v1  ;;  %v12785_v4 = vld [vmem:[%s18695_s1 + $0x44] ss:$16 sps:$4 sm:$0xff]   ;;  %v12787_v5 = vld [vmem:[%s18695_s1 + $0x40] ss:$16 sps:$4 sm:$0xff]   ;;  %v12844_v41 = vld [vmem:[%s18695_s1 + $0x2c] ss:$16 sps:$4 sm:$0xff]  }
   0x4   :  { %5242 = vmatprep.subr.bf16.mxu0 %v12782_v2  ;;  %11467 = vmatprep.subr.bf16.mxu1 %v12782_v2  ;;  %v12788_v6 = vld [vmem:[%s18695_s1 + $0x64] ss:$16 sps:$4 sm:$0xff]   ;;  %v12790_v7 = vld [vmem:[%s18695_s1 + $0x60] ss:$16 sps:$4 sm:$0xff]   ;;  %v12842_v45 = vld [vmem:[%s18695_s1 + $0x28] ss:$16 sps:$4 sm:$0xff]  }
   0x5   :  { %v12791_v8 = vld [vmem:[%s18695_s1 + $0x84] ss:$16 sps:$4 sm:$0xff]   ;;  %v12793_v9 = vld [vmem:[%s18695_s1 + $0x80] ss:$16 sps:$4 sm:$0xff]   ;;  %v12856_v48 = vld [vmem:[%s18695_s1 + $0x4c] ss:$16 sps:$4 sm:$0xff]  }
   0x6   :  { %v12794_v10 = vld [vmem:[%s18695_s1 + $0xa4] ss:$16 sps:$4 sm:$0xff]   ;;  %v12796_v11 = vld [vmem:[%s18695_s1 + $0xa0] ss:$16 sps:$4 sm:$0xff]   ;;  %v12854_v51 = vld [vmem:[%s18695_s1 + $0x48] ss:$16 sps:$4 sm:$0xff]  }
   0x7   :  { %5243 = vmatpush1.bf16.msra.mxu0 %v12784_v3  ;;  %11483 = vmatpush1.bf16.msra.mxu1 %v12784_v3  ;;  %v12797_v12 = vld [vmem:[%s18695_s1 + $0xc4] ss:$16 sps:$4 sm:$0xff]   ;;  %v12799_v14 = vld [vmem:[%s18695_s1 + $0xc0] ss:$16 sps:$4 sm:$0xff]   ;;  %v12862_v53 = vld [vmem:[%s18695_s1 + $0x6c] ss:$16 sps:$4 sm:$0xff]  }
   0x8   :  { %5244 = vmatprep.subr.bf16.mxu0 %v12785_v4  ;;  %11468 = vmatprep.subr.bf16.mxu1 %v12785_v4  ;;  %v14392_v13 = vld [vmem:[%s18694_s0 + $0x4] ss:$72 sps:$4 sm:$0xff]   ;;  %v12802_v17 = vld [vmem:[%s18695_s1 + $0xe0] ss:$16 sps:$4 sm:$0xff]   ;;  %v14484_v42 = vld [vmem:[%s18694_s0 + $0x94] ss:$72 sps:$4 sm:$0xff]  }
   0x9   :  { %v12832_v15 = vld [vmem:[%s18694_s0 + $0x484] ss:$72 sps:$4 sm:$0xff]   ;;  %5272 = vmatprep.mubr.bf16.mxu0 %v14392_v13  ;;  %v12805_v19 = vld [vmem:[%s18695_s1 + $0x100] ss:$16 sps:$4 sm:$0xff]   ;;  %v12847_v43 = vld [vmem:[%s18694_s0 + $0x514] ss:$72 sps:$4 sm:$0xff]  }
   0xa   :  { %v12800_v16 = vld [vmem:[%s18695_s1 + $0xe4] ss:$16 sps:$4 sm:$0xff]   ;;  %5352 = vmatprep.mubr.bf16.mxu1 %v12832_v15  ;;  %v12808_v21 = vld [vmem:[%s18695_s1 + $0x120] ss:$16 sps:$4 sm:$0xff]   ;;  %v12860_v57 = vld [vmem:[%s18695_s1 + $0x68] ss:$16 sps:$4 sm:$0xff]  }
   0xb   :  { %5245 = vmatpush1.bf16.msra.mxu0 %v12787_v5  ;;  %11484 = vmatpush1.bf16.msra.mxu1 %v12787_v5  ;;  %v12803_v18 = vld [vmem:[%s18695_s1 + $0x104] ss:$16 sps:$4 sm:$0xff]   ;;  %v12811_v23 = vld [vmem:[%s18695_s1 + $0x140] ss:$16 sps:$4 sm:$0xff]   ;;  %v12874_v60 = vld [vmem:[%s18695_s1 + $0x8c] ss:$16 sps:$4 sm:$0xff]  }
   0xc   :  { %5246 = vmatprep.subr.bf16.mxu0 %v12788_v6  ;;  %11469 = vmatprep.subr.bf16.mxu1 %v12788_v6  ;;  %v12806_v20 = vld [vmem:[%s18695_s1 + $0x124] ss:$16 sps:$4 sm:$0xff]   ;;  %v12814_v25 = vld [vmem:[%s18695_s1 + $0x160] ss:$16 sps:$4 sm:$0xff]   ;;  %v12872_v63 = vld [vmem:[%s18695_s1 + $0x88] ss:$16 sps:$4 sm:$0xff]  }
   0xd   :  { %v12809_v22 = vld [vmem:[%s18695_s1 + $0x144] ss:$16 sps:$4 sm:$0xff]   ;;  %v12817_v27 = vld [vmem:[%s18695_s1 + $0x180] ss:$16 sps:$4 sm:$0xff]   ;;  %v12880_v1 = vld [vmem:[%s18695_s1 + $0xac] ss:$16 sps:$4 sm:$0xff]  }
   0xe   :  { %v12812_v24 = vld [vmem:[%s18695_s1 + $0x164] ss:$16 sps:$4 sm:$0xff]   ;;  %v12820_v29 = vld [vmem:[%s18695_s1 + $0x1a0] ss:$16 sps:$4 sm:$0xff]   ;;  %v12878_v5 = vld [vmem:[%s18695_s1 + $0xa8] ss:$16 sps:$4 sm:$0xff]  }
   0xf   :  { %5247 = vmatpush1.bf16.msra.mxu0 %v12790_v7  ;;  %11485 = vmatpush1.bf16.msra.mxu1 %v12790_v7  ;;  %v12815_v26 = vld [vmem:[%s18695_s1 + $0x184] ss:$16 sps:$4 sm:$0xff]   ;;  %v12823_v31 = vld [vmem:[%s18695_s1 + $0x1c0] ss:$16 sps:$4 sm:$0xff]  }
  0x10   :  { %5248 = vmatprep.subr.bf16.mxu0 %v12791_v8  ;;  %11470 = vmatprep.subr.bf16.mxu1 %v12791_v8  ;;  %v12818_v28 = vld [vmem:[%s18695_s1 + $0x1a4] ss:$16 sps:$4 sm:$0xff]   ;;  %v12826_v33 = vld [vmem:[%s18695_s1 + $0x1e0] ss:$16 sps:$4 sm:$0xff]   ;;  %v12892_v8 = vld [vmem:[%s18695_s1 + $0xcc] ss:$16 sps:$4 sm:$0xff]  }
  0x11   :  { %v12821_v30 = vld [vmem:[%s18695_s1 + $0x1c4] ss:$16 sps:$4 sm:$0xff]   ;;  %v14461_v35 = vld [vmem:[%s18694_s0] ss:$72 sps:$4 sm:$0xff]   ;;  %v14502_v47 = vld [vmem:[%s18694_s0 + $0x90] ss:$72 sps:$4 sm:$0xff]  }
  0x12   :  { %v12824_v32 = vld [vmem:[%s18695_s1 + $0x1e4] ss:$16 sps:$4 sm:$0xff]   ;;  %v12830_v37 = vld [vmem:[%s18694_s0 + $0x480] ss:$72 sps:$4 sm:$0xff]   ;;  %v12850_v49 = vld [vmem:[%s18694_s0 + $0x510] ss:$72 sps:$4 sm:$0xff]  }
  0x13   :  { %5249 = vmatpush1.bf16.msra.mxu0 %v12793_v9  ;;  %11486 = vmatpush1.bf16.msra.mxu1 %v12793_v9  ;;  %v12835_v34 = vld [vmem:[%s18695_s1 + $0x204] ss:$16 sps:$4 sm:$0xff]   ;;  %v12833_v38 = vld [vmem:[%s18695_s1 + $0x200] ss:$16 sps:$4 sm:$0xff]  }
  0x14   :  { %5250 = vmatprep.subr.bf16.mxu0 %v12794_v10  ;;  %11471 = vmatprep.subr.bf16.mxu1 %v12794_v10  ;;  %v12841_v40 = vld [vmem:[%s18695_s1 + $0x224] ss:$16 sps:$4 sm:$0xff]   ;;  %v12839_v44 = vld [vmem:[%s18695_s1 + $0x220] ss:$16 sps:$4 sm:$0xff]  }
  0x15   :  { %v12853_v46 = vld [vmem:[%s18695_s1 + $0x244] ss:$16 sps:$4 sm:$0xff]   ;;  %v12851_v50 = vld [vmem:[%s18695_s1 + $0x240] ss:$16 sps:$4 sm:$0xff]  }
  0x16   :  { %v12859_v52 = vld [vmem:[%s18695_s1 + $0x264] ss:$16 sps:$4 sm:$0xff]   ;;  %v12857_v56 = vld [vmem:[%s18695_s1 + $0x260] ss:$16 sps:$4 sm:$0xff]  }
  0x17   :  { %5251 = vmatpush1.bf16.msra.mxu0 %v12796_v11  ;;  %11487 = vmatpush1.bf16.msra.mxu1 %v12796_v11  ;;  %v14526_v54 = vld [vmem:[%s18694_s0 + $0x124] ss:$72 sps:$4 sm:$0xff]   ;;  %v14544_v59 = vld [vmem:[%s18694_s0 + $0x120] ss:$72 sps:$4 sm:$0xff]   ;;  %v14568_v2 = vld [vmem:[%s18694_s0 + $0x1b4] ss:$72 sps:$4 sm:$0xff]  }
  0x18   :  { %5252 = vmatprep.subr.bf16.mxu0 %v12797_v12  ;;  %11472 = vmatprep.subr.bf16.mxu1 %v12797_v12  ;;  %v12865_v55 = vld [vmem:[%s18694_s0 + $0x5a4] ss:$72 sps:$4 sm:$0xff]   ;;  %v12868_v61 = vld [vmem:[%s18694_s0 + $0x5a0] ss:$72 sps:$4 sm:$0xff]   ;;  %v12883_v3 = vld [vmem:[%s18694_s0 + $0x634] ss:$72 sps:$4 sm:$0xff]  }
  0x19   :  { %v12871_v58 = vld [vmem:[%s18695_s1 + $0x284] ss:$16 sps:$4 sm:$0xff]   ;;  %v12869_v62 = vld [vmem:[%s18695_s1 + $0x280] ss:$16 sps:$4 sm:$0xff]   ;;  %v12890_v11 = vld [vmem:[%s18695_s1 + $0xc8] ss:$16 sps:$4 sm:$0xff]  }
  0x1a   :  { %v12877_v0 = vld [vmem:[%s18695_s1 + $0x2a4] ss:$16 sps:$4 sm:$0xff]   ;;  %v12875_v4 = vld [vmem:[%s18695_s1 + $0x2a0] ss:$16 sps:$4 sm:$0xff]  }
  0x1b   :  { %5253 = vmatpush1.bf16.msra.mxu0 %v12799_v14  ;;  %11488 = vmatpush1.bf16.msra.mxu1 %v12799_v14  ;;  %v12889_v6 = vld [vmem:[%s18695_s1 + $0x2c4] ss:$16 sps:$4 sm:$0xff]   ;;  %v14586_v7 = vld [vmem:[%s18694_s0 + $0x1b0] ss:$72 sps:$4 sm:$0xff]   ;;  %v12898_v14 = vld [vmem:[%s18695_s1 + $0xec] ss:$16 sps:$4 sm:$0xff]  }
  0x1c   :  { %5254 = vmatprep.subr.bf16.mxu0 %v12800_v16  ;;  %11473 = vmatprep.subr.bf16.mxu1 %v12800_v16  ;;  %v12886_v9 = vld [vmem:[%s18694_s0 + $0x630] ss:$72 sps:$4 sm:$0xff]   ;;  %v12895_v12 = vld [vmem:[%s18695_s1 + $0x2e4] ss:$16 sps:$4 sm:$0xff]  }
  0x1d   :  { %v12887_v10 = vld [vmem:[%s18695_s1 + $0x2c0] ss:$16 sps:$4 sm:$0xff]   ;;  %v14610_v15 = vld [vmem:[%s18694_s0 + $0x244] ss:$72 sps:$4 sm:$0xff]  }
  0x1e   :  { %v12901_v16 = vld [vmem:[%s18694_s0 + $0x6c4] ss:$72 sps:$4 sm:$0xff]  }
  0x1f   :  { %5255 = vmatpush1.bf16.msra.mxu0 %v12802_v17  ;;  %11489 = vmatpush1.bf16.msra.mxu1 %v12802_v17  ;;  %v12893_v17 = vld [vmem:[%s18695_s1 + $0x2e0] ss:$16 sps:$4 sm:$0xff]  }
  0x20   :  { %5256 = vmatprep.subr.bf16.mxu0 %v12803_v18  ;;  %11474 = vmatprep.subr.bf16.mxu1 %v12803_v18  ;;  %v12896_v18 = vld [vmem:[%s18695_s1 + $0xe8] ss:$16 sps:$4 sm:$0xff]  }
  0x23   :  { %5257 = vmatpush1.bf16.msra.mxu0 %v12805_v19  ;;  %11490 = vmatpush1.bf16.msra.mxu1 %v12805_v19  ;;  %v12907_v19 = vld [vmem:[%s18695_s1 + $0x304] ss:$16 sps:$4 sm:$0xff]  }
  0x24   :  { %5258 = vmatprep.subr.bf16.mxu0 %v12806_v20  ;;  %11475 = vmatprep.subr.bf16.mxu1 %v12806_v20  ;;  %v14628_v20 = vld [vmem:[%s18694_s0 + $0x240] ss:$72 sps:$4 sm:$0xff]  }
  0x27   :  { %5259 = vmatpush1.bf16.msra.mxu0 %v12808_v21  ;;  %11491 = vmatpush1.bf16.msra.mxu1 %v12808_v21  ;;  %v12910_v21 = vld [vmem:[%s18695_s1 + $0x10c] ss:$16 sps:$4 sm:$0xff]  }
  0x28   :  { %5260 = vmatprep.subr.bf16.mxu0 %v12809_v22  ;;  %11476 = vmatprep.subr.bf16.mxu1 %v12809_v22  ;;  %v12904_v22 = vld [vmem:[%s18694_s0 + $0x6c0] ss:$72 sps:$4 sm:$0xff]  }
  0x2b   :  { %5261 = vmatpush1.bf16.msra.mxu0 %v12811_v23  ;;  %11492 = vmatpush1.bf16.msra.mxu1 %v12811_v23  ;;  %v12905_v23 = vld [vmem:[%s18695_s1 + $0x300] ss:$16 sps:$4 sm:$0xff]  }
  0x2c   :  { %5262 = vmatprep.subr.bf16.mxu0 %v12812_v24  ;;  %11477 = vmatprep.subr.bf16.mxu1 %v12812_v24  ;;  %v12908_v24 = vld [vmem:[%s18695_s1 + $0x108] ss:$16 sps:$4 sm:$0xff]  }
  0x2f   :  { %5263 = vmatpush1.bf16.msra.mxu0 %v12814_v25  ;;  %11493 = vmatpush1.bf16.msra.mxu1 %v12814_v25  ;;  %v12913_v25 = vld [vmem:[%s18695_s1 + $0x324] ss:$16 sps:$4 sm:$0xff]  }
  0x30   :  { %5264 = vmatprep.subr.bf16.mxu0 %v12815_v26  ;;  %11478 = vmatprep.subr.bf16.mxu1 %v12815_v26  ;;  %v12916_v26 = vld [vmem:[%s18695_s1 + $0x12c] ss:$16 sps:$4 sm:$0xff]  }
  0x33   :  { %5265 = vmatpush1.bf16.msra.mxu0 %v12817_v27  ;;  %11494 = vmatpush1.bf16.msra.mxu1 %v12817_v27  ;;  %v14652_v27 = vld [vmem:[%s18694_s0 + $0x2d4] ss:$72 sps:$4 sm:$0xff]  }
  0x34   :  { %5266 = vmatprep.subr.bf16.mxu0 %v12818_v28  ;;  %11479 = vmatprep.subr.bf16.mxu1 %v12818_v28  ;;  %v12919_v28 = vld [vmem:[%s18694_s0 + $0x754] ss:$72 sps:$4 sm:$0xff]  }
  0x37   :  { %5267 = vmatpush1.bf16.msra.mxu0 %v12820_v29  ;;  %11495 = vmatpush1.bf16.msra.mxu1 %v12820_v29  ;;  %v12911_v29 = vld [vmem:[%s18695_s1 + $0x320] ss:$16 sps:$4 sm:$0xff]  }
  0x38   :  { %5268 = vmatprep.subr.bf16.mxu0 %v12821_v30  ;;  %11480 = vmatprep.subr.bf16.mxu1 %v12821_v30  ;;  %v12914_v30 = vld [vmem:[%s18695_s1 + $0x128] ss:$16 sps:$4 sm:$0xff]  }
  0x3b   :  { %5269 = vmatpush1.bf16.msra.mxu0 %v12823_v31  ;;  %11496 = vmatpush1.bf16.msra.mxu1 %v12823_v31  ;;  %v12925_v31 = vld [vmem:[%s18695_s1 + $0x344] ss:$16 sps:$4 sm:$0xff]  }
  0x3c   :  { %5270 = vmatprep.subr.bf16.mxu0 %v12824_v32  ;;  %11481 = vmatprep.subr.bf16.mxu1 %v12824_v32  ;;  %v14670_v32 = vld [vmem:[%s18694_s0 + $0x2d0] ss:$72 sps:$4 sm:$0xff]  }
  0x3f   :  { %5271 = vmatpush1.bf16.msra.mxu0 %v12826_v33  ;;  %11497 = vmatpush1.bf16.msra.mxu1 %v12826_v33  ;;  %v12928_v33 = vld [vmem:[%s18695_s1 + $0x14c] ss:$16 sps:$4 sm:$0xff]  }
  0x40   :  { %5433 = vmatprep.subr.bf16.mxu0 %v12835_v34  ;;  %6977 = vmatprep.subr.bf16.mxu1 %v12838_v36  ;;  %v12922_v34 = vld [vmem:[%s18694_s0 + $0x750] ss:$72 sps:$4 sm:$0xff]  }
  0x41   :  { %v12923_v36 = vld [vmem:[%s18695_s1 + $0x340] ss:$16 sps:$4 sm:$0xff]  }
  0x42   :  { %5273 = vmatmul.mubr.bf16.vlgmr.msra.gmra.mrb[0].mxu0 %v14461_v35  ;;  %5353 = vmatmul.mubr.bf16.vlgmr.msra.gmra.mrb[0].mxu1 %v12830_v37  ;;  %v12926_v37 = vld [vmem:[%s18695_s1 + $0x148] ss:$16 sps:$4 sm:$0xff]  }
  0x43   :  { %5434 = vmatpush1.bf16.msra.mxu0 %v12833_v38  ;;  %6978 = vmatpush1.bf16.msra.mxu1 %v12836_v39  ;;  %v12931_v38 = vld [vmem:[%s18695_s1 + $0x364] ss:$16 sps:$4 sm:$0xff]   ;;  %v12934_v39 = vld [vmem:[%s18695_s1 + $0x16c] ss:$16 sps:$4 sm:$0xff]  }
  0x44   :  { %5435 = vmatprep.subr.bf16.mxu0 %v12841_v40  ;;  %6979 = vmatprep.subr.bf16.mxu1 %v12844_v41  ;;  %v14694_v40 = vld [vmem:[%s18694_s0 + $0x364] ss:$72 sps:$4 sm:$0xff]  }
  0x45   :  { %5282 = vmatprep.mubr.bf16.mxu0 %v14484_v42  ;;  %5362 = vmatprep.mubr.bf16.mxu1 %v12847_v43  ;;  %v12937_v41 = vld [vmem:[%s18694_s0 + $0x7e4] ss:$72 sps:$4 sm:$0xff]   ;;  %v12929_v43 = vld [vmem:[%s18695_s1 + $0x360] ss:$16 sps:$4 sm:$0xff]  }
  0x47   :  { %5436 = vmatpush1.bf16.msra.mxu0 %v12839_v44  ;;  %6980 = vmatpush1.bf16.msra.mxu1 %v12842_v45  ;;  %v12932_v44 = vld [vmem:[%s18695_s1 + $0x168] ss:$16 sps:$4 sm:$0xff]   ;;  %v12943_v45 = vld [vmem:[%s18695_s1 + $0x384] ss:$16 sps:$4 sm:$0xff]  }
  0x48   :  { %5437 = vmatprep.subr.bf16.mxu0 %v12853_v46  ;;  %6981 = vmatprep.subr.bf16.mxu1 %v12856_v48  ;;  %v14712_v46 = vld [vmem:[%s18694_s0 + $0x360] ss:$72 sps:$4 sm:$0xff]   ;;  %v12946_v48 = vld [vmem:[%s18695_s1 + $0x18c] ss:$16 sps:$4 sm:$0xff]  }
  0x4a   :  { %5283 = vmatmul.mubr.bf16.gmra.mrb[4].mxu0 %v14502_v47  ;;  %5363 = vmatmul.mubr.bf16.gmra.mrb[4].mxu1 %v12850_v49  ;;  %v12940_v49 = vld [vmem:[%s18694_s0 + $0x7e0] ss:$72 sps:$4 sm:$0xff]  }
  0x4b   :  { %5438 = vmatpush1.bf16.msra.mxu0 %v12851_v50  ;;  %6982 = vmatpush1.bf16.msra.mxu1 %v12854_v51  ;;  %v12941_v50 = vld [vmem:[%s18695_s1 + $0x380] ss:$16 sps:$4 sm:$0xff]   ;;  %v12944_v51 = vld [vmem:[%s18695_s1 + $0x188] ss:$16 sps:$4 sm:$0xff]  }
  0x4c   :  { %5439 = vmatprep.subr.bf16.mxu0 %v12859_v52  ;;  %6983 = vmatprep.subr.bf16.mxu1 %v12862_v53  ;;  %v12949_v52 = vld [vmem:[%s18695_s1 + $0x3a4] ss:$16 sps:$4 sm:$0xff]   ;;  %v12952_v53 = vld [vmem:[%s18695_s1 + $0x1ac] ss:$16 sps:$4 sm:$0xff]  }
  0x4d   :  { %5292 = vmatprep.mubr.bf16.mxu0 %v14526_v54  ;;  %5372 = vmatprep.mubr.bf16.mxu1 %v12865_v55  ;;  %v14736_v55 = vld [vmem:[%s18694_s0 + $0x3f4] ss:$72 sps:$4 sm:$0xff]  }
  0x4f   :  { %5440 = vmatpush1.bf16.msra.mxu0 %v12857_v56  ;;  %6984 = vmatpush1.bf16.msra.mxu1 %v12860_v57  ;;  %v14741_v56 = vld [vmem:[%s18694_s0 + $0x874] ss:$72 sps:$4 sm:$0xff]   ;;  %v12947_v57 = vld [vmem:[%s18695_s1 + $0x3a0] ss:$16 sps:$4 sm:$0xff]  }
  0x50   :  { %5441 = vmatprep.subr.bf16.mxu0 %v12871_v58  ;;  %6985 = vmatprep.subr.bf16.mxu1 %v12874_v60  ;;  %v12950_v58 = vld [vmem:[%s18695_s1 + $0x1a8] ss:$16 sps:$4 sm:$0xff]   ;;  %v12961_v60 = vld [vmem:[%s18695_s1 + $0x3c4] ss:$16 sps:$4 sm:$0xff]  }
  0x52   :  { %5293 = vmatmul.mubr.bf16.gmra.mrb[8].mxu0 %v14544_v59  ;;  %5373 = vmatmul.mubr.bf16.gmra.mrb[8].mxu1 %v12868_v61  ;;  %v12964_v61 = vld [vmem:[%s18695_s1 + $0x1cc] ss:$16 sps:$4 sm:$0xff]  }
  0x53   :  { %5442 = vmatpush1.bf16.msra.mxu0 %v12869_v62  ;;  %6986 = vmatpush1.bf16.msra.mxu1 %v12872_v63  ;;  %v14761_v62 = vld [vmem:[%s18694_s0 + $0x3f0] ss:$72 sps:$4 sm:$0xff]  }
  0x54   :  { %5443 = vmatprep.subr.bf16.mxu0 %v12877_v0  ;;  %6987 = vmatprep.subr.bf16.mxu1 %v12880_v1  ;;  %v14766_v63 = vld [vmem:[%s18694_s0 + $0x870] ss:$72 sps:$4 sm:$0xff]  }
  0x55   :  { %5302 = vmatprep.mubr.bf16.mxu0 %v14568_v2  ;;  %5382 = vmatprep.mubr.bf16.mxu1 %v12883_v3  ;;  %v12959_v0 = vld [vmem:[%s18695_s1 + $0x3c0] ss:$16 sps:$4 sm:$0xff]   ;;  %v12962_v1 = vld [vmem:[%s18695_s1 + $0x1c8] ss:$16 sps:$4 sm:$0xff]   ;;  %v12967_v3 = vld [vmem:[%s18695_s1 + $0x3e4] ss:$16 sps:$4 sm:$0xff]  }
  0x57   :  { %5444 = vmatpush1.bf16.msra.mxu0 %v12875_v4  ;;  %6988 = vmatpush1.bf16.msra.mxu1 %v12878_v5  ;;  %v12970_v4 = vld [vmem:[%s18695_s1 + $0x1ec] ss:$16 sps:$4 sm:$0xff]  }
  0x58   :  { %5445 = vmatprep.subr.bf16.mxu0 %v12889_v6  ;;  %6989 = vmatprep.subr.bf16.mxu1 %v12892_v8  ;;  %v14783_v5 = vld [vmem:[%s18694_s0 + $0xc] ss:$72 sps:$4 sm:$0xff]   ;;  %v12965_v6 = vld [vmem:[%s18695_s1 + $0x3e0] ss:$16 sps:$4 sm:$0xff]   ;;  %v12968_v8 = vld [vmem:[%s18695_s1 + $0x1e8] ss:$16 sps:$4 sm:$0xff]  }
  0x5a   :  { %5303 = vmatmul.mubr.bf16.gmra.mrb[12].mxu0 %v14586_v7  ;;  %5383 = vmatmul.mubr.bf16.gmra.mrb[12].mxu1 %v12886_v9  ;;  %v12976_v9 = vld [vmem:[%s18695_s1 + $0x404] ss:$16 sps:$4 sm:$0xff]  }
  0x5b   :  { %5446 = vmatpush1.bf16.msra.mxu0 %v12887_v10  ;;  %6990 = vmatpush1.bf16.msra.mxu1 %v12890_v11  ;;  %v12979_v10 = vld [vmem:[%s18695_s1 + $0x20c] ss:$16 sps:$4 sm:$0xff]   ;;  %v14804_v11 = vld [vmem:[%s18694_s0 + $0x8] ss:$72 sps:$4 sm:$0xff]  }
  0x5c   :  { %5447 = vmatprep.subr.bf16.mxu0 %v12895_v12  ;;  %6991 = vmatprep.subr.bf16.mxu1 %v12898_v14  ;;  %v12974_v12 = vld [vmem:[%s18695_s1 + $0x400] ss:$16 sps:$4 sm:$0xff]   ;;  %v12977_v14 = vld [vmem:[%s18695_s1 + $0x208] ss:$16 sps:$4 sm:$0xff]  }
  0x5d   :  { %5312 = vmatprep.mubr.bf16.mxu0 %v14610_v15  ;;  %5392 = vmatprep.mubr.bf16.mxu1 %v12901_v16  ;;  %v14815_v16 = vld [vmem:[%s18694_s0 + $0x9c] ss:$72 sps:$4 sm:$0xff]  }
  0x5f   :  { %5448 = vmatpush1.bf16.msra.mxu0 %v12893_v17  ;;  %6992 = vmatpush1.bf16.msra.mxu1 %v12896_v18  ;;  %v12988_v17 = vld [vmem:[%s18695_s1 + $0x22c] ss:$16 sps:$4 sm:$0xff]   ;;  %v12983_v18 = vld [vmem:[%s18695_s1 + $0x420] ss:$16 sps:$4 sm:$0xff]  }
  0x60   :  { %5449 = vmatprep.subr.bf16.mxu0 %v12907_v19  ;;  %6993 = vmatprep.subr.bf16.mxu1 %v12910_v21  ;;  %v12986_v19 = vld [vmem:[%s18695_s1 + $0x228] ss:$16 sps:$4 sm:$0xff]   ;;  %v12994_v21 = vld [vmem:[%s18695_s1 + $0x444] ss:$16 sps:$4 sm:$0xff]  }
  0x62   :  { %5313 = vmatmul.mubr.bf16.gmra.mrb[16].mxu0 %v14628_v20  ;;  %5393 = vmatmul.mubr.bf16.gmra.mrb[16].mxu1 %v12904_v22  ;;  %v14842_v22 = vld [vmem:[%s18694_s0 + $0x98] ss:$72 sps:$4 sm:$0xff]  }
  0x63   :  { %5450 = vmatpush1.bf16.msra.mxu0 %v12905_v23  ;;  %6994 = vmatpush1.bf16.msra.mxu1 %v12908_v24  ;;  %v14847_v23 = vld [vmem:[%s18694_s0 + $0x12c] ss:$72 sps:$4 sm:$0xff]   ;;  %v12995_v24 = vld [vmem:[%s18695_s1 + $0x248] ss:$16 sps:$4 sm:$0xff]  }
  0x64   :  { %5451 = vmatprep.subr.bf16.mxu0 %v12913_v25  ;;  %6995 = vmatprep.subr.bf16.mxu1 %v12916_v26  ;;  %v13003_v25 = vld [vmem:[%s18695_s1 + $0x464] ss:$16 sps:$4 sm:$0xff]   ;;  %v13006_v26 = vld [vmem:[%s18695_s1 + $0x26c] ss:$16 sps:$4 sm:$0xff]  }
  0x65   :  { %5322 = vmatprep.mubr.bf16.mxu0 %v14652_v27  ;;  %5402 = vmatprep.mubr.bf16.mxu1 %v12919_v28  ;;  %v13001_v28 = vld [vmem:[%s18695_s1 + $0x460] ss:$16 sps:$4 sm:$0xff]  }
  0x67   :  { %5452 = vmatpush1.bf16.msra.mxu0 %v12911_v29  ;;  %6996 = vmatpush1.bf16.msra.mxu1 %v12914_v30  ;;  %v13004_v29 = vld [vmem:[%s18695_s1 + $0x268] ss:$16 sps:$4 sm:$0xff]   ;;  %v13012_v30 = vld [vmem:[%s18695_s1 + $0x484] ss:$16 sps:$4 sm:$0xff]  }
  0x68   :  { %5453 = vmatprep.subr.bf16.mxu0 %v12925_v31  ;;  %6997 = vmatprep.subr.bf16.mxu1 %v12928_v33  ;;  %v14885_v31 = vld [vmem:[%s18694_s0 + $0x1bc] ss:$72 sps:$4 sm:$0xff]   ;;  %v13010_v33 = vld [vmem:[%s18695_s1 + $0x480] ss:$16 sps:$4 sm:$0xff]  }
  0x6a   :  { %5323 = vmatmul.mubr.bf16.gmra.mrb[20].mxu0 %v14670_v32  ;;  %5403 = vmatmul.mubr.bf16.gmra.mrb[20].mxu1 %v12922_v34  ;;  %v13013_v34 = vld [vmem:[%s18695_s1 + $0x288] ss:$16 sps:$4 sm:$0xff]  }
  0x6b   :  { %5454 = vmatpush1.bf16.msra.mxu0 %v12923_v36  ;;  %6998 = vmatpush1.bf16.msra.mxu1 %v12926_v37  ;;  %v13021_v36 = vld [vmem:[%s18695_s1 + $0x4a4] ss:$16 sps:$4 sm:$0xff]   ;;  %v13024_v37 = vld [vmem:[%s18695_s1 + $0x2ac] ss:$16 sps:$4 sm:$0xff]  }
  0x6c   :  { %5455 = vmatprep.subr.bf16.mxu0 %v12931_v38  ;;  %6999 = vmatprep.subr.bf16.mxu1 %v12934_v39  ;;  %v13019_v38 = vld [vmem:[%s18695_s1 + $0x4a0] ss:$16 sps:$4 sm:$0xff]   ;;  %v13022_v39 = vld [vmem:[%s18695_s1 + $0x2a8] ss:$16 sps:$4 sm:$0xff]  }
  0x6d   :  { %5332 = vmatprep.mubr.bf16.mxu0 %v14694_v40  ;;  %5412 = vmatprep.mubr.bf16.mxu1 %v12937_v41  ;;  %v13030_v41 = vld [vmem:[%s18695_s1 + $0x4c4] ss:$16 sps:$4 sm:$0xff]  }
  0x6f   :  { %5456 = vmatpush1.bf16.msra.mxu0 %v12929_v43  ;;  %7000 = vmatpush1.bf16.msra.mxu1 %v12932_v44  ;;  %v13007_v43 = vld [vmem:[%s18694_s0 + $0x24c] ss:$72 sps:$4 sm:$0xff]   ;;  %v13028_v44 = vld [vmem:[%s18695_s1 + $0x4c0] ss:$16 sps:$4 sm:$0xff]  }
  0x70   :  { %5457 = vmatprep.subr.bf16.mxu0 %v12943_v45  ;;  %7001 = vmatprep.subr.bf16.mxu1 %v12946_v48  ;;  %v13031_v45 = vld [vmem:[%s18695_s1 + $0x2c8] ss:$16 sps:$4 sm:$0xff]   ;;  %v13039_v48 = vld [vmem:[%s18695_s1 + $0x4e4] ss:$16 sps:$4 sm:$0xff]  }
  0x72   :  { %5333 = vmatmul.mubr.bf16.gmra.mrb[24].mxu0 %v14712_v46  ;;  %5413 = vmatmul.mubr.bf16.gmra.mrb[24].mxu1 %v12940_v49  ;;  %v13042_v49 = vld [vmem:[%s18695_s1 + $0x2ec] ss:$16 sps:$4 sm:$0xff]  }
  0x73   :  { %5458 = vmatpush1.bf16.msra.mxu0 %v12941_v50  ;;  %7002 = vmatpush1.bf16.msra.mxu1 %v12944_v51  ;;  %v13037_v50 = vld [vmem:[%s18695_s1 + $0x4e0] ss:$16 sps:$4 sm:$0xff]   ;;  %v13040_v51 = vld [vmem:[%s18695_s1 + $0x2e8] ss:$16 sps:$4 sm:$0xff]  }
  0x74   :  { %5459 = vmatprep.subr.bf16.mxu0 %v12949_v52  ;;  %7003 = vmatprep.subr.bf16.mxu1 %v12952_v53  ;;  %v13048_v52 = vld [vmem:[%s18695_s1 + $0x504] ss:$16 sps:$4 sm:$0xff]  }
  0x75   :  { %5342 = vmatprep.mubr.bf16.mxu0 %v14736_v55  ;;  %5422 = vmatprep.mubr.bf16.mxu1 %v14741_v56  ;;  %v13016_v53 = vld [vmem:[%s18694_s0 + $0x2dc] ss:$72 sps:$4 sm:$0xff]  }
  0x77   :  { %5460 = vmatpush1.bf16.msra.mxu0 %v12947_v57  ;;  %7004 = vmatpush1.bf16.msra.mxu1 %v12950_v58  ;;  %v13046_v57 = vld [vmem:[%s18695_s1 + $0x500] ss:$16 sps:$4 sm:$0xff]   ;;  %v13049_v58 = vld [vmem:[%s18695_s1 + $0x308] ss:$16 sps:$4 sm:$0xff]  }
  0x78   :  { %5461 = vmatprep.subr.bf16.mxu0 %v12961_v60  ;;  %7005 = vmatprep.subr.bf16.mxu1 %v12964_v61  ;;  %v13057_v60 = vld [vmem:[%s18695_s1 + $0x524] ss:$16 sps:$4 sm:$0xff]   ;;  %v13060_v61 = vld [vmem:[%s18695_s1 + $0x32c] ss:$16 sps:$4 sm:$0xff]  }
  0x7a   :  { %5343 = vmatmul.mubr.bf16.gmra.mrb[28].mxu0 %v14761_v62  ;;  %5423 = vmatmul.mubr.bf16.gmra.mrb[28].mxu1 %v14766_v63 }
  0x7b   :  { %5462 = vmatpush1.bf16.msra.mxu0 %v12959_v0  ;;  %7006 = vmatpush1.bf16.msra.mxu1 %v12962_v1  ;;  %v13055_v0 = vld [vmem:[%s18695_s1 + $0x520] ss:$16 sps:$4 sm:$0xff]   ;;  %v13058_v1 = vld [vmem:[%s18695_s1 + $0x328] ss:$16 sps:$4 sm:$0xff]  }
  0x7c   :  { %5463 = vmatprep.subr.bf16.mxu0 %v12967_v3  ;;  %7007 = vmatprep.subr.bf16.mxu1 %v12970_v4  ;;  %v13066_v3 = vld [vmem:[%s18695_s1 + $0x544] ss:$16 sps:$4 sm:$0xff]  }
  0x7d   :  { %5465 = vmatprep.mubr.bf16.mxu0 %v14783_v5  ;;  %7009 = vmatprep.mubr.bf16.mxu1 %v14392_v13  ;;  %v12985_v13 = vld [vmem:[%s18695_s1 + $0x424] ss:$16 sps:$4 sm:$0xff]  }
  0x7e   :  { %v13025_v4 = vld [vmem:[%s18694_s0 + $0x36c] ss:$72 sps:$4 sm:$0xff]  }
  0x7f   :  { %5464 = vmatpush1.bf16.msra.mxu0 %v12965_v6  ;;  %7008 = vmatpush1.bf16.msra.mxu1 %v12968_v8  ;;  %v13064_v6 = vld [vmem:[%s18695_s1 + $0x540] ss:$16 sps:$4 sm:$0xff]   ;;  %v13067_v8 = vld [vmem:[%s18695_s1 + $0x348] ss:$16 sps:$4 sm:$0xff]  }
  0x80   :  { %5626 = vmatprep.subr.bf16.mxu0 %v12976_v9  ;;  %7170 = vmatprep.subr.bf16.mxu1 %v12979_v10  ;;  %v13075_v9 = vld [vmem:[%s18695_s1 + $0x564] ss:$16 sps:$4 sm:$0xff]   ;;  %v13078_v10 = vld [vmem:[%s18695_s1 + $0x36c] ss:$16 sps:$4 sm:$0xff]  }
  0x82   :  { %5466 = vmatmul.mubr.bf16.vlgmr.msra.gmra.mrb[0].mxu0 %v14804_v11  ;;  %7010 = vmatmul.mubr.bf16.vlgmr.msra.gmra.mrb[32].mxu1 %v14461_v35  ;;  %v12997_v35 = vld [vmem:[%s18695_s1 + $0x24c] ss:$16 sps:$4 sm:$0xff]  }
  0x83   :  { %5627 = vmatpush1.bf16.msra.mxu0 %v12974_v12  ;;  %7171 = vmatpush1.bf16.msra.mxu1 %v12977_v14  ;;  %v13073_v12 = vld [vmem:[%s18695_s1 + $0x560] ss:$16 sps:$4 sm:$0xff]  }
  0x84   :  { %5475 = vmatprep.mubr.bf16.mxu0 %v14815_v16  ;;  %7019 = vmatprep.mubr.bf16.mxu1 %v14484_v42  ;;  %v12992_v42 = vld [vmem:[%s18695_s1 + $0x440] ss:$16 sps:$4 sm:$0xff]  }
  0x85   :  { %5628 = vmatprep.subr.bf16.mxu0 %v12985_v13  ;;  %7172 = vmatprep.subr.bf16.mxu1 %v12988_v17  ;;  %v13027_v14 = vld [vmem:[%s18694_s0 + $0x368] ss:$72 sps:$4 sm:$0xff]   ;;  %v13087_v17 = vld [vmem:[%s18695_s1 + $0x38c] ss:$16 sps:$4 sm:$0xff]  }
  0x86   :  { %v13076_v13 = vld [vmem:[%s18695_s1 + $0x368] ss:$16 sps:$4 sm:$0xff]  }
  0x87   :  { %5629 = vmatpush1.bf16.msra.mxu0 %v12983_v18  ;;  %7173 = vmatpush1.bf16.msra.mxu1 %v12986_v19  ;;  %v13082_v18 = vld [vmem:[%s18695_s1 + $0x580] ss:$16 sps:$4 sm:$0xff]   ;;  %v13085_v19 = vld [vmem:[%s18695_s1 + $0x388] ss:$16 sps:$4 sm:$0xff]  }
  0x88   :  { %5630 = vmatprep.subr.bf16.mxu0 %v12994_v21  ;;  %7174 = vmatprep.subr.bf16.mxu1 %v12997_v35  ;;  %v13093_v21 = vld [vmem:[%s18695_s1 + $0x5a4] ss:$16 sps:$4 sm:$0xff]   ;;  %v13096_v35 = vld [vmem:[%s18695_s1 + $0x3ac] ss:$16 sps:$4 sm:$0xff]  }
  0x8a   :  { %5476 = vmatmul.mubr.bf16.gmra.mrb[4].mxu0 %v14842_v22  ;;  %7020 = vmatmul.mubr.bf16.gmra.mrb[36].mxu1 %v14502_v47  ;;  %v13015_v47 = vld [vmem:[%s18695_s1 + $0x28c] ss:$16 sps:$4 sm:$0xff]  }
  0x8b   :  { %5485 = vmatprep.mubr.bf16.mxu0 %v14847_v23  ;;  %7029 = vmatprep.mubr.bf16.mxu1 %v14526_v54  ;;  %v14880_v54 = vld [vmem:[%s18694_s0 + $0x128] ss:$72 sps:$4 sm:$0xff]  }
  0x8c   :  { %5631 = vmatpush1.bf16.msra.mxu0 %v12992_v42  ;;  %7175 = vmatpush1.bf16.msra.mxu1 %v12995_v24  ;;  %v13091_v42 = vld [vmem:[%s18695_s1 + $0x5a0] ss:$16 sps:$4 sm:$0xff]   ;;  %v13094_v24 = vld [vmem:[%s18695_s1 + $0x3a8] ss:$16 sps:$4 sm:$0xff]  }
  0x8d   :  { %5632 = vmatprep.subr.bf16.mxu0 %v13003_v25  ;;  %7176 = vmatprep.subr.bf16.mxu1 %v13006_v26  ;;  %v13102_v25 = vld [vmem:[%s18695_s1 + $0x5c4] ss:$16 sps:$4 sm:$0xff]   ;;  %v13105_v26 = vld [vmem:[%s18695_s1 + $0x3cc] ss:$16 sps:$4 sm:$0xff]  }
  0x90   :  { %5633 = vmatpush1.bf16.msra.mxu0 %v13001_v28  ;;  %7177 = vmatpush1.bf16.msra.mxu1 %v13004_v29  ;;  %v13043_v28 = vld [vmem:[%s18694_s0 + $0x48c] ss:$72 sps:$4 sm:$0xff]   ;;  %v13103_v29 = vld [vmem:[%s18695_s1 + $0x3c8] ss:$16 sps:$4 sm:$0xff]  }
  0x91   :  { %5634 = vmatprep.subr.bf16.mxu0 %v13012_v30  ;;  %7178 = vmatprep.subr.bf16.mxu1 %v13015_v47  ;;  %v13111_v30 = vld [vmem:[%s18695_s1 + $0x5e4] ss:$16 sps:$4 sm:$0xff]   ;;  %v13114_v47 = vld [vmem:[%s18695_s1 + $0x3ec] ss:$16 sps:$4 sm:$0xff]  }
  0x92   :  { %5486 = vmatmul.mubr.bf16.gmra.mrb[8].mxu0 %v14880_v54  ;;  %7030 = vmatmul.mubr.bf16.gmra.mrb[40].mxu1 %v14544_v59  ;;  %v13033_v59 = vld [vmem:[%s18695_s1 + $0x2cc] ss:$16 sps:$4 sm:$0xff]  }
  0x93   :  { %5495 = vmatprep.mubr.bf16.mxu0 %v14885_v31  ;;  %7039 = vmatprep.mubr.bf16.mxu1 %v14568_v2  ;;  %v13000_v2 = vld [vmem:[%s18694_s0 + $0x1b8] ss:$72 sps:$4 sm:$0xff]  }
  0x94   :  { %5635 = vmatpush1.bf16.msra.mxu0 %v13010_v33  ;;  %7179 = vmatpush1.bf16.msra.mxu1 %v13013_v34  ;;  %v13109_v33 = vld [vmem:[%s18695_s1 + $0x5e0] ss:$16 sps:$4 sm:$0xff]   ;;  %v13112_v34 = vld [vmem:[%s18695_s1 + $0x3e8] ss:$16 sps:$4 sm:$0xff]  }
  0x95   :  { %5636 = vmatprep.subr.bf16.mxu0 %v13021_v36  ;;  %7180 = vmatprep.subr.bf16.mxu1 %v13024_v37  ;;  %v14203_v36 = vld [vmem:[%s18694_s0 + $0x484] ss:$72 sps:$4 sm:$0xff]  }
  0x96   :  { %v13120_v37 = vld [vmem:[%s18695_s1 + $0x604] ss:$16 sps:$4 sm:$0xff]  }
  0x98   :  { %5637 = vmatpush1.bf16.msra.mxu0 %v13019_v38  ;;  %7181 = vmatpush1.bf16.msra.mxu1 %v13022_v39  ;;  %v13045_v38 = vld [vmem:[%s18694_s0 + $0x488] ss:$72 sps:$4 sm:$0xff]   ;;  %v13052_v39 = vld [vmem:[%s18694_s0 + $0x51c] ss:$72 sps:$4 sm:$0xff]  }
  0x99   :  { %5638 = vmatprep.subr.bf16.mxu0 %v13030_v41  ;;  %7182 = vmatprep.subr.bf16.mxu1 %v13033_v59  ;;  %v14204_v41 = vld [vmem:[%s18694_s0 + $0x480] ss:$72 sps:$4 sm:$0xff]   ;;  %v14205_v59 = vld [vmem:[%s18694_s0 + $0x514] ss:$72 sps:$4 sm:$0xff]  }
  0x9a   :  { %5496 = vmatmul.mubr.bf16.gmra.mrb[12].mxu0 %v13000_v2  ;;  %7040 = vmatmul.mubr.bf16.gmra.mrb[44].mxu1 %v14586_v7  ;;  %v13051_v7 = vld [vmem:[%s18695_s1 + $0x30c] ss:$16 sps:$4 sm:$0xff]   ;;  %v13054_v2 = vld [vmem:[%s18694_s0 + $0x518] ss:$72 sps:$4 sm:$0xff]  }
  0x9b   :  { %5505 = vmatprep.mubr.bf16.mxu0 %v13007_v43  ;;  %7049 = vmatprep.mubr.bf16.mxu1 %v14610_v15  ;;  %v13009_v15 = vld [vmem:[%s18694_s0 + $0x248] ss:$72 sps:$4 sm:$0xff]   ;;  %v13061_v43 = vld [vmem:[%s18694_s0 + $0x5ac] ss:$72 sps:$4 sm:$0xff]  }
  0x9c   :  { %5639 = vmatpush1.bf16.msra.mxu0 %v13028_v44  ;;  %7183 = vmatpush1.bf16.msra.mxu1 %v13031_v45  ;;  %v14206_v44 = vld [vmem:[%s18694_s0 + $0x510] ss:$72 sps:$4 sm:$0xff]   ;;  %v14207_v45 = vld [vmem:[%s18694_s0 + $0x5a4] ss:$72 sps:$4 sm:$0xff]  }
  0x9d   :  { %5640 = vmatprep.subr.bf16.mxu0 %v13039_v48  ;;  %7184 = vmatprep.subr.bf16.mxu1 %v13042_v49  ;;  %v13063_v48 = vld [vmem:[%s18694_s0 + $0x5a8] ss:$72 sps:$4 sm:$0xff]   ;;  %v13070_v49 = vld [vmem:[%s18694_s0 + $0x63c] ss:$72 sps:$4 sm:$0xff]  }
  0xa0   :  { %5641 = vmatpush1.bf16.msra.mxu0 %v13037_v50  ;;  %7185 = vmatpush1.bf16.msra.mxu1 %v13040_v51  ;;  %v14208_v50 = vld [vmem:[%s18694_s0 + $0x5a0] ss:$72 sps:$4 sm:$0xff]   ;;  %v14209_v51 = vld [vmem:[%s18694_s0 + $0x634] ss:$72 sps:$4 sm:$0xff]  }
  0xa1   :  { %5642 = vmatprep.subr.bf16.mxu0 %v13048_v52  ;;  %7186 = vmatprep.subr.bf16.mxu1 %v13051_v7  ;;  %v13072_v52 = vld [vmem:[%s18694_s0 + $0x638] ss:$72 sps:$4 sm:$0xff]   ;;  %v13079_v7 = vld [vmem:[%s18694_s0 + $0x6cc] ss:$72 sps:$4 sm:$0xff]  }
  0xa2   :  { %5506 = vmatmul.mubr.bf16.gmra.mrb[16].mxu0 %v13009_v15  ;;  %7050 = vmatmul.mubr.bf16.gmra.mrb[48].mxu1 %v14628_v20  ;;  %v13069_v20 = vld [vmem:[%s18695_s1 + $0x34c] ss:$16 sps:$4 sm:$0xff]   ;;  %v14210_v15 = vld [vmem:[%s18694_s0 + $0x630] ss:$72 sps:$4 sm:$0xff]  }
  0xa3   :  { %5515 = vmatprep.mubr.bf16.mxu0 %v13016_v53  ;;  %7059 = vmatprep.mubr.bf16.mxu1 %v14652_v27  ;;  %v13018_v27 = vld [vmem:[%s18694_s0 + $0x2d8] ss:$72 sps:$4 sm:$0xff]   ;;  %v14211_v53 = vld [vmem:[%s18694_s0 + $0x6c4] ss:$72 sps:$4 sm:$0xff]  }
  0xa4   :  { %5643 = vmatpush1.bf16.msra.mxu0 %v13046_v57  ;;  %7187 = vmatpush1.bf16.msra.mxu1 %v13049_v58  ;;  %v13081_v57 = vld [vmem:[%s18694_s0 + $0x6c8] ss:$72 sps:$4 sm:$0xff]   ;;  %v13088_v58 = vld [vmem:[%s18694_s0 + $0x75c] ss:$72 sps:$4 sm:$0xff]  }
  0xa5   :  { %5644 = vmatprep.subr.bf16.mxu0 %v13057_v60  ;;  %7188 = vmatprep.subr.bf16.mxu1 %v13060_v61  ;;  %v14212_v60 = vld [vmem:[%s18694_s0 + $0x6c0] ss:$72 sps:$4 sm:$0xff]   ;;  %v14213_v61 = vld [vmem:[%s18694_s0 + $0x754] ss:$72 sps:$4 sm:$0xff]  }
  0xa8   :  { %5645 = vmatpush1.bf16.msra.mxu0 %v13055_v0  ;;  %7189 = vmatpush1.bf16.msra.mxu1 %v13058_v1  ;;  %v13090_v0 = vld [vmem:[%s18694_s0 + $0x758] ss:$72 sps:$4 sm:$0xff]   ;;  %v13097_v1 = vld [vmem:[%s18694_s0 + $0x7ec] ss:$72 sps:$4 sm:$0xff]  }
  0xa9   :  { %5646 = vmatprep.subr.bf16.mxu0 %v13066_v3  ;;  %7190 = vmatprep.subr.bf16.mxu1 %v13069_v20  ;;  %v14214_v3 = vld [vmem:[%s18694_s0 + $0x750] ss:$72 sps:$4 sm:$0xff]   ;;  %v14215_v20 = vld [vmem:[%s18694_s0 + $0x7e4] ss:$72 sps:$4 sm:$0xff]  }
  0xaa   :  { %5516 = vmatmul.mubr.bf16.gmra.mrb[20].mxu0 %v13018_v27  ;;  %7060 = vmatmul.mubr.bf16.gmra.mrb[52].mxu1 %v14670_v32  ;;  %v13034_v32 = vld [vmem:[%s18694_s0 + $0x3fc] ss:$72 sps:$4 sm:$0xff]   ;;  %v13099_v27 = vld [vmem:[%s18694_s0 + $0x7e8] ss:$72 sps:$4 sm:$0xff]  }
  0xab   :  { %5525 = vmatprep.mubr.bf16.mxu0 %v13025_v4  ;;  %7069 = vmatprep.mubr.bf16.mxu1 %v14694_v40  ;;  %v13084_v40 = vld [vmem:[%s18695_s1 + $0x584] ss:$16 sps:$4 sm:$0xff]  }
  0xac   :  { %5647 = vmatpush1.bf16.msra.mxu0 %v13064_v6  ;;  %7191 = vmatpush1.bf16.msra.mxu1 %v13067_v8  ;;  %v13106_v4 = vld [vmem:[%s18694_s0 + $0x87c] ss:$72 sps:$4 sm:$0xff]   ;;  %v14216_v6 = vld [vmem:[%s18694_s0 + $0x7e0] ss:$72 sps:$4 sm:$0xff]  }
  0xad   :  { %5648 = vmatprep.subr.bf16.mxu0 %v13075_v9  ;;  %7192 = vmatprep.subr.bf16.mxu1 %v13078_v10  ;;  %v13108_v8 = vld [vmem:[%s18694_s0 + $0x878] ss:$72 sps:$4 sm:$0xff]   ;;  %v13117_v9 = vld [vmem:[%s18694_s0 + $0x14] ss:$72 sps:$4 sm:$0xff]  }
  0xae   :  { %v13115_v10 = vld [vmem:[%s18694_s0 + $0x10] ss:$72 sps:$4 sm:$0xff]  }
  0xb0   :  { %5649 = vmatpush1.bf16.msra.mxu0 %v13073_v12  ;;  %7193 = vmatpush1.bf16.msra.mxu1 %v13076_v13  ;;  %v13121_v12 = vld [vmem:[%s18695_s1 + $0x408] ss:$16 sps:$4 sm:$0xff]   ;;  %v13127_v13 = vld [vmem:[%s18695_s1 + $0x620] ss:$16 sps:$4 sm:$0xff]  }
  0xb1   :  { %5650 = vmatprep.subr.bf16.mxu0 %v13084_v40  ;;  %7194 = vmatprep.subr.bf16.mxu1 %v13087_v17  ;;  %v13138_v40 = vld [vmem:[%s18695_s1 + $0x644] ss:$16 sps:$4 sm:$0xff]   ;;  %v13141_v17 = vld [vmem:[%s18695_s1 + $0x44c] ss:$16 sps:$4 sm:$0xff]  }
  0xb2   :  { %5526 = vmatmul.mubr.bf16.gmra.mrb[24].mxu0 %v13027_v14  ;;  %7070 = vmatmul.mubr.bf16.gmra.mrb[56].mxu1 %v14712_v46  ;;  %v13036_v46 = vld [vmem:[%s18694_s0 + $0x3f8] ss:$72 sps:$4 sm:$0xff]   ;;  %v13124_v14 = vld [vmem:[%s18694_s0 + $0xa4] ss:$72 sps:$4 sm:$0xff]  }
  0xb3   :  { %5535 = vmatprep.mubr.bf16.mxu0 %v13034_v32  ;;  %7079 = vmatprep.mubr.bf16.mxu1 %v14736_v55  ;;  %v13100_v55 = vld [vmem:[%s18695_s1 + $0x5c0] ss:$16 sps:$4 sm:$0xff]   ;;  %v13130_v32 = vld [vmem:[%s18695_s1 + $0x428] ss:$16 sps:$4 sm:$0xff]  }
  0xb4   :  { %5651 = vmatpush1.bf16.msra.mxu0 %v13082_v18  ;;  %7195 = vmatpush1.bf16.msra.mxu1 %v13085_v19  ;;  %v13133_v18 = vld [vmem:[%s18694_s0 + $0x134] ss:$72 sps:$4 sm:$0xff]   ;;  %v13136_v19 = vld [vmem:[%s18695_s1 + $0x640] ss:$16 sps:$4 sm:$0xff]  }
  0xb5   :  { %5652 = vmatprep.subr.bf16.mxu0 %v13093_v21  ;;  %7196 = vmatprep.subr.bf16.mxu1 %v13096_v35  ;;  %v13147_v21 = vld [vmem:[%s18695_s1 + $0x664] ss:$16 sps:$4 sm:$0xff]   ;;  %v13150_v35 = vld [vmem:[%s18695_s1 + $0x46c] ss:$16 sps:$4 sm:$0xff]  }
  0xb8   :  { %5653 = vmatpush1.bf16.msra.mxu0 %v13091_v42  ;;  %7197 = vmatpush1.bf16.msra.mxu1 %v13094_v24  ;;  %v13145_v42 = vld [vmem:[%s18695_s1 + $0x660] ss:$16 sps:$4 sm:$0xff]   ;;  %v13148_v24 = vld [vmem:[%s18695_s1 + $0x468] ss:$16 sps:$4 sm:$0xff]  }
  0xb9   :  { %5654 = vmatprep.subr.bf16.mxu0 %v13102_v25  ;;  %7198 = vmatprep.subr.bf16.mxu1 %v13105_v26  ;;  %v13156_v25 = vld [vmem:[%s18695_s1 + $0x684] ss:$16 sps:$4 sm:$0xff]   ;;  %v13159_v26 = vld [vmem:[%s18695_s1 + $0x48c] ss:$16 sps:$4 sm:$0xff]  }
  0xba   :  { %5536 = vmatmul.mubr.bf16.gmra.mrb[28].mxu0 %v13036_v46  ;;  %7080 = vmatmul.mubr.bf16.gmra.mrb[60].mxu1 %v14761_v62  ;;  %v13123_v62 = vld [vmem:[%s18695_s1 + $0x40c] ss:$16 sps:$4 sm:$0xff]   ;;  %v13154_v46 = vld [vmem:[%s18695_s1 + $0x680] ss:$16 sps:$4 sm:$0xff]  }
  0xbb   :  { %5545 = vmatprep.mubr.bf16.mxu0 %v13043_v28  ;;  %7089 = vmatprep.mubr.bf16.mxu1 %v14203_v36  ;;  %v13157_v28 = vld [vmem:[%s18695_s1 + $0x488] ss:$16 sps:$4 sm:$0xff]  }
  0xbc   :  { %5655 = vmatpush1.bf16.msra.mxu0 %v13100_v55  ;;  %7199 = vmatpush1.bf16.msra.mxu1 %v13103_v29  ;;  %v13165_v55 = vld [vmem:[%s18695_s1 + $0x6a4] ss:$16 sps:$4 sm:$0xff]   ;;  %v13168_v29 = vld [vmem:[%s18695_s1 + $0x4ac] ss:$16 sps:$4 sm:$0xff]  }
  0xbd   :  { %5656 = vmatprep.subr.bf16.mxu0 %v13111_v30  ;;  %7200 = vmatprep.subr.bf16.mxu1 %v13114_v47  ;;  %v13163_v30 = vld [vmem:[%s18695_s1 + $0x6a0] ss:$16 sps:$4 sm:$0xff]   ;;  %v13166_v47 = vld [vmem:[%s18695_s1 + $0x4a8] ss:$16 sps:$4 sm:$0xff]  }
  0xc0   :  { %5657 = vmatpush1.bf16.msra.mxu0 %v13109_v33  ;;  %7201 = vmatpush1.bf16.msra.mxu1 %v13112_v34  ;;  %v13174_v33 = vld [vmem:[%s18695_s1 + $0x6c4] ss:$16 sps:$4 sm:$0xff]   ;;  %v13177_v34 = vld [vmem:[%s18695_s1 + $0x4cc] ss:$16 sps:$4 sm:$0xff]  }
  0xc1   :  { %5819 = vmatprep.subr.bf16.mxu0 %v13120_v37  ;;  %7363 = vmatprep.subr.bf16.mxu1 %v13123_v62  ;;  %v13172_v62 = vld [vmem:[%s18695_s1 + $0x6c0] ss:$16 sps:$4 sm:$0xff]  }
  0xc2   :  { %5546 = vmatmul.mubr.bf16.gmra.mrb[32].mxu0 %v13045_v38  ;;  %7090 = vmatmul.mubr.bf16.gmra.mrb[64].mxu1 %v14204_v41  ;;  %v13175_v38 = vld [vmem:[%s18695_s1 + $0x4c8] ss:$16 sps:$4 sm:$0xff]   ;;  %v13183_v41 = vld [vmem:[%s18695_s1 + $0x6e4] ss:$16 sps:$4 sm:$0xff]  }
  0xc3   :  { %5555 = vmatprep.mubr.bf16.mxu0 %v13052_v39  ;;  %7099 = vmatprep.mubr.bf16.mxu1 %v14205_v59  ;;  %v13186_v59 = vld [vmem:[%s18695_s1 + $0x4ec] ss:$16 sps:$4 sm:$0xff]  }
  0xca   :  { %5556 = vmatmul.mubr.bf16.gmra.mrb[36].mxu0 %v13054_v2  ;;  %7100 = vmatmul.mubr.bf16.gmra.mrb[68].mxu1 %v14206_v44  ;;  %v13181_v44 = vld [vmem:[%s18695_s1 + $0x6e0] ss:$16 sps:$4 sm:$0xff]  }
  0xcb   :  { %5565 = vmatprep.mubr.bf16.mxu0 %v13061_v43  ;;  %7109 = vmatprep.mubr.bf16.mxu1 %v14207_v45  ;;  %v14217_v43 = vld [vmem:[%s18694_s0 + $0x1b8] ss:$72 sps:$4 sm:$0xff]   ;;  %v14218_v45 = vld [vmem:[%s18694_s0 + $0x24c] ss:$72 sps:$4 sm:$0xff]  }
  0xd2   :  { %5566 = vmatmul.mubr.bf16.gmra.mrb[40].mxu0 %v13063_v48  ;;  %7110 = vmatmul.mubr.bf16.gmra.mrb[72].mxu1 %v14208_v50  ;;  %v13184_v48 = vld [vmem:[%s18695_s1 + $0x4e8] ss:$16 sps:$4 sm:$0xff]   ;;  %v13195_v50 = vld [vmem:[%s18695_s1 + $0x50c] ss:$16 sps:$4 sm:$0xff]  }
  0xd3   :  { %5575 = vmatprep.mubr.bf16.mxu0 %v13070_v49  ;;  %7119 = vmatprep.mubr.bf16.mxu1 %v14209_v51  ;;  %v13192_v49 = vld [vmem:[%s18695_s1 + $0x704] ss:$16 sps:$4 sm:$0xff]   ;;  %v13153_v51 = vld [vmem:[%s18694_s0 + $0x250] ss:$72 sps:$4 sm:$0xff]  }
  0xda   :  { %5576 = vmatmul.mubr.bf16.gmra.mrb[44].mxu0 %v13072_v52  ;;  %7120 = vmatmul.mubr.bf16.gmra.mrb[76].mxu1 %v14210_v15 }
  0xdb   :  { %5585 = vmatprep.mubr.bf16.mxu0 %v13079_v7  ;;  %7129 = vmatprep.mubr.bf16.mxu1 %v14211_v53  ;;  %v13160_v7 = vld [vmem:[%s18694_s0 + $0x2e4] ss:$72 sps:$4 sm:$0xff]   ;;  %v13190_v53 = vld [vmem:[%s18695_s1 + $0x700] ss:$16 sps:$4 sm:$0xff]  }
  0xe2   :  { %5586 = vmatmul.mubr.bf16.gmra.mrb[48].mxu0 %v13081_v57  ;;  %7130 = vmatmul.mubr.bf16.gmra.mrb[80].mxu1 %v14212_v60  ;;  %v13193_v57 = vld [vmem:[%s18695_s1 + $0x508] ss:$16 sps:$4 sm:$0xff]   ;;  %v13201_v60 = vld [vmem:[%s18695_s1 + $0x724] ss:$16 sps:$4 sm:$0xff]  }
  0xe3   :  { %5595 = vmatprep.mubr.bf16.mxu0 %v13088_v58  ;;  %7139 = vmatprep.mubr.bf16.mxu1 %v14213_v61  ;;  %v13204_v61 = vld [vmem:[%s18695_s1 + $0x52c] ss:$16 sps:$4 sm:$0xff]  }
  0xea   :  { %5596 = vmatmul.mubr.bf16.gmra.mrb[52].mxu0 %v13090_v0  ;;  %7140 = vmatmul.mubr.bf16.gmra.mrb[84].mxu1 %v14214_v3  ;;  %v13199_v3 = vld [vmem:[%s18695_s1 + $0x720] ss:$16 sps:$4 sm:$0xff]  }
  0xeb   :  { %5605 = vmatprep.mubr.bf16.mxu0 %v13097_v1  ;;  %7149 = vmatprep.mubr.bf16.mxu1 %v14215_v20  ;;  %v14219_v1 = vld [vmem:[%s18694_s0 + $0x248] ss:$72 sps:$4 sm:$0xff]   ;;  %v14220_v20 = vld [vmem:[%s18694_s0 + $0x2dc] ss:$72 sps:$4 sm:$0xff]  }
  0xf2   :  { %5606 = vmatmul.mubr.bf16.gmra.mrb[56].mxu0 %v13099_v27  ;;  %7150 = vmatmul.mubr.bf16.gmra.mrb[88].mxu1 %v14216_v6  ;;  %v13202_v27 = vld [vmem:[%s18695_s1 + $0x528] ss:$16 sps:$4 sm:$0xff]   ;;  %v13213_v6 = vld [vmem:[%s18695_s1 + $0x54c] ss:$16 sps:$4 sm:$0xff]  }
  0xf3   :  { %5615 = vmatprep.mubr.bf16.mxu0 %v13106_v4  ;;  %7159 = vmatprep.mubr.bf16.mxu1 %v14741_v56  ;;  %v13118_v56 = vld [vmem:[%s18695_s1 + $0x600] ss:$16 sps:$4 sm:$0xff]   ;;  %v13210_v4 = vld [vmem:[%s18695_s1 + $0x744] ss:$16 sps:$4 sm:$0xff]  }
  0xfa   :  { %5616 = vmatmul.mubr.bf16.gmra.mrb[60].mxu0 %v13108_v8  ;;  %7160 = vmatmul.mubr.bf16.gmra.mrb[92].mxu1 %v14766_v63  ;;  %v13129_v63 = vld [vmem:[%s18695_s1 + $0x624] ss:$16 sps:$4 sm:$0xff]   ;;  %v13162_v8 = vld [vmem:[%s18694_s0 + $0x2e0] ss:$72 sps:$4 sm:$0xff]  }
  0xfb   :  { %5658 = vmatprep.mubr.bf16.mxu0 %v13117_v9  ;;  %7202 = vmatprep.mubr.bf16.mxu1 %v14783_v5  ;;  %v13132_v5 = vld [vmem:[%s18695_s1 + $0x42c] ss:$16 sps:$4 sm:$0xff]  }
 0x102   :  { %5659 = vmatmul.mubr.bf16.vlgmr.msra.gmra.mrb[0].mxu0 %v13115_v10  ;;  %7203 = vmatmul.mubr.bf16.vlgmr.msra.gmra.mrb[32].mxu1 %v14804_v11  ;;  %v13126_v11 = vld [vmem:[%s18694_s0 + $0xa0] ss:$72 sps:$4 sm:$0xff]   ;;  %v13169_v10 = vld [vmem:[%s18694_s0 + $0x374] ss:$72 sps:$4 sm:$0xff]  }
 0x103   :  { %5820 = vmatpush1.bf16.msra.mxu0 %v13118_v56  ;;  %7364 = vmatpush1.bf16.msra.mxu1 %v13121_v12  ;;  %v13208_v12 = vld [vmem:[%s18695_s1 + $0x740] ss:$16 sps:$4 sm:$0xff]  }
 0x104   :  { %5668 = vmatprep.mubr.bf16.mxu0 %v13124_v14  ;;  %7212 = vmatprep.mubr.bf16.mxu1 %v14815_v16  ;;  %v13139_v16 = vld [vmem:[%s18695_s1 + $0x448] ss:$16 sps:$4 sm:$0xff]  }
 0x105   :  { %5821 = vmatprep.subr.bf16.mxu0 %v13129_v63  ;;  %7365 = vmatprep.subr.bf16.mxu1 %v13132_v5  ;;  %v13211_v14 = vld [vmem:[%s18695_s1 + $0x548] ss:$16 sps:$4 sm:$0xff]   ;;  %v13219_v5 = vld [vmem:[%s18695_s1 + $0x764] ss:$16 sps:$4 sm:$0xff]  }
 0x107   :  { %5822 = vmatpush1.bf16.msra.mxu0 %v13127_v13  ;;  %7366 = vmatpush1.bf16.msra.mxu1 %v13130_v32  ;;  %v13222_v13 = vld [vmem:[%s18695_s1 + $0x56c] ss:$16 sps:$4 sm:$0xff]  }
 0x108   :  { %5823 = vmatprep.subr.bf16.mxu0 %v13138_v40  ;;  %7367 = vmatprep.subr.bf16.mxu1 %v13141_v17  ;;  %v14221_v40 = vld [vmem:[%s18694_s0 + $0x2d8] ss:$72 sps:$4 sm:$0xff]   ;;  %v14222_v17 = vld [vmem:[%s18694_s0 + $0x36c] ss:$72 sps:$4 sm:$0xff]  }
 0x10a   :  { %5669 = vmatmul.mubr.bf16.gmra.mrb[4].mxu0 %v13126_v11  ;;  %7213 = vmatmul.mubr.bf16.gmra.mrb[36].mxu1 %v14842_v22  ;;  %v13135_v22 = vld [vmem:[%s18694_s0 + $0x130] ss:$72 sps:$4 sm:$0xff]  }
 0x10b   :  { %5678 = vmatprep.mubr.bf16.mxu0 %v13133_v18  ;;  %7222 = vmatprep.mubr.bf16.mxu1 %v14847_v23  ;;  %v13142_v23 = vld [vmem:[%s18694_s0 + $0x1c4] ss:$72 sps:$4 sm:$0xff]   ;;  %v13217_v11 = vld [vmem:[%s18695_s1 + $0x760] ss:$16 sps:$4 sm:$0xff]   ;;  %v13220_v18 = vld [vmem:[%s18695_s1 + $0x568] ss:$16 sps:$4 sm:$0xff]  }
 0x10c   :  { %5824 = vmatpush1.bf16.msra.mxu0 %v13136_v19  ;;  %7368 = vmatpush1.bf16.msra.mxu1 %v13139_v16  ;;  %v13228_v19 = vld [vmem:[%s18695_s1 + $0x784] ss:$16 sps:$4 sm:$0xff]   ;;  %v13231_v16 = vld [vmem:[%s18695_s1 + $0x58c] ss:$16 sps:$4 sm:$0xff]  }
 0x10d   :  { %5825 = vmatprep.subr.bf16.mxu0 %v13147_v21  ;;  %7369 = vmatprep.subr.bf16.mxu1 %v13150_v35  ;;  %v13171_v21 = vld [vmem:[%s18694_s0 + $0x370] ss:$72 sps:$4 sm:$0xff]  }
 0x110   :  { %5826 = vmatpush1.bf16.msra.mxu0 %v13145_v42  ;;  %7370 = vmatpush1.bf16.msra.mxu1 %v13148_v24  ;;  %v13178_v42 = vld [vmem:[%s18694_s0 + $0x404] ss:$72 sps:$4 sm:$0xff]  }
 0x111   :  { %5827 = vmatprep.subr.bf16.mxu0 %v13156_v25  ;;  %7371 = vmatprep.subr.bf16.mxu1 %v13159_v26  ;;  %v13226_v25 = vld [vmem:[%s18695_s1 + $0x780] ss:$16 sps:$4 sm:$0xff]   ;;  %v13229_v26 = vld [vmem:[%s18695_s1 + $0x588] ss:$16 sps:$4 sm:$0xff]  }
 0x112   :  { %5679 = vmatmul.mubr.bf16.gmra.mrb[8].mxu0 %v13135_v22  ;;  %7223 = vmatmul.mubr.bf16.gmra.mrb[40].mxu1 %v14880_v54  ;;  %v13144_v54 = vld [vmem:[%s18694_s0 + $0x1c0] ss:$72 sps:$4 sm:$0xff]  }
 0x113   :  { %5688 = vmatprep.mubr.bf16.mxu0 %v13142_v23  ;;  %7232 = vmatprep.mubr.bf16.mxu1 %v14885_v31  ;;  %v13151_v31 = vld [vmem:[%s18694_s0 + $0x254] ss:$72 sps:$4 sm:$0xff]  }
 0x114   :  { %5828 = vmatpush1.bf16.msra.mxu0 %v13154_v46  ;;  %7372 = vmatpush1.bf16.msra.mxu1 %v13157_v28  ;;  %v13237_v23 = vld [vmem:[%s18695_s1 + $0x7a4] ss:$16 sps:$4 sm:$0xff]   ;;  %v13240_v46 = vld [vmem:[%s18695_s1 + $0x5ac] ss:$16 sps:$4 sm:$0xff]  }
 0x115   :  { %v15266_v36 = vpop.f32.mrb[0].mxu1  ;;  %5829 = vmatprep.subr.bf16.mxu0 %v13165_v55  ;;  %7373 = vmatprep.subr.bf16.mxu1 %v13168_v29  ;;  %v14223_v55 = vld [vmem:[%s18694_s0 + $0x368] ss:$72 sps:$4 sm:$0xff]  }
 0x116   :  { %v15271_v37 = vpop.f32.mrb[1].mxu1  ;;  %v13235_v29 = vld [vmem:[%s18695_s1 + $0x7a0] ss:$16 sps:$4 sm:$0xff]  }
 0x117   :  { %v15279_v39 = vpop.f32.mrb[2].mxu1 }
 0x118   :  { %v15287_v2 = vpop.f32.mrb[3].mxu1  ;;  %5830 = vmatpush1.bf16.msra.mxu0 %v13163_v30  ;;  %7374 = vmatpush1.bf16.msra.mxu1 %v13166_v47  ;;  %v14224_v30 = vld [vmem:[%s18694_s0 + $0x3fc] ss:$72 sps:$4 sm:$0xff]   ;;  %v13238_v47 = vld [vmem:[%s18695_s1 + $0x5a8] ss:$16 sps:$4 sm:$0xff]  }
 0x119   :  { %5831 = vmatprep.subr.bf16.mxu0 %v13174_v33  ;;  %7375 = vmatprep.subr.bf16.mxu1 %v13177_v34  ;;  %v13246_v33 = vld [vmem:[%s18695_s1 + $0x7c4] ss:$16 sps:$4 sm:$0xff]   ;;  %v13249_v34 = vld [vmem:[%s18695_s1 + $0x5cc] ss:$16 sps:$4 sm:$0xff]  }
 0x11a   :  { %5689 = vmatmul.mubr.bf16.gmra.mrb[12].mxu0 %v13144_v54  ;;  %7233 = vmatmul.mubr.bf16.gmra.mrb[44].mxu1 %v14217_v43  ;;  %v13180_v54 = vld [vmem:[%s18694_s0 + $0x400] ss:$72 sps:$4 sm:$0xff]  }
 0x11b   :  { %5698 = vmatprep.mubr.bf16.mxu0 %v13151_v31  ;;  %7242 = vmatprep.mubr.bf16.mxu1 %v14218_v45  ;;  %v13258_v45 = vld [vmem:[%s18695_s1 + $0x5ec] ss:$16 sps:$4 sm:$0xff]  }
 0x11c   :  { %5832 = vmatpush1.bf16.msra.mxu0 %v13172_v62  ;;  %7376 = vmatpush1.bf16.msra.mxu1 %v13175_v38  ;;  %v13187_v62 = vld [vmem:[%s18694_s0 + $0x494] ss:$72 sps:$4 sm:$0xff]  }
 0x11d   :  { %v15310_v52 = vpop.f32.mrb[4].mxu1  ;;  %5833 = vmatprep.subr.bf16.mxu0 %v13183_v41  ;;  %7377 = vmatprep.subr.bf16.mxu1 %v13186_v59  ;;  %v13244_v41 = vld [vmem:[%s18695_s1 + $0x7c0] ss:$16 sps:$4 sm:$0xff]   ;;  %v13247_v59 = vld [vmem:[%s18695_s1 + $0x5c8] ss:$16 sps:$4 sm:$0xff]  }
 0x11e   :  { %v15315_v15 = vpop.f32.mrb[5].mxu1 }
 0x11f   :  { %v15323_v58 = vpop.f32.mrb[6].mxu1 }
 0x120   :  { %v15331_v0 = vpop.f32.mrb[7].mxu1  ;;  %5834 = vmatpush1.bf16.msra.mxu0 %v13181_v44  ;;  %7378 = vmatpush1.bf16.msra.mxu1 %v13184_v48  ;;  %v13255_v44 = vld [vmem:[%s18695_s1 + $0x7e4] ss:$16 sps:$4 sm:$0xff]  }
 0x121   :  { %5835 = vmatprep.subr.bf16.mxu0 %v13192_v49  ;;  %7379 = vmatprep.subr.bf16.mxu1 %v13195_v50  ;;  %v14225_v49 = vld [vmem:[%s18694_s0 + $0x3f8] ss:$72 sps:$4 sm:$0xff]  }
 0x122   :  { %5699 = vmatmul.mubr.bf16.gmra.mrb[16].mxu0 %v13153_v51  ;;  %7243 = vmatmul.mubr.bf16.gmra.mrb[48].mxu1 %v14219_v1  ;;  %v13253_v50 = vld [vmem:[%s18695_s1 + $0x7e0] ss:$16 sps:$4 sm:$0xff]   ;;  %v14226_v51 = vld [vmem:[%s18694_s0 + $0x48c] ss:$72 sps:$4 sm:$0xff]  }
 0x123   :  { %5708 = vmatprep.mubr.bf16.mxu0 %v13160_v7  ;;  %7252 = vmatprep.mubr.bf16.mxu1 %v14220_v20  ;;  %v13256_v7 = vld [vmem:[%s18695_s1 + $0x5e8] ss:$16 sps:$4 sm:$0xff]   ;;  %v13196_v1 = vld [vmem:[%s18694_s0 + $0x524] ss:$72 sps:$4 sm:$0xff]  }
 0x124   :  { %5836 = vmatpush1.bf16.msra.mxu0 %v13190_v53  ;;  %7380 = vmatpush1.bf16.msra.mxu1 %v13193_v57  ;;  %v13264_v53 = vld [vmem:[%s18695_s1 + $0x804] ss:$16 sps:$4 sm:$0xff]   ;;  %v13267_v57 = vld [vmem:[%s18695_s1 + $0x60c] ss:$16 sps:$4 sm:$0xff]  }
 0x125   :  { %v15354_v9 = vpop.f32.mrb[8].mxu1  ;;  %5837 = vmatprep.subr.bf16.mxu0 %v13201_v60  ;;  %7381 = vmatprep.subr.bf16.mxu1 %v13204_v61  ;;  %v13189_v60 = vld [vmem:[%s18694_s0 + $0x490] ss:$72 sps:$4 sm:$0xff]  }
 0x126   :  { %v15359_v56 = vpop.f32.mrb[9].mxu1 }
 0x127   :  { %v15367_v63 = vpop.f32.mrb[10].mxu1 }
 0x128   :  { %v15375_v32 = vpop.f32.mrb[11].mxu1  ;;  %5838 = vmatpush1.bf16.msra.mxu0 %v13199_v3  ;;  %7382 = vmatpush1.bf16.msra.mxu1 %v13202_v27 }
 0x129   :  { %5839 = vmatprep.subr.bf16.mxu0 %v13210_v4  ;;  %7383 = vmatprep.subr.bf16.mxu1 %v13213_v6  ;;  %v14227_v4 = vld [vmem:[%s18694_s0 + $0x488] ss:$72 sps:$4 sm:$0xff]   ;;  %v14228_v6 = vld [vmem:[%s18694_s0 + $0x51c] ss:$72 sps:$4 sm:$0xff]  }
 0x12a   :  { %5709 = vmatmul.mubr.bf16.gmra.mrb[20].mxu0 %v13162_v8  ;;  %7253 = vmatmul.mubr.bf16.gmra.mrb[52].mxu1 %v14221_v40  ;;  %v13198_v8 = vld [vmem:[%s18694_s0 + $0x520] ss:$72 sps:$4 sm:$0xff]  }
 0x12b   :  { %5718 = vmatprep.mubr.bf16.mxu0 %v13169_v10  ;;  %7262 = vmatprep.mubr.bf16.mxu1 %v14222_v17  ;;  %v14229_v40 = vld [vmem:[%s18694_s0 + $0x518] ss:$72 sps:$4 sm:$0xff]  }
 0x12c   :  { %5840 = vmatpush1.bf16.msra.mxu0 %v13208_v12  ;;  %7384 = vmatpush1.bf16.msra.mxu1 %v13211_v14  ;;  %v13205_v12 = vld [vmem:[%s18694_s0 + $0x5b4] ss:$72 sps:$4 sm:$0xff]   ;;  %v13207_v17 = vld [vmem:[%s18694_s0 + $0x5b0] ss:$72 sps:$4 sm:$0xff]  }
 0x12d   :  { %v15398_v35 = vpop.f32.mrb[12].mxu1  ;;  %5841 = vmatprep.subr.bf16.mxu0 %v13219_v5  ;;  %7385 = vmatprep.subr.bf16.mxu1 %v13222_v13 }
 0x12e   :  { %v15403_v24 = vpop.f32.mrb[13].mxu1 }
 0x12f   :  { %v15411_v22 = vpop.f32.mrb[14].mxu1 }
 0x130   :  { %v15419_v28 = vpop.f32.mrb[15].mxu1  ;;  %5842 = vmatpush1.bf16.msra.mxu0 %v13217_v11  ;;  %7386 = vmatpush1.bf16.msra.mxu1 %v13220_v18  ;;  %v14230_v11 = vld [vmem:[%s18694_s0 + $0x5ac] ss:$72 sps:$4 sm:$0xff]  }
 0x131   :  { %5843 = vmatprep.subr.bf16.mxu0 %v13228_v19  ;;  %7387 = vmatprep.subr.bf16.mxu1 %v13231_v16  ;;  %v13214_v19 = vld [vmem:[%s18694_s0 + $0x644] ss:$72 sps:$4 sm:$0xff]  }
 0x132   :  { %5719 = vmatmul.mubr.bf16.gmra.mrb[24].mxu0 %v13171_v21  ;;  %7263 = vmatmul.mubr.bf16.gmra.mrb[56].mxu1 %v14223_v55  ;;  %v14233_v55 = vld [vmem:[%s18694_s0 + $0x638] ss:$72 sps:$4 sm:$0xff]  }
 0x133   :  { %5728 = vmatprep.mubr.bf16.mxu0 %v13178_v42  ;;  %7272 = vmatprep.mubr.bf16.mxu1 %v14224_v30  ;;  %v13225_v30 = vld [vmem:[%s18694_s0 + $0x6d0] ss:$72 sps:$4 sm:$0xff]  }
 0x134   :  { %5844 = vmatpush1.bf16.msra.mxu0 %v13226_v25  ;;  %7388 = vmatpush1.bf16.msra.mxu1 %v13229_v26  ;;  %v14231_v25 = vld [vmem:[%s18694_s0 + $0x5a8] ss:$72 sps:$4 sm:$0xff]   ;;  %v14232_v26 = vld [vmem:[%s18694_s0 + $0x63c] ss:$72 sps:$4 sm:$0xff]  }
 0x135   :  { %v15442_v31 = vpop.f32.mrb[16].mxu1  ;;  %5845 = vmatprep.subr.bf16.mxu0 %v13237_v23  ;;  %7389 = vmatprep.subr.bf16.mxu1 %v13240_v46  ;;  %v13216_v23 = vld [vmem:[%s18694_s0 + $0x640] ss:$72 sps:$4 sm:$0xff]   ;;  %v13223_v46 = vld [vmem:[%s18694_s0 + $0x6d4] ss:$72 sps:$4 sm:$0xff]  }
 0x136   :  { %v15447_v38 = vpop.f32.mrb[17].mxu1 }
 0x137   :  { %v15455_v43 = vpop.f32.mrb[18].mxu1 }
 0x138   :  { %v15463_v48 = vpop.f32.mrb[19].mxu1  ;;  %5846 = vmatpush1.bf16.msra.mxu0 %v13235_v29  ;;  %7390 = vmatpush1.bf16.msra.mxu1 %v13238_v47  ;;  %v14234_v29 = vld [vmem:[%s18694_s0 + $0x6cc] ss:$72 sps:$4 sm:$0xff]  }
 0x139   :  { %5847 = vmatprep.subr.bf16.mxu0 %v13246_v33  ;;  %7391 = vmatprep.subr.bf16.mxu1 %v13249_v34  ;;  %v13232_v47 = vld [vmem:[%s18694_s0 + $0x764] ss:$72 sps:$4 sm:$0xff]   ;;  %v14235_v33 = vld [vmem:[%s18694_s0 + $0x6c8] ss:$72 sps:$4 sm:$0xff]  }
 0x13a   :  { %5729 = vmatmul.mubr.bf16.gmra.mrb[28].mxu0 %v13180_v54  ;;  %7273 = vmatmul.mubr.bf16.gmra.mrb[60].mxu1 %v14225_v49  ;;  %v14236_v34 = vld [vmem:[%s18694_s0 + $0x75c] ss:$72 sps:$4 sm:$0xff]   ;;  %v13234_v54 = vld [vmem:[%s18694_s0 + $0x760] ss:$72 sps:$4 sm:$0xff]  }
 0x13b   :  { %5738 = vmatprep.mubr.bf16.mxu0 %v13187_v62  ;;  %7282 = vmatprep.mubr.bf16.mxu1 %v14226_v51  ;;  %v13241_v62 = vld [vmem:[%s18694_s0 + $0x7f4] ss:$72 sps:$4 sm:$0xff]   ;;  %v14239_v49 = vld [vmem:[%s18694_s0 + $0x7e8] ss:$72 sps:$4 sm:$0xff]  }
 0x13c   :  { %5848 = vmatpush1.bf16.msra.mxu0 %v13244_v41  ;;  %7392 = vmatpush1.bf16.msra.mxu1 %v13247_v59  ;;  %v14237_v41 = vld [vmem:[%s18694_s0 + $0x758] ss:$72 sps:$4 sm:$0xff]   ;;  %v14238_v59 = vld [vmem:[%s18694_s0 + $0x7ec] ss:$72 sps:$4 sm:$0xff]  }
 0x13d   :  { %v15486_v61 = vpop.f32.mrb[20].mxu1  ;;  %5849 = vmatprep.subr.bf16.mxu0 %v13255_v44  ;;  %7393 = vmatprep.subr.bf16.mxu1 %v13258_v45  ;;  %v13243_v44 = vld [vmem:[%s18694_s0 + $0x7f0] ss:$72 sps:$4 sm:$0xff]   ;;  %v13250_v45 = vld [vmem:[%s18694_s0 + $0x884] ss:$72 sps:$4 sm:$0xff]  }
 0x13e   :  { %v15491_v3 = vpop.f32.mrb[21].mxu1  ;;  %v13252_v51 = vld [vmem:[%s18694_s0 + $0x880] ss:$72 sps:$4 sm:$0xff]  }
 0x13f   :  { %v15493_v20 = vpop.f32.mrb[22].mxu1 }
 0x140   :  { %18704 = vst [vmem:[#allocation5_spill] sm:$0xff] %v15493_v20  ;;  %v15495_v27 = vpop.f32.mrb[23].mxu1  ;;  %5850 = vmatpush1.bf16.msra.mxu0 %v13253_v50  ;;  %7394 = vmatpush1.bf16.msra.mxu1 %v13256_v7  ;;  %v14240_v50 = vld [vmem:[%s18694_s0 + $0x87c] ss:$72 sps:$4 sm:$0xff]  }
 0x141   :  { %18705 = vst [vmem:[#allocation6_spill] sm:$0xff] %v15495_v27  ;;  %6012 = vmatprep.subr.bf16.mxu0 %v13264_v53  ;;  %7556 = vmatprep.subr.bf16.mxu1 %v13267_v57  ;;  %v13261_v7 = vld [vmem:[%s18694_s0 + $0x1c] ss:$72 sps:$4 sm:$0xff]   ;;  %v14241_v53 = vld [vmem:[%s18694_s0 + $0x878] ss:$72 sps:$4 sm:$0xff]  }
 0x142   :  { %5739 = vmatmul.mubr.bf16.gmra.mrb[32].mxu0 %v13189_v60  ;;  %7283 = vmatmul.mubr.bf16.gmra.mrb[64].mxu1 %v14227_v4  ;;  %v14242_v57 = vld [vmem:[%s18694_s0 + $0x14] ss:$72 sps:$4 sm:$0xff]   ;;  %v15606_v60 = vld [vmem:[%s18694_s0 + $0x18] ss:$72 sps:$4 sm:$0xff]  }
 0x143   :  { %5748 = vmatprep.mubr.bf16.mxu0 %v13196_v1  ;;  %7292 = vmatprep.mubr.bf16.mxu1 %v14228_v6  ;;  %v13262_v1 = vld [vmem:[%s18695_s1 + $0x800] ss:$16 sps:$4 sm:$0xff]   ;;  %v13265_v4 = vld [vmem:[%s18695_s1 + $0x608] ss:$16 sps:$4 sm:$0xff]   ;;  %v15617_v6 = vld [vmem:[%s18694_s0 + $0xac] ss:$72 sps:$4 sm:$0xff]  }
 0x145   :  { %v15506_v10 = vpop.f32.mrb[24].mxu1 }
 0x146   :  { %18706 = vst [vmem:[#allocation7_spill] sm:$0xff] %v15506_v10  ;;  %v15511_v14 = vpop.f32.mrb[25].mxu1 }
 0x147   :  { %18707 = vst [vmem:[#allocation8_spill] sm:$0xff] %v15511_v14  ;;  %v15513_v5 = vpop.f32.mrb[26].mxu1 }
 0x148   :  { %18708 = vst [vmem:[#allocation9_spill] sm:$0xff] %v15513_v5  ;;  %v15515_v13 = vpop.f32.mrb[27].mxu1 }
 0x149   :  { %18709 = vst [vmem:[#allocation10_spill] sm:$0xff] %v15515_v13 }
 0x14a   :  { %5749 = vmatmul.mubr.bf16.gmra.mrb[36].mxu0 %v13198_v8  ;;  %7293 = vmatmul.mubr.bf16.gmra.mrb[68].mxu1 %v14229_v40  ;;  %v13273_v8 = vld [vmem:[%s18695_s1 + $0x824] ss:$16 sps:$4 sm:$0xff]   ;;  %v14243_v40 = vld [vmem:[%s18694_s0 + $0x10] ss:$72 sps:$4 sm:$0xff]  }
 0x14b   :  { %5758 = vmatprep.mubr.bf16.mxu0 %v13205_v12  ;;  %7302 = vmatprep.mubr.bf16.mxu1 %v14230_v11  ;;  %v13276_v12 = vld [vmem:[%s18695_s1 + $0x62c] ss:$16 sps:$4 sm:$0xff]   ;;  %v13271_v11 = vld [vmem:[%s18695_s1 + $0x820] ss:$16 sps:$4 sm:$0xff]  }
 0x14d   :  { %v15526_v18 = vpop.f32.mrb[28].mxu1 }
 0x14e   :  { %18710 = vst [vmem:[#allocation11_spill] sm:$0xff] %v15526_v18  ;;  %v15531_v16 = vpop.f32.mrb[29].mxu1 }
 0x14f   :  { %18711 = vst [vmem:[#allocation12_spill] sm:$0xff] %v15531_v16  ;;  %v15533_v21 = vpop.f32.mrb[30].mxu1 }
 0x150   :  { %18712 = vst [vmem:[#allocation13_spill] sm:$0xff] %v15533_v21  ;;  %v15535_v42 = vpop.f32.mrb[31].mxu1 }
 0x151   :  { %18713 = vst [vmem:[#allocation14_spill] sm:$0xff] %v15535_v42 }
 0x152   :  { %5759 = vmatmul.mubr.bf16.gmra.mrb[40].mxu0 %v13207_v17  ;;  %7303 = vmatmul.mubr.bf16.gmra.mrb[72].mxu1 %v14231_v25  ;;  %v13274_v17 = vld [vmem:[%s18695_s1 + $0x628] ss:$16 sps:$4 sm:$0xff]   ;;  %v14244_v25 = vld [vmem:[%s18694_s0 + $0xa4] ss:$72 sps:$4 sm:$0xff]  }
 0x153   :  { %5768 = vmatprep.mubr.bf16.mxu0 %v13214_v19  ;;  %7312 = vmatprep.mubr.bf16.mxu1 %v14232_v26  ;;  %v13282_v19 = vld [vmem:[%s18695_s1 + $0x844] ss:$16 sps:$4 sm:$0xff]   ;;  %v15645_v26 = vld [vmem:[%s18694_s0 + $0xa8] ss:$72 sps:$4 sm:$0xff]  }
 0x15a   :  { %5769 = vmatmul.mubr.bf16.gmra.mrb[44].mxu0 %v13216_v23  ;;  %7313 = vmatmul.mubr.bf16.gmra.mrb[76].mxu1 %v14233_v55  ;;  %v13285_v23 = vld [vmem:[%s18695_s1 + $0x64c] ss:$16 sps:$4 sm:$0xff]   ;;  %v13280_v55 = vld [vmem:[%s18695_s1 + $0x840] ss:$16 sps:$4 sm:$0xff]  }
 0x15b   :  { %5778 = vmatprep.mubr.bf16.mxu0 %v13223_v46  ;;  %7322 = vmatprep.mubr.bf16.mxu1 %v14234_v29  ;;  %v15653_v46 = vld [vmem:[%s18694_s0 + $0x13c] ss:$72 sps:$4 sm:$0xff]   ;;  %v13283_v29 = vld [vmem:[%s18695_s1 + $0x648] ss:$16 sps:$4 sm:$0xff]  }
 0x162   :  { %5779 = vmatmul.mubr.bf16.gmra.mrb[48].mxu0 %v13225_v30  ;;  %7323 = vmatmul.mubr.bf16.gmra.mrb[80].mxu1 %v14235_v33  ;;  %v13291_v30 = vld [vmem:[%s18695_s1 + $0x864] ss:$16 sps:$4 sm:$0xff]   ;;  %v14245_v33 = vld [vmem:[%s18694_s0 + $0xa0] ss:$72 sps:$4 sm:$0xff]  }
 0x163   :  { %5788 = vmatprep.mubr.bf16.mxu0 %v13232_v47  ;;  %7332 = vmatprep.mubr.bf16.mxu1 %v14236_v34  ;;  %v13294_v47 = vld [vmem:[%s18695_s1 + $0x66c] ss:$16 sps:$4 sm:$0xff]   ;;  %v13289_v34 = vld [vmem:[%s18695_s1 + $0x860] ss:$16 sps:$4 sm:$0xff]  }
 0x16a   :  { %5789 = vmatmul.mubr.bf16.gmra.mrb[52].mxu0 %v13234_v54  ;;  %7333 = vmatmul.mubr.bf16.gmra.mrb[84].mxu1 %v14237_v41  ;;  %v14246_v54 = vld [vmem:[%s18694_s0 + $0x134] ss:$72 sps:$4 sm:$0xff]  }
 0x16b   :  { %5798 = vmatprep.mubr.bf16.mxu0 %v13241_v62  ;;  %7342 = vmatprep.mubr.bf16.mxu1 %v14238_v59  ;;  %v13292_v62 = vld [vmem:[%s18695_s1 + $0x668] ss:$16 sps:$4 sm:$0xff]   ;;  %v13300_v41 = vld [vmem:[%s18695_s1 + $0x884] ss:$16 sps:$4 sm:$0xff]   ;;  %v13303_v59 = vld [vmem:[%s18695_s1 + $0x68c] ss:$16 sps:$4 sm:$0xff]  }
 0x172   :  { %5799 = vmatmul.mubr.bf16.gmra.mrb[56].mxu0 %v13243_v44  ;;  %7343 = vmatmul.mubr.bf16.gmra.mrb[88].mxu1 %v14239_v49  ;;  %v15690_v44 = vld [vmem:[%s18694_s0 + $0x138] ss:$72 sps:$4 sm:$0xff]  }
 0x173   :  { %5808 = vmatprep.mubr.bf16.mxu0 %v13250_v45  ;;  %7352 = vmatprep.mubr.bf16.mxu1 %v14240_v50  ;;  %v15695_v45 = vld [vmem:[%s18694_s0 + $0x1cc] ss:$72 sps:$4 sm:$0xff]   ;;  %v13298_v49 = vld [vmem:[%s18695_s1 + $0x880] ss:$16 sps:$4 sm:$0xff]   ;;  %v13301_v50 = vld [vmem:[%s18695_s1 + $0x688] ss:$16 sps:$4 sm:$0xff]  }
 0x17a   :  { %5809 = vmatmul.mubr.bf16.gmra.mrb[60].mxu0 %v13252_v51  ;;  %7353 = vmatmul.mubr.bf16.gmra.mrb[92].mxu1 %v14241_v53  ;;  %v13309_v51 = vld [vmem:[%s18695_s1 + $0x8a4] ss:$16 sps:$4 sm:$0xff]   ;;  %v14247_v53 = vld [vmem:[%s18694_s0 + $0x130] ss:$72 sps:$4 sm:$0xff]  }
 0x17b   :  { %5851 = vmatprep.mubr.bf16.mxu0 %v13261_v7  ;;  %7395 = vmatprep.mubr.bf16.mxu1 %v14242_v57  ;;  %v13312_v7 = vld [vmem:[%s18695_s1 + $0x6ac] ss:$16 sps:$4 sm:$0xff]   ;;  %v13307_v57 = vld [vmem:[%s18695_s1 + $0x8a0] ss:$16 sps:$4 sm:$0xff]  }
 0x182   :  { %5852 = vmatmul.mubr.bf16.vlgmr.msra.gmra.mrb[0].mxu0 %v15606_v60  ;;  %7396 = vmatmul.mubr.bf16.vlgmr.msra.gmra.mrb[32].mxu1 %v14243_v40  ;;  %v15732_v40 = vld [vmem:[%s18694_s0 + $0x1c8] ss:$72 sps:$4 sm:$0xff]  }
 0x183   :  { %6013 = vmatpush1.bf16.msra.mxu0 %v13262_v1  ;;  %7557 = vmatpush1.bf16.msra.mxu1 %v13265_v4  ;;  %v14248_v1 = vld [vmem:[%s18694_s0 + $0x1c4] ss:$72 sps:$4 sm:$0xff]   ;;  %v13310_v4 = vld [vmem:[%s18695_s1 + $0x6a8] ss:$16 sps:$4 sm:$0xff]  }
 0x184   :  { %5861 = vmatprep.mubr.bf16.mxu0 %v15617_v6  ;;  %7405 = vmatprep.mubr.bf16.mxu1 %v14244_v25  ;;  %v13327_v25 = vld [vmem:[%s18695_s1 + $0x8e4] ss:$16 sps:$4 sm:$0xff]  }
 0x185   :  { %6014 = vmatprep.subr.bf16.mxu0 %v13273_v8  ;;  %7558 = vmatprep.subr.bf16.mxu1 %v13276_v12  ;;  %v13318_v8 = vld [vmem:[%s18695_s1 + $0x8c4] ss:$16 sps:$4 sm:$0xff]   ;;  %v13321_v12 = vld [vmem:[%s18695_s1 + $0x6cc] ss:$16 sps:$4 sm:$0xff]  }
 0x187   :  { %6015 = vmatpush1.bf16.msra.mxu0 %v13271_v11  ;;  %7559 = vmatpush1.bf16.msra.mxu1 %v13274_v17  ;;  %v15737_v11 = vld [vmem:[%s18694_s0 + $0x25c] ss:$72 sps:$4 sm:$0xff]   ;;  %v13316_v17 = vld [vmem:[%s18695_s1 + $0x8c0] ss:$16 sps:$4 sm:$0xff]  }
 0x188   :  { %6016 = vmatprep.subr.bf16.mxu0 %v13282_v19  ;;  %7560 = vmatprep.subr.bf16.mxu1 %v13285_v23  ;;  %v13319_v19 = vld [vmem:[%s18695_s1 + $0x6c8] ss:$16 sps:$4 sm:$0xff]   ;;  %v13330_v23 = vld [vmem:[%s18695_s1 + $0x6ec] ss:$16 sps:$4 sm:$0xff]  }
 0x18a   :  { %5862 = vmatmul.mubr.bf16.gmra.mrb[4].mxu0 %v15645_v26  ;;  %7406 = vmatmul.mubr.bf16.gmra.mrb[36].mxu1 %v14245_v33  ;;  %v13336_v33 = vld [vmem:[%s18695_s1 + $0x904] ss:$16 sps:$4 sm:$0xff]  }
 0x18b   :  { %5871 = vmatprep.mubr.bf16.mxu0 %v15653_v46  ;;  %7415 = vmatprep.mubr.bf16.mxu1 %v14246_v54  ;;  %v15774_v54 = vld [vmem:[%s18694_s0 + $0x258] ss:$72 sps:$4 sm:$0xff]  }
 0x18c   :  { %6017 = vmatpush1.bf16.msra.mxu0 %v13280_v55  ;;  %7561 = vmatpush1.bf16.msra.mxu1 %v13283_v29  ;;  %v14249_v55 = vld [vmem:[%s18694_s0 + $0x1c0] ss:$72 sps:$4 sm:$0xff]  }
 0x18d   :  { %6018 = vmatprep.subr.bf16.mxu0 %v13291_v30  ;;  %7562 = vmatprep.subr.bf16.mxu1 %v13294_v47  ;;  %v13325_v29 = vld [vmem:[%s18695_s1 + $0x8e0] ss:$16 sps:$4 sm:$0xff]   ;;  %v14250_v30 = vld [vmem:[%s18694_s0 + $0x254] ss:$72 sps:$4 sm:$0xff]   ;;  %v13328_v47 = vld [vmem:[%s18695_s1 + $0x6e8] ss:$16 sps:$4 sm:$0xff]  }
 0x190   :  { %6019 = vmatpush1.bf16.msra.mxu0 %v13289_v34  ;;  %7563 = vmatpush1.bf16.msra.mxu1 %v13292_v62  ;;  %v13339_v34 = vld [vmem:[%s18695_s1 + $0x70c] ss:$16 sps:$4 sm:$0xff]  }
 0x191   :  { %6020 = vmatprep.subr.bf16.mxu0 %v13300_v41  ;;  %7564 = vmatprep.subr.bf16.mxu1 %v13303_v59  ;;  %v15779_v62 = vld [vmem:[%s18694_s0 + $0x2ec] ss:$72 sps:$4 sm:$0xff]   ;;  %v13334_v41 = vld [vmem:[%s18695_s1 + $0x900] ss:$16 sps:$4 sm:$0xff]   ;;  %v13337_v59 = vld [vmem:[%s18695_s1 + $0x708] ss:$16 sps:$4 sm:$0xff]  }
 0x192   :  { %5872 = vmatmul.mubr.bf16.gmra.mrb[8].mxu0 %v15690_v44  ;;  %7416 = vmatmul.mubr.bf16.gmra.mrb[40].mxu1 %v14247_v53  ;;  %v14252_v53 = vld [vmem:[%s18694_s0 + $0x2e4] ss:$72 sps:$4 sm:$0xff]  }
 0x193   :  { %5881 = vmatprep.mubr.bf16.mxu0 %v15695_v45  ;;  %7425 = vmatprep.mubr.bf16.mxu1 %v14248_v1  ;;  %v13354_v1 = vld [vmem:[%s18695_s1 + $0x944] ss:$16 sps:$4 sm:$0xff]  }
 0x194   :  { %6021 = vmatpush1.bf16.msra.mxu0 %v13298_v49  ;;  %7565 = vmatpush1.bf16.msra.mxu1 %v13301_v50  ;;  %v13345_v49 = vld [vmem:[%s18695_s1 + $0x924] ss:$16 sps:$4 sm:$0xff]   ;;  %v13348_v50 = vld [vmem:[%s18695_s1 + $0x72c] ss:$16 sps:$4 sm:$0xff]  }
 0x195   :  { %6022 = vmatprep.subr.bf16.mxu0 %v13309_v51  ;;  %7566 = vmatprep.subr.bf16.mxu1 %v13312_v7  ;;  %v14251_v51 = vld [vmem:[%s18694_s0 + $0x250] ss:$72 sps:$4 sm:$0xff]  }
 0x196   :  { %v13343_v7 = vld [vmem:[%s18695_s1 + $0x920] ss:$16 sps:$4 sm:$0xff]  }
 0x198   :  { %6023 = vmatpush1.bf16.msra.mxu0 %v13307_v57  ;;  %7567 = vmatpush1.bf16.msra.mxu1 %v13310_v4  ;;  %v13346_v57 = vld [vmem:[%s18695_s1 + $0x728] ss:$16 sps:$4 sm:$0xff]   ;;  %v13357_v4 = vld [vmem:[%s18695_s1 + $0x74c] ss:$16 sps:$4 sm:$0xff]  }
 0x199   :  { %6024 = vmatprep.subr.bf16.mxu0 %v13318_v8  ;;  %7568 = vmatprep.subr.bf16.mxu1 %v13321_v12  ;;  %v15816_v8 = vld [vmem:[%s18694_s0 + $0x2e8] ss:$72 sps:$4 sm:$0xff]   ;;  %v15821_v12 = vld [vmem:[%s18694_s0 + $0x37c] ss:$72 sps:$4 sm:$0xff]  }
 0x19a   :  { %5882 = vmatmul.mubr.bf16.gmra.mrb[12].mxu0 %v15732_v40  ;;  %7426 = vmatmul.mubr.bf16.gmra.mrb[44].mxu1 %v14249_v55  ;;  %v14253_v55 = vld [vmem:[%s18694_s0 + $0x2e0] ss:$72 sps:$4 sm:$0xff]  }
 0x19b   :  { %5891 = vmatprep.mubr.bf16.mxu0 %v15737_v11  ;;  %7435 = vmatprep.mubr.bf16.mxu1 %v14250_v30  ;;  %v14254_v30 = vld [vmem:[%s18694_s0 + $0x374] ss:$72 sps:$4 sm:$0xff]  }
 0x19c   :  { %6025 = vmatpush1.bf16.msra.mxu0 %v13316_v17  ;;  %7569 = vmatpush1.bf16.msra.mxu1 %v13319_v19  ;;  %v13352_v17 = vld [vmem:[%s18695_s1 + $0x940] ss:$16 sps:$4 sm:$0xff]   ;;  %v13355_v19 = vld [vmem:[%s18695_s1 + $0x748] ss:$16 sps:$4 sm:$0xff]  }
 0x19d   :  { %6026 = vmatprep.subr.bf16.mxu0 %v13327_v25  ;;  %7570 = vmatprep.subr.bf16.mxu1 %v13330_v23  ;;  %v13363_v25 = vld [vmem:[%s18695_s1 + $0x964] ss:$16 sps:$4 sm:$0xff]   ;;  %v13366_v23 = vld [vmem:[%s18695_s1 + $0x76c] ss:$16 sps:$4 sm:$0xff]  }
 0x1a0   :  { %6027 = vmatpush1.bf16.msra.mxu0 %v13325_v29  ;;  %7571 = vmatpush1.bf16.msra.mxu1 %v13328_v47  ;;  %v13361_v29 = vld [vmem:[%s18695_s1 + $0x960] ss:$16 sps:$4 sm:$0xff]   ;;  %v13364_v47 = vld [vmem:[%s18695_s1 + $0x768] ss:$16 sps:$4 sm:$0xff]  }
 0x1a1   :  { %6028 = vmatprep.subr.bf16.mxu0 %v13336_v33  ;;  %7572 = vmatprep.subr.bf16.mxu1 %v13339_v34  ;;  %v13372_v33 = vld [vmem:[%s18695_s1 + $0x984] ss:$16 sps:$4 sm:$0xff]   ;;  %v13375_v34 = vld [vmem:[%s18695_s1 + $0x78c] ss:$16 sps:$4 sm:$0xff]  }
 0x1a2   :  { %5892 = vmatmul.mubr.bf16.gmra.mrb[16].mxu0 %v15774_v54  ;;  %7436 = vmatmul.mubr.bf16.gmra.mrb[48].mxu1 %v14251_v51  ;;  %v13381_v51 = vld [vmem:[%s18695_s1 + $0x9a4] ss:$16 sps:$4 sm:$0xff]  }
 0x1a3   :  { %5901 = vmatprep.mubr.bf16.mxu0 %v15779_v62  ;;  %7445 = vmatprep.mubr.bf16.mxu1 %v14252_v53  ;;  %v14255_v53 = vld [vmem:[%s18694_s0 + $0x370] ss:$72 sps:$4 sm:$0xff]  }
 0x1a4   :  { %6029 = vmatpush1.bf16.msra.mxu0 %v13334_v41  ;;  %7573 = vmatpush1.bf16.msra.mxu1 %v13337_v59  ;;  %v15858_v41 = vld [vmem:[%s18694_s0 + $0x378] ss:$72 sps:$4 sm:$0xff]   ;;  %v15863_v59 = vld [vmem:[%s18694_s0 + $0x40c] ss:$72 sps:$4 sm:$0xff]  }
 0x1a5   :  { %6030 = vmatprep.subr.bf16.mxu0 %v13345_v49  ;;  %7574 = vmatprep.subr.bf16.mxu1 %v13348_v50  ;;  %v13370_v49 = vld [vmem:[%s18695_s1 + $0x980] ss:$16 sps:$4 sm:$0xff]   ;;  %v13373_v50 = vld [vmem:[%s18695_s1 + $0x788] ss:$16 sps:$4 sm:$0xff]  }
 0x1a8   :  { %6031 = vmatpush1.bf16.msra.mxu0 %v13343_v7  ;;  %7575 = vmatpush1.bf16.msra.mxu1 %v13346_v57  ;;  %v13384_v7 = vld [vmem:[%s18695_s1 + $0x7ac] ss:$16 sps:$4 sm:$0xff]   ;;  %v13379_v57 = vld [vmem:[%s18695_s1 + $0x9a0] ss:$16 sps:$4 sm:$0xff]  }
 0x1a9   :  { %6032 = vmatprep.subr.bf16.mxu0 %v13354_v1  ;;  %7576 = vmatprep.subr.bf16.mxu1 %v13357_v4  ;;  %v14256_v1 = vld [vmem:[%s18694_s0 + $0x404] ss:$72 sps:$4 sm:$0xff]   ;;  %v13382_v4 = vld [vmem:[%s18695_s1 + $0x7a8] ss:$16 sps:$4 sm:$0xff]  }
 0x1aa   :  { %5902 = vmatmul.mubr.bf16.gmra.mrb[20].mxu0 %v15816_v8  ;;  %7446 = vmatmul.mubr.bf16.gmra.mrb[52].mxu1 %v14253_v55  ;;  %v13388_v55 = vld [vmem:[%s18695_s1 + $0x9c0] ss:$16 sps:$4 sm:$0xff]  }
 0x1ab   :  { %5911 = vmatprep.mubr.bf16.mxu0 %v15821_v12  ;;  %7455 = vmatprep.mubr.bf16.mxu1 %v14254_v30  ;;  %v13399_v30 = vld [vmem:[%s18695_s1 + $0x9e4] ss:$16 sps:$4 sm:$0xff]  }
 0x1ac   :  { %6033 = vmatpush1.bf16.msra.mxu0 %v13352_v17  ;;  %7577 = vmatpush1.bf16.msra.mxu1 %v13355_v19  ;;  %v13390_v17 = vld [vmem:[%s18695_s1 + $0x9c4] ss:$16 sps:$4 sm:$0xff]   ;;  %v13393_v19 = vld [vmem:[%s18695_s1 + $0x7cc] ss:$16 sps:$4 sm:$0xff]  }
 0x1ad   :  { %6034 = vmatprep.subr.bf16.mxu0 %v13363_v25  ;;  %7578 = vmatprep.subr.bf16.mxu1 %v13366_v23  ;;  %v15900_v25 = vld [vmem:[%s18694_s0 + $0x408] ss:$72 sps:$4 sm:$0xff]   ;;  %v15905_v23 = vld [vmem:[%s18694_s0 + $0x49c] ss:$72 sps:$4 sm:$0xff]  }
 0x1b0   :  { %6035 = vmatpush1.bf16.msra.mxu0 %v13361_v29  ;;  %7579 = vmatpush1.bf16.msra.mxu1 %v13364_v47  ;;  %v13391_v29 = vld [vmem:[%s18695_s1 + $0x7c8] ss:$16 sps:$4 sm:$0xff]   ;;  %v13402_v47 = vld [vmem:[%s18695_s1 + $0x7ec] ss:$16 sps:$4 sm:$0xff]  }
 0x1b1   :  { %6036 = vmatprep.subr.bf16.mxu0 %v13372_v33  ;;  %7580 = vmatprep.subr.bf16.mxu1 %v13375_v34  ;;  %v14257_v33 = vld [vmem:[%s18694_s0 + $0x400] ss:$72 sps:$4 sm:$0xff]  }
 0x1b2   :  { %5912 = vmatmul.mubr.bf16.gmra.mrb[24].mxu0 %v15858_v41  ;;  %7456 = vmatmul.mubr.bf16.gmra.mrb[56].mxu1 %v14255_v53  ;;  %v13397_v34 = vld [vmem:[%s18695_s1 + $0x9e0] ss:$16 sps:$4 sm:$0xff]  }
 0x1b3   :  { %5921 = vmatprep.mubr.bf16.mxu0 %v15863_v59  ;;  %7465 = vmatprep.mubr.bf16.mxu1 %v14256_v1  ;;  %v15942_v53 = vld [vmem:[%s18694_s0 + $0x498] ss:$72 sps:$4 sm:$0xff]  }
 0x1b4   :  { %6037 = vmatpush1.bf16.msra.mxu0 %v13370_v49  ;;  %7581 = vmatpush1.bf16.msra.mxu1 %v13373_v50  ;;  %v14258_v49 = vld [vmem:[%s18694_s0 + $0x494] ss:$72 sps:$4 sm:$0xff]   ;;  %v13400_v50 = vld [vmem:[%s18695_s1 + $0x7e8] ss:$16 sps:$4 sm:$0xff]  }
 0x1b5   :  { %6038 = vmatprep.subr.bf16.mxu0 %v13381_v51  ;;  %7582 = vmatprep.subr.bf16.mxu1 %v13384_v7  ;;  %v13408_v51 = vld [vmem:[%s18695_s1 + $0xa04] ss:$16 sps:$4 sm:$0xff]   ;;  %v13411_v7 = vld [vmem:[%s18695_s1 + $0x80c] ss:$16 sps:$4 sm:$0xff]   ;;  %v14259_v1 = vld [vmem:[%s18694_s0 + $0x490] ss:$72 sps:$4 sm:$0xff]  }
 0x1b8   :  { %6039 = vmatpush1.bf16.msra.mxu0 %v13379_v57  ;;  %7583 = vmatpush1.bf16.msra.mxu1 %v13382_v4  ;;  %v15947_v57 = vld [vmem:[%s18694_s0 + $0x52c] ss:$72 sps:$4 sm:$0xff]  }
 0x1b9   :  { %6040 = vmatprep.subr.bf16.mxu0 %v13390_v17  ;;  %7584 = vmatprep.subr.bf16.mxu1 %v13393_v19  ;;  %v14260_v4 = vld [vmem:[%s18694_s0 + $0x524] ss:$72 sps:$4 sm:$0xff]   ;;  %v15960_v17 = vld [vmem:[%s18694_s0 + $0x528] ss:$72 sps:$4 sm:$0xff]  }
 0x1ba   :  { %5922 = vmatmul.mubr.bf16.gmra.mrb[28].mxu0 %v15900_v25  ;;  %7466 = vmatmul.mubr.bf16.gmra.mrb[60].mxu1 %v14257_v33  ;;  %v15965_v19 = vld [vmem:[%s18694_s0 + $0x5bc] ss:$72 sps:$4 sm:$0xff]   ;;  %v14263_v33 = vld [vmem:[%s18694_s0 + $0x5b0] ss:$72 sps:$4 sm:$0xff]  }
 0x1bb   :  { %5931 = vmatprep.mubr.bf16.mxu0 %v15905_v23  ;;  %7475 = vmatprep.mubr.bf16.mxu1 %v14258_v49  ;;  %v15996_v49 = vld [vmem:[%s18694_s0 + $0x648] ss:$72 sps:$4 sm:$0xff]  }
 0x1bc   :  { %6041 = vmatpush1.bf16.msra.mxu0 %v13388_v55  ;;  %7585 = vmatpush1.bf16.msra.mxu1 %v13391_v29  ;;  %v14261_v55 = vld [vmem:[%s18694_s0 + $0x520] ss:$72 sps:$4 sm:$0xff]   ;;  %v14262_v29 = vld [vmem:[%s18694_s0 + $0x5b4] ss:$72 sps:$4 sm:$0xff]  }
 0x1bd   :  { %6042 = vmatprep.subr.bf16.mxu0 %v13399_v30  ;;  %7586 = vmatprep.subr.bf16.mxu1 %v13402_v47  ;;  %v15978_v30 = vld [vmem:[%s18694_s0 + $0x5b8] ss:$72 sps:$4 sm:$0xff]   ;;  %v15983_v47 = vld [vmem:[%s18694_s0 + $0x64c] ss:$72 sps:$4 sm:$0xff]  }
 0x1c0   :  { %6043 = vmatpush1.bf16.msra.mxu0 %v13397_v34  ;;  %7587 = vmatpush1.bf16.msra.mxu1 %v13400_v50  ;;  %v14264_v34 = vld [vmem:[%s18694_s0 + $0x644] ss:$72 sps:$4 sm:$0xff]  }
 0x1c1   :  { %6205 = vmatprep.subr.bf16.mxu0 %v13408_v51  ;;  %7749 = vmatprep.subr.bf16.mxu1 %v13411_v7  ;;  %v16001_v50 = vld [vmem:[%s18694_s0 + $0x6dc] ss:$72 sps:$4 sm:$0xff]   ;;  %v14265_v51 = vld [vmem:[%s18694_s0 + $0x640] ss:$72 sps:$4 sm:$0xff]  }
 0x1c2   :  { %5932 = vmatmul.mubr.bf16.gmra.mrb[32].mxu0 %v15942_v53  ;;  %7476 = vmatmul.mubr.bf16.gmra.mrb[64].mxu1 %v14259_v1  ;;  %v14266_v7 = vld [vmem:[%s18694_s0 + $0x6d4] ss:$72 sps:$4 sm:$0xff]   ;;  %v16014_v1 = vld [vmem:[%s18694_s0 + $0x6d8] ss:$72 sps:$4 sm:$0xff]  }
 0x1c3   :  { %5941 = vmatprep.mubr.bf16.mxu0 %v15947_v57  ;;  %7485 = vmatprep.mubr.bf16.mxu1 %v14260_v4  ;;  %v16019_v4 = vld [vmem:[%s18694_s0 + $0x76c] ss:$72 sps:$4 sm:$0xff]  }
 0x1ca   :  { %5942 = vmatmul.mubr.bf16.gmra.mrb[36].mxu0 %v15960_v17  ;;  %7486 = vmatmul.mubr.bf16.gmra.mrb[68].mxu1 %v14261_v55  ;;  %v14267_v55 = vld [vmem:[%s18694_s0 + $0x6d0] ss:$72 sps:$4 sm:$0xff]  }
 0x1cb   :  { %5951 = vmatprep.mubr.bf16.mxu0 %v15965_v19  ;;  %7495 = vmatprep.mubr.bf16.mxu1 %v14262_v29  ;;  %v14268_v29 = vld [vmem:[%s18694_s0 + $0x764] ss:$72 sps:$4 sm:$0xff]  }
 0x1d2   :  { %5952 = vmatmul.mubr.bf16.gmra.mrb[40].mxu0 %v15978_v30  ;;  %7496 = vmatmul.mubr.bf16.gmra.mrb[72].mxu1 %v14263_v33  ;;  %v16032_v33 = vld [vmem:[%s18694_s0 + $0x768] ss:$72 sps:$4 sm:$0xff]  }
 0x1d3   :  { %5961 = vmatprep.mubr.bf16.mxu0 %v15983_v47  ;;  %7505 = vmatprep.mubr.bf16.mxu1 %v14264_v34  ;;  %v16037_v34 = vld [vmem:[%s18694_s0 + $0x7fc] ss:$72 sps:$4 sm:$0xff]  }
 0x1da   :  { %5962 = vmatmul.mubr.bf16.gmra.mrb[44].mxu0 %v15996_v49  ;;  %7506 = vmatmul.mubr.bf16.gmra.mrb[76].mxu1 %v14265_v51  ;;  %v14269_v51 = vld [vmem:[%s18694_s0 + $0x760] ss:$72 sps:$4 sm:$0xff]  }
 0x1db   :  { %5971 = vmatprep.mubr.bf16.mxu0 %v16001_v50  ;;  %7515 = vmatprep.mubr.bf16.mxu1 %v14266_v7  ;;  %v14270_v7 = vld [vmem:[%s18694_s0 + $0x7f4] ss:$72 sps:$4 sm:$0xff]  }
 0x1e2   :  { %5972 = vmatmul.mubr.bf16.gmra.mrb[48].mxu0 %v16014_v1  ;;  %7516 = vmatmul.mubr.bf16.gmra.mrb[80].mxu1 %v14267_v55  ;;  %v16050_v55 = vld [vmem:[%s18694_s0 + $0x7f8] ss:$72 sps:$4 sm:$0xff]  }
 0x1e3   :  { %5981 = vmatprep.mubr.bf16.mxu0 %v16019_v4  ;;  %7525 = vmatprep.mubr.bf16.mxu1 %v14268_v29  ;;  %v16055_v29 = vld [vmem:[%s18694_s0 + $0x88c] ss:$72 sps:$4 sm:$0xff]  }
 0x1ea   :  { %5982 = vmatmul.mubr.bf16.gmra.mrb[52].mxu0 %v16032_v33  ;;  %7526 = vmatmul.mubr.bf16.gmra.mrb[84].mxu1 %v14269_v51  ;;  %v14271_v51 = vld [vmem:[%s18694_s0 + $0x7f0] ss:$72 sps:$4 sm:$0xff]  }
 0x1eb   :  { %5991 = vmatprep.mubr.bf16.mxu0 %v16037_v34  ;;  %7535 = vmatprep.mubr.bf16.mxu1 %v14270_v7  ;;  %v14272_v7 = vld [vmem:[%s18694_s0 + $0x884] ss:$72 sps:$4 sm:$0xff]  }
 0x1f2   :  { %5992 = vmatmul.mubr.bf16.gmra.mrb[56].mxu0 %v16050_v55  ;;  %7536 = vmatmul.mubr.bf16.gmra.mrb[88].mxu1 %v14271_v51 }
 0x1f3   :  { %6001 = vmatprep.mubr.bf16.mxu0 %v16055_v29  ;;  %7545 = vmatprep.mubr.bf16.mxu1 %v14272_v7 }
 0x1f4   :  { %14 = vsyncpa [#allocation3], 0  ;;  %v16068_v42 = vld [vmem:[%s18694_s0 + $0x888] ss:$72 sps:$4 sm:$0xff]   ;;  %v16073_v21 = vld [vmem:[%s18694_s0 + $0x24] ss:$72 sps:$4 sm:$0xff]  }
 0x1f5   :  { %v14273_v51 = vld [vmem:[%s18694_s0 + $0x880] ss:$72 sps:$4 sm:$0xff]   ;;  %v14274_v7 = vld [vmem:[%s18694_s0 + $0x1c] ss:$72 sps:$4 sm:$0xff]   ;;  %vm10171_vm0 = vcmask 1041409   ;;  %s14299_s16 = smov [#allocation2]  }
 0x1f6   :  { %v16086_v16 = vld [vmem:[%s18694_s0 + $0x20] ss:$72 sps:$4 sm:$0xff]   ;;  %v16097_v13 = vld [vmem:[%s18694_s0 + $0xb4] ss:$72 sps:$4 sm:$0xff]   ;;  %s10362_s17 = sshll.u32 %s14299_s16, 4  ;;  %s10363_s17 = int_to_ptr.vmem [resolvable:$true] %s10362_s17 }
 0x1f7   :  { %v13406_v18 = vld [vmem:[%s18695_s1 + $0xa00] ss:$16 sps:$4 sm:$0xff]   ;;  %v13420_v5 = vld [vmem:[%s18695_s1 + $0x82c] ss:$16 sps:$4 sm:$0xff]   ;;  %v13418_v10 = vld [vmem:[%s18695_s1 + $0x828] ss:$16 sps:$4 sm:$0xff]   ;;  %p14280_p1 = scmp.lt.s32.totalorder %s10363_s17, %s10363_s17 }
 0x1f8   :  { %v13415_v14 = vld [vmem:[%s18695_s1 + $0xa20] ss:$16 sps:$4 sm:$0xff]   ;;  %v13426_v27 = vld [vmem:[%s18695_s1 + $0xa44] ss:$16 sps:$4 sm:$0xff]   ;;  %v13456_v20 = vld [vmem:[%s18695_s1 + $0x8ac] ss:$16 sps:$4 sm:$0xff]  }
 0x1fa   :  { %6002 = vmatmul.mubr.bf16.gmra.mrb[60].mxu0 %v16068_v42  ;;  %7546 = vmatmul.mubr.bf16.gmra.mrb[92].mxu1 %v14273_v51  ;;  %v13409_v51 = vld [vmem:[%s18695_s1 + $0x808] ss:$16 sps:$4 sm:$0xff]  }
 0x1fb   :  { %6044 = vmatprep.mubr.bf16.mxu0 %v16073_v21  ;;  %7588 = vmatprep.mubr.bf16.mxu1 %v14274_v7  ;;  %v13417_v7 = vld [vmem:[%s18695_s1 + $0xa24] ss:$16 sps:$4 sm:$0xff]  }
 0x202   :  { %6045 = vmatmul.mubr.bf16.vlgmr.msra.gmra.mrb[0].mxu0 %v16086_v16  ;;  %7589 = vmatmul.mubr.bf16.vlgmr.msra.gmra.mrb[32].mxu1 %v15606_v60  ;;  %v16124_v60 = vld [vmem:[%s18694_s0 + $0xb0] ss:$72 sps:$4 sm:$0xff]  }
 0x203   :  { %6206 = vmatpush1.bf16.msra.mxu0 %v13406_v18  ;;  %7750 = vmatpush1.bf16.msra.mxu1 %v13409_v51  ;;  %v13429_v18 = vld [vmem:[%s18695_s1 + $0x84c] ss:$16 sps:$4 sm:$0xff]   ;;  %v13424_v51 = vld [vmem:[%s18695_s1 + $0xa40] ss:$16 sps:$4 sm:$0xff]  }
 0x204   :  { %6054 = vmatprep.mubr.bf16.mxu0 %v16097_v13  ;;  %7598 = vmatprep.mubr.bf16.mxu1 %v15617_v6  ;;  %v16129_v6 = vld [vmem:[%s18694_s0 + $0x144] ss:$72 sps:$4 sm:$0xff]  }
 0x205   :  { %6207 = vmatprep.subr.bf16.mxu0 %v13417_v7  ;;  %7751 = vmatprep.subr.bf16.mxu1 %v13420_v5  ;;  %v13427_v5 = vld [vmem:[%s18695_s1 + $0x848] ss:$16 sps:$4 sm:$0xff]  }
 0x206   :  { %v13436_v7 = vld [vmem:[%s18695_s1 + $0x868] ss:$16 sps:$4 sm:$0xff]  }
 0x207   :  { %6208 = vmatpush1.bf16.msra.mxu0 %v13415_v14  ;;  %7752 = vmatpush1.bf16.msra.mxu1 %v13418_v10  ;;  %v13435_v14 = vld [vmem:[%s18695_s1 + $0xa64] ss:$16 sps:$4 sm:$0xff]   ;;  %v13438_v10 = vld [vmem:[%s18695_s1 + $0x86c] ss:$16 sps:$4 sm:$0xff]  }
 0x208   :  { %6209 = vmatprep.subr.bf16.mxu0 %v13426_v27  ;;  %7753 = vmatprep.subr.bf16.mxu1 %v13429_v18  ;;  %v13433_v27 = vld [vmem:[%s18695_s1 + $0xa60] ss:$16 sps:$4 sm:$0xff]  }
 0x209   :  { %v16162_v18 = vld [vmem:[%s18694_s0 + $0x140] ss:$72 sps:$4 sm:$0xff]  }
 0x20a   :  { %6055 = vmatmul.mubr.bf16.gmra.mrb[4].mxu0 %v16124_v60  ;;  %7599 = vmatmul.mubr.bf16.gmra.mrb[36].mxu1 %v15645_v26  ;;  %v13444_v26 = vld [vmem:[%s18695_s1 + $0xa84] ss:$16 sps:$4 sm:$0xff]  }
 0x20b   :  { %6064 = vmatprep.mubr.bf16.mxu0 %v16129_v6  ;;  %7608 = vmatprep.mubr.bf16.mxu1 %v15653_v46  ;;  %v13447_v46 = vld [vmem:[%s18695_s1 + $0x88c] ss:$16 sps:$4 sm:$0xff]  }
 0x20c   :  { %6210 = vmatpush1.bf16.msra.mxu0 %v13424_v51  ;;  %7754 = vmatpush1.bf16.msra.mxu1 %v13427_v5  ;;  %v16167_v51 = vld [vmem:[%s18694_s0 + $0x1d4] ss:$72 sps:$4 sm:$0xff]   ;;  %v13442_v5 = vld [vmem:[%s18695_s1 + $0xa80] ss:$16 sps:$4 sm:$0xff]  }
 0x20d   :  { %6211 = vmatprep.subr.bf16.mxu0 %v13435_v14  ;;  %7755 = vmatprep.subr.bf16.mxu1 %v13438_v10  ;;  %v13445_v14 = vld [vmem:[%s18695_s1 + $0x888] ss:$16 sps:$4 sm:$0xff]   ;;  %v13453_v10 = vld [vmem:[%s18695_s1 + $0xaa4] ss:$16 sps:$4 sm:$0xff]  }
 0x210   :  { %6212 = vmatpush1.bf16.msra.mxu0 %v13433_v27  ;;  %7756 = vmatpush1.bf16.msra.mxu1 %v13436_v7  ;;  %v13451_v27 = vld [vmem:[%s18695_s1 + $0xaa0] ss:$16 sps:$4 sm:$0xff]   ;;  %v13454_v7 = vld [vmem:[%s18695_s1 + $0x8a8] ss:$16 sps:$4 sm:$0xff]  }
 0x211   :  { %6213 = vmatprep.subr.bf16.mxu0 %v13444_v26  ;;  %7757 = vmatprep.subr.bf16.mxu1 %v13447_v46  ;;  %v16200_v26 = vld [vmem:[%s18694_s0 + $0x1d0] ss:$72 sps:$4 sm:$0xff]   ;;  %v16205_v46 = vld [vmem:[%s18694_s0 + $0x264] ss:$72 sps:$4 sm:$0xff]  }
 0x212   :  { %6065 = vmatmul.mubr.bf16.gmra.mrb[8].mxu0 %v16162_v18  ;;  %7609 = vmatmul.mubr.bf16.gmra.mrb[40].mxu1 %v15690_v44  ;;  %v13462_v44 = vld [vmem:[%s18695_s1 + $0xac4] ss:$16 sps:$4 sm:$0xff]  }
 0x213   :  { %6074 = vmatprep.mubr.bf16.mxu0 %v16167_v51  ;;  %7618 = vmatprep.mubr.bf16.mxu1 %v15695_v45  ;;  %v13465_v45 = vld [vmem:[%s18695_s1 + $0x8cc] ss:$16 sps:$4 sm:$0xff]  }
 0x214   :  { %6214 = vmatpush1.bf16.msra.mxu0 %v13442_v5  ;;  %7758 = vmatpush1.bf16.msra.mxu1 %v13445_v14  ;;  %v13463_v5 = vld [vmem:[%s18695_s1 + $0x8c8] ss:$16 sps:$4 sm:$0xff]   ;;  %v13471_v14 = vld [vmem:[%s18695_s1 + $0xae4] ss:$16 sps:$4 sm:$0xff]  }
 0x215   :  { %6215 = vmatprep.subr.bf16.mxu0 %v13453_v10  ;;  %7759 = vmatprep.subr.bf16.mxu1 %v13456_v20  ;;  %v13460_v20 = vld [vmem:[%s18695_s1 + $0xac0] ss:$16 sps:$4 sm:$0xff]   ;;  %v13474_v10 = vld [vmem:[%s18695_s1 + $0x8ec] ss:$16 sps:$4 sm:$0xff]  }
 0x218   :  { %6216 = vmatpush1.bf16.msra.mxu0 %v13451_v27  ;;  %7760 = vmatpush1.bf16.msra.mxu1 %v13454_v7  ;;  %v13469_v27 = vld [vmem:[%s18695_s1 + $0xae0] ss:$16 sps:$4 sm:$0xff]   ;;  %v13472_v7 = vld [vmem:[%s18695_s1 + $0x8e8] ss:$16 sps:$4 sm:$0xff]  }
 0x219   :  { %6217 = vmatprep.subr.bf16.mxu0 %v13462_v44  ;;  %7761 = vmatprep.subr.bf16.mxu1 %v13465_v45  ;;  %v16238_v44 = vld [vmem:[%s18694_s0 + $0x260] ss:$72 sps:$4 sm:$0xff]   ;;  %v16243_v45 = vld [vmem:[%s18694_s0 + $0x2f4] ss:$72 sps:$4 sm:$0xff]  }
 0x21a   :  { %6075 = vmatmul.mubr.bf16.gmra.mrb[12].mxu0 %v16200_v26  ;;  %7619 = vmatmul.mubr.bf16.gmra.mrb[44].mxu1 %v15732_v40  ;;  %v13480_v40 = vld [vmem:[%s18695_s1 + $0xb04] ss:$16 sps:$4 sm:$0xff]  }
 0x21b   :  { %6084 = vmatprep.mubr.bf16.mxu0 %v16205_v46  ;;  %7628 = vmatprep.mubr.bf16.mxu1 %v15737_v11  ;;  %v13483_v11 = vld [vmem:[%s18695_s1 + $0x90c] ss:$16 sps:$4 sm:$0xff]  }
 0x21c   :  { %6218 = vmatpush1.bf16.msra.mxu0 %v13460_v20  ;;  %7762 = vmatpush1.bf16.msra.mxu1 %v13463_v5  ;;  %v13478_v20 = vld [vmem:[%s18695_s1 + $0xb00] ss:$16 sps:$4 sm:$0xff]   ;;  %v13481_v5 = vld [vmem:[%s18695_s1 + $0x908] ss:$16 sps:$4 sm:$0xff]  }
 0x21d   :  { %6219 = vmatprep.subr.bf16.mxu0 %v13471_v14  ;;  %7763 = vmatprep.subr.bf16.mxu1 %v13474_v10  ;;  %v13489_v14 = vld [vmem:[%s18695_s1 + $0xb24] ss:$16 sps:$4 sm:$0xff]   ;;  %v13492_v10 = vld [vmem:[%s18695_s1 + $0x92c] ss:$16 sps:$4 sm:$0xff]  }
 0x220   :  { %6220 = vmatpush1.bf16.msra.mxu0 %v13469_v27  ;;  %7764 = vmatpush1.bf16.msra.mxu1 %v13472_v7  ;;  %v13487_v27 = vld [vmem:[%s18695_s1 + $0xb20] ss:$16 sps:$4 sm:$0xff]   ;;  %v13490_v7 = vld [vmem:[%s18695_s1 + $0x928] ss:$16 sps:$4 sm:$0xff]  }
 0x221   :  { %6221 = vmatprep.subr.bf16.mxu0 %v13480_v40  ;;  %7765 = vmatprep.subr.bf16.mxu1 %v13483_v11  ;;  %v16276_v40 = vld [vmem:[%s18694_s0 + $0x2f0] ss:$72 sps:$4 sm:$0xff]   ;;  %v16281_v11 = vld [vmem:[%s18694_s0 + $0x384] ss:$72 sps:$4 sm:$0xff]  }
 0x222   :  { %6085 = vmatmul.mubr.bf16.gmra.mrb[16].mxu0 %v16238_v44  ;;  %7629 = vmatmul.mubr.bf16.gmra.mrb[48].mxu1 %v15774_v54  ;;  %v13498_v54 = vld [vmem:[%s18695_s1 + $0xb44] ss:$16 sps:$4 sm:$0xff]  }
 0x223   :  { %6094 = vmatprep.mubr.bf16.mxu0 %v16243_v45  ;;  %7638 = vmatprep.mubr.bf16.mxu1 %v15779_v62  ;;  %v13501_v62 = vld [vmem:[%s18695_s1 + $0x94c] ss:$16 sps:$4 sm:$0xff]  }
 0x224   :  { %6222 = vmatpush1.bf16.msra.mxu0 %v13478_v20  ;;  %7766 = vmatpush1.bf16.msra.mxu1 %v13481_v5  ;;  %v13496_v20 = vld [vmem:[%s18695_s1 + $0xb40] ss:$16 sps:$4 sm:$0xff]   ;;  %v13499_v5 = vld [vmem:[%s18695_s1 + $0x948] ss:$16 sps:$4 sm:$0xff]  }
 0x225   :  { %6223 = vmatprep.subr.bf16.mxu0 %v13489_v14  ;;  %7767 = vmatprep.subr.bf16.mxu1 %v13492_v10  ;;  %v13507_v14 = vld [vmem:[%s18695_s1 + $0xb64] ss:$16 sps:$4 sm:$0xff]   ;;  %v13510_v10 = vld [vmem:[%s18695_s1 + $0x96c] ss:$16 sps:$4 sm:$0xff]  }
 0x228   :  { %6224 = vmatpush1.bf16.msra.mxu0 %v13487_v27  ;;  %7768 = vmatpush1.bf16.msra.mxu1 %v13490_v7  ;;  %v13505_v27 = vld [vmem:[%s18695_s1 + $0xb60] ss:$16 sps:$4 sm:$0xff]   ;;  %v13508_v7 = vld [vmem:[%s18695_s1 + $0x968] ss:$16 sps:$4 sm:$0xff]  }
 0x229   :  { %6225 = vmatprep.subr.bf16.mxu0 %v13498_v54  ;;  %7769 = vmatprep.subr.bf16.mxu1 %v13501_v62  ;;  %v16314_v54 = vld [vmem:[%s18694_s0 + $0x380] ss:$72 sps:$4 sm:$0xff]   ;;  %v16319_v62 = vld [vmem:[%s18694_s0 + $0x414] ss:$72 sps:$4 sm:$0xff]  }
 0x22a   :  { %6095 = vmatmul.mubr.bf16.gmra.mrb[20].mxu0 %v16276_v40  ;;  %7639 = vmatmul.mubr.bf16.gmra.mrb[52].mxu1 %v15816_v8  ;;  %v13516_v8 = vld [vmem:[%s18695_s1 + $0xb84] ss:$16 sps:$4 sm:$0xff]  }
 0x22b   :  { %6104 = vmatprep.mubr.bf16.mxu0 %v16281_v11  ;;  %7648 = vmatprep.mubr.bf16.mxu1 %v15821_v12  ;;  %v13519_v12 = vld [vmem:[%s18695_s1 + $0x98c] ss:$16 sps:$4 sm:$0xff]  }
 0x22c   :  { %6226 = vmatpush1.bf16.msra.mxu0 %v13496_v20  ;;  %7770 = vmatpush1.bf16.msra.mxu1 %v13499_v5  ;;  %v13514_v20 = vld [vmem:[%s18695_s1 + $0xb80] ss:$16 sps:$4 sm:$0xff]   ;;  %v13517_v5 = vld [vmem:[%s18695_s1 + $0x988] ss:$16 sps:$4 sm:$0xff]  }
 0x22d   :  { %6227 = vmatprep.subr.bf16.mxu0 %v13507_v14  ;;  %7771 = vmatprep.subr.bf16.mxu1 %v13510_v10  ;;  %v13525_v14 = vld [vmem:[%s18695_s1 + $0xba4] ss:$16 sps:$4 sm:$0xff]   ;;  %v13528_v10 = vld [vmem:[%s18695_s1 + $0x9ac] ss:$16 sps:$4 sm:$0xff]  }
 0x230   :  { %6228 = vmatpush1.bf16.msra.mxu0 %v13505_v27  ;;  %7772 = vmatpush1.bf16.msra.mxu1 %v13508_v7  ;;  %v13523_v27 = vld [vmem:[%s18695_s1 + $0xba0] ss:$16 sps:$4 sm:$0xff]   ;;  %v13526_v7 = vld [vmem:[%s18695_s1 + $0x9a8] ss:$16 sps:$4 sm:$0xff]  }
 0x231   :  { %6229 = vmatprep.subr.bf16.mxu0 %v13516_v8  ;;  %7773 = vmatprep.subr.bf16.mxu1 %v13519_v12  ;;  %v16352_v8 = vld [vmem:[%s18694_s0 + $0x410] ss:$72 sps:$4 sm:$0xff]   ;;  %v16357_v12 = vld [vmem:[%s18694_s0 + $0x4a4] ss:$72 sps:$4 sm:$0xff]  }
 0x232   :  { %6105 = vmatmul.mubr.bf16.gmra.mrb[24].mxu0 %v16314_v54  ;;  %7649 = vmatmul.mubr.bf16.gmra.mrb[56].mxu1 %v15858_v41  ;;  %v13534_v41 = vld [vmem:[%s18695_s1 + $0xbc4] ss:$16 sps:$4 sm:$0xff]  }
 0x233   :  { %6114 = vmatprep.mubr.bf16.mxu0 %v16319_v62  ;;  %7658 = vmatprep.mubr.bf16.mxu1 %v15863_v59  ;;  %v13537_v59 = vld [vmem:[%s18695_s1 + $0x9cc] ss:$16 sps:$4 sm:$0xff]  }
 0x234   :  { %6230 = vmatpush1.bf16.msra.mxu0 %v13514_v20  ;;  %7774 = vmatpush1.bf16.msra.mxu1 %v13517_v5  ;;  %v13532_v20 = vld [vmem:[%s18695_s1 + $0xbc0] ss:$16 sps:$4 sm:$0xff]   ;;  %v13535_v5 = vld [vmem:[%s18695_s1 + $0x9c8] ss:$16 sps:$4 sm:$0xff]  }
 0x235   :  { %6231 = vmatprep.subr.bf16.mxu0 %v13525_v14  ;;  %7775 = vmatprep.subr.bf16.mxu1 %v13528_v10  ;;  %v13543_v14 = vld [vmem:[%s18695_s1 + $0xbe4] ss:$16 sps:$4 sm:$0xff]   ;;  %v13546_v10 = vld [vmem:[%s18695_s1 + $0x9ec] ss:$16 sps:$4 sm:$0xff]  }
 0x238   :  { %6232 = vmatpush1.bf16.msra.mxu0 %v13523_v27  ;;  %7776 = vmatpush1.bf16.msra.mxu1 %v13526_v7  ;;  %v13541_v27 = vld [vmem:[%s18695_s1 + $0xbe0] ss:$16 sps:$4 sm:$0xff]   ;;  %v13544_v7 = vld [vmem:[%s18695_s1 + $0x9e8] ss:$16 sps:$4 sm:$0xff]  }
 0x239   :  { %6233 = vmatprep.subr.bf16.mxu0 %v13534_v41  ;;  %7777 = vmatprep.subr.bf16.mxu1 %v13537_v59  ;;  %v16390_v41 = vld [vmem:[%s18694_s0 + $0x4a0] ss:$72 sps:$4 sm:$0xff]   ;;  %v16395_v59 = vld [vmem:[%s18694_s0 + $0x534] ss:$72 sps:$4 sm:$0xff]  }
 0x23a   :  { %6115 = vmatmul.mubr.bf16.gmra.mrb[28].mxu0 %v16352_v8  ;;  %7659 = vmatmul.mubr.bf16.gmra.mrb[60].mxu1 %v15900_v25  ;;  %v13552_v25 = vld [vmem:[%s18695_s1 + $0xc04] ss:$16 sps:$4 sm:$0xff]  }
 0x23b   :  { %6124 = vmatprep.mubr.bf16.mxu0 %v16357_v12  ;;  %7668 = vmatprep.mubr.bf16.mxu1 %v15905_v23  ;;  %v13555_v23 = vld [vmem:[%s18695_s1 + $0xa0c] ss:$16 sps:$4 sm:$0xff]  }
 0x23c   :  { %6234 = vmatpush1.bf16.msra.mxu0 %v13532_v20  ;;  %7778 = vmatpush1.bf16.msra.mxu1 %v13535_v5  ;;  %v16404_v20 = vld [vmem:[%s18694_s0 + $0x530] ss:$72 sps:$4 sm:$0xff]   ;;  %v16409_v5 = vld [vmem:[%s18694_s0 + $0x5c4] ss:$72 sps:$4 sm:$0xff]  }
 0x23d   :  { %6235 = vmatprep.subr.bf16.mxu0 %v13543_v14  ;;  %7779 = vmatprep.subr.bf16.mxu1 %v13546_v10  ;;  %v13553_v14 = vld [vmem:[%s18695_s1 + $0xa08] ss:$16 sps:$4 sm:$0xff]   ;;  %v13564_v10 = vld [vmem:[%s18695_s1 + $0xa2c] ss:$16 sps:$4 sm:$0xff]  }
 0x240   :  { %6236 = vmatpush1.bf16.msra.mxu0 %v13541_v27  ;;  %7780 = vmatpush1.bf16.msra.mxu1 %v13544_v7  ;;  %v13559_v27 = vld [vmem:[%s18695_s1 + $0xc20] ss:$16 sps:$4 sm:$0xff]   ;;  %v13562_v7 = vld [vmem:[%s18695_s1 + $0xa28] ss:$16 sps:$4 sm:$0xff]  }
 0x241   :  { %6398 = vmatprep.subr.bf16.mxu0 %v13552_v25  ;;  %7942 = vmatprep.subr.bf16.mxu1 %v13555_v23  ;;  %v13570_v25 = vld [vmem:[%s18695_s1 + $0xc44] ss:$16 sps:$4 sm:$0xff]   ;;  %v16540_v23 = vld [vmem:[%s18694_s0 + $0xb8] ss:$72 sps:$4 sm:$0xff]  }
 0x242   :  { %6125 = vmatmul.mubr.bf16.gmra.mrb[32].mxu0 %v16390_v41  ;;  %7669 = vmatmul.mubr.bf16.gmra.mrb[64].mxu1 %v15942_v53  ;;  %v16418_v53 = vld [vmem:[%s18694_s0 + $0x5c0] ss:$72 sps:$4 sm:$0xff]  }
 0x243   :  { %6134 = vmatprep.mubr.bf16.mxu0 %v16395_v59  ;;  %7678 = vmatprep.mubr.bf16.mxu1 %v15947_v57  ;;  %v16423_v57 = vld [vmem:[%s18694_s0 + $0x654] ss:$72 sps:$4 sm:$0xff]  }
 0x24a   :  { %6135 = vmatmul.mubr.bf16.gmra.mrb[36].mxu0 %v16404_v20  ;;  %7679 = vmatmul.mubr.bf16.gmra.mrb[68].mxu1 %v15960_v17  ;;  %v16432_v17 = vld [vmem:[%s18694_s0 + $0x650] ss:$72 sps:$4 sm:$0xff]  }
 0x24b   :  { %6144 = vmatprep.mubr.bf16.mxu0 %v16409_v5  ;;  %7688 = vmatprep.mubr.bf16.mxu1 %v15965_v19  ;;  %v16437_v19 = vld [vmem:[%s18694_s0 + $0x6e4] ss:$72 sps:$4 sm:$0xff]  }
 0x252   :  { %6145 = vmatmul.mubr.bf16.gmra.mrb[40].mxu0 %v16418_v53  ;;  %7689 = vmatmul.mubr.bf16.gmra.mrb[72].mxu1 %v15978_v30  ;;  %v16446_v30 = vld [vmem:[%s18694_s0 + $0x6e0] ss:$72 sps:$4 sm:$0xff]  }
 0x253   :  { %6154 = vmatprep.mubr.bf16.mxu0 %v16423_v57  ;;  %7698 = vmatprep.mubr.bf16.mxu1 %v15983_v47  ;;  %v16451_v47 = vld [vmem:[%s18694_s0 + $0x774] ss:$72 sps:$4 sm:$0xff]  }
 0x25a   :  { %6155 = vmatmul.mubr.bf16.gmra.mrb[44].mxu0 %v16432_v17  ;;  %7699 = vmatmul.mubr.bf16.gmra.mrb[76].mxu1 %v15996_v49  ;;  %v16460_v49 = vld [vmem:[%s18694_s0 + $0x770] ss:$72 sps:$4 sm:$0xff]  }
 0x25b   :  { %6164 = vmatprep.mubr.bf16.mxu0 %v16437_v19  ;;  %7708 = vmatprep.mubr.bf16.mxu1 %v16001_v50  ;;  %v16465_v50 = vld [vmem:[%s18694_s0 + $0x804] ss:$72 sps:$4 sm:$0xff]  }
 0x262   :  { %6165 = vmatmul.mubr.bf16.gmra.mrb[48].mxu0 %v16446_v30  ;;  %7709 = vmatmul.mubr.bf16.gmra.mrb[80].mxu1 %v16014_v1  ;;  %v16474_v1 = vld [vmem:[%s18694_s0 + $0x800] ss:$72 sps:$4 sm:$0xff]  }
 0x263   :  { %6174 = vmatprep.mubr.bf16.mxu0 %v16451_v47  ;;  %7718 = vmatprep.mubr.bf16.mxu1 %v16019_v4  ;;  %v16479_v4 = vld [vmem:[%s18694_s0 + $0x894] ss:$72 sps:$4 sm:$0xff]  }
 0x26a   :  { %6175 = vmatmul.mubr.bf16.gmra.mrb[52].mxu0 %v16460_v49  ;;  %7719 = vmatmul.mubr.bf16.gmra.mrb[84].mxu1 %v16032_v33  ;;  %v16488_v33 = vld [vmem:[%s18694_s0 + $0x890] ss:$72 sps:$4 sm:$0xff]  }
 0x26b   :  { %6184 = vmatprep.mubr.bf16.mxu0 %v16465_v50  ;;  %7728 = vmatprep.mubr.bf16.mxu1 %v16037_v34  ;;  %v16493_v34 = vld [vmem:[%s18694_s0 + $0x2c] ss:$72 sps:$4 sm:$0xff]  }
 0x272   :  { %6185 = vmatmul.mubr.bf16.gmra.mrb[56].mxu0 %v16474_v1  ;;  %7729 = vmatmul.mubr.bf16.gmra.mrb[88].mxu1 %v16050_v55  ;;  %v16502_v55 = vld [vmem:[%s18694_s0 + $0x28] ss:$72 sps:$4 sm:$0xff]  }
 0x273   :  { %6194 = vmatprep.mubr.bf16.mxu0 %v16479_v4  ;;  %7738 = vmatprep.mubr.bf16.mxu1 %v16055_v29  ;;  %v13550_v29 = vld [vmem:[%s18695_s1 + $0xc00] ss:$16 sps:$4 sm:$0xff]  }
 0x27a   :  { %6195 = vmatmul.mubr.bf16.gmra.mrb[60].mxu0 %v16488_v33  ;;  %7739 = vmatmul.mubr.bf16.gmra.mrb[92].mxu1 %v16068_v42  ;;  %v16513_v42 = vld [vmem:[%s18694_s0 + $0xbc] ss:$72 sps:$4 sm:$0xff]  }
 0x27b   :  { %6237 = vmatprep.mubr.bf16.mxu0 %v16493_v34  ;;  %7781 = vmatprep.mubr.bf16.mxu1 %v16073_v21  ;;  %v13561_v21 = vld [vmem:[%s18695_s1 + $0xc24] ss:$16 sps:$4 sm:$0xff]  }
 0x282   :  { %6238 = vmatmul.mubr.bf16.vlgmr.msra.gmra.mrb[0].mxu0 %v16502_v55  ;;  %7782 = vmatmul.mubr.bf16.vlgmr.msra.gmra.mrb[32].mxu1 %v16086_v16  ;;  %v13573_v16 = vld [vmem:[%s18695_s1 + $0xa4c] ss:$16 sps:$4 sm:$0xff]  }
 0x283   :  { %6399 = vmatpush1.bf16.msra.mxu0 %v13550_v29  ;;  %7943 = vmatpush1.bf16.msra.mxu1 %v13553_v14  ;;  %v13568_v29 = vld [vmem:[%s18695_s1 + $0xc40] ss:$16 sps:$4 sm:$0xff]   ;;  %v13571_v14 = vld [vmem:[%s18695_s1 + $0xa48] ss:$16 sps:$4 sm:$0xff]  }
 0x284   :  { %6247 = vmatprep.mubr.bf16.mxu0 %v16513_v42  ;;  %7791 = vmatprep.mubr.bf16.mxu1 %v16097_v13  ;;  %v16545_v13 = vld [vmem:[%s18694_s0 + $0x14c] ss:$72 sps:$4 sm:$0xff]  }
 0x285   :  { %6400 = vmatprep.subr.bf16.mxu0 %v13561_v21  ;;  %7944 = vmatprep.subr.bf16.mxu1 %v13564_v10  ;;  %v13579_v21 = vld [vmem:[%s18695_s1 + $0xc64] ss:$16 sps:$4 sm:$0xff]   ;;  %v13582_v10 = vld [vmem:[%s18695_s1 + $0xa6c] ss:$16 sps:$4 sm:$0xff]  }
 0x287   :  { %6401 = vmatpush1.bf16.msra.mxu0 %v13559_v27  ;;  %7945 = vmatpush1.bf16.msra.mxu1 %v13562_v7  ;;  %v13577_v27 = vld [vmem:[%s18695_s1 + $0xc60] ss:$16 sps:$4 sm:$0xff]   ;;  %v13580_v7 = vld [vmem:[%s18695_s1 + $0xa68] ss:$16 sps:$4 sm:$0xff]  }
 0x288   :  { %6402 = vmatprep.subr.bf16.mxu0 %v13570_v25  ;;  %7946 = vmatprep.subr.bf16.mxu1 %v13573_v16  ;;  %v16578_v25 = vld [vmem:[%s18694_s0 + $0x148] ss:$72 sps:$4 sm:$0xff]   ;;  %v16583_v16 = vld [vmem:[%s18694_s0 + $0x1dc] ss:$72 sps:$4 sm:$0xff]  }
 0x28a   :  { %6248 = vmatmul.mubr.bf16.gmra.mrb[4].mxu0 %v16540_v23  ;;  %7792 = vmatmul.mubr.bf16.gmra.mrb[36].mxu1 %v16124_v60  ;;  %v13588_v60 = vld [vmem:[%s18695_s1 + $0xc84] ss:$16 sps:$4 sm:$0xff]  }
 0x28b   :  { %6257 = vmatprep.mubr.bf16.mxu0 %v16545_v13  ;;  %7801 = vmatprep.mubr.bf16.mxu1 %v16129_v6  ;;  %v13591_v6 = vld [vmem:[%s18695_s1 + $0xa8c] ss:$16 sps:$4 sm:$0xff]  }
 0x28c   :  { %6403 = vmatpush1.bf16.msra.mxu0 %v13568_v29  ;;  %7947 = vmatpush1.bf16.msra.mxu1 %v13571_v14  ;;  %v13586_v29 = vld [vmem:[%s18695_s1 + $0xc80] ss:$16 sps:$4 sm:$0xff]   ;;  %v13589_v14 = vld [vmem:[%s18695_s1 + $0xa88] ss:$16 sps:$4 sm:$0xff]  }
 0x28d   :  { %6404 = vmatprep.subr.bf16.mxu0 %v13579_v21  ;;  %7948 = vmatprep.subr.bf16.mxu1 %v13582_v10  ;;  %v13597_v21 = vld [vmem:[%s18695_s1 + $0xca4] ss:$16 sps:$4 sm:$0xff]   ;;  %v13600_v10 = vld [vmem:[%s18695_s1 + $0xaac] ss:$16 sps:$4 sm:$0xff]  }
 0x290   :  { %6405 = vmatpush1.bf16.msra.mxu0 %v13577_v27  ;;  %7949 = vmatpush1.bf16.msra.mxu1 %v13580_v7  ;;  %v13595_v27 = vld [vmem:[%s18695_s1 + $0xca0] ss:$16 sps:$4 sm:$0xff]   ;;  %v13598_v7 = vld [vmem:[%s18695_s1 + $0xaa8] ss:$16 sps:$4 sm:$0xff]  }
 0x291   :  { %6406 = vmatprep.subr.bf16.mxu0 %v13588_v60  ;;  %7950 = vmatprep.subr.bf16.mxu1 %v13591_v6  ;;  %v16616_v60 = vld [vmem:[%s18694_s0 + $0x1d8] ss:$72 sps:$4 sm:$0xff]   ;;  %v16621_v6 = vld [vmem:[%s18694_s0 + $0x26c] ss:$72 sps:$4 sm:$0xff]  }
 0x292   :  { %6258 = vmatmul.mubr.bf16.gmra.mrb[8].mxu0 %v16578_v25  ;;  %7802 = vmatmul.mubr.bf16.gmra.mrb[40].mxu1 %v16162_v18  ;;  %v13606_v18 = vld [vmem:[%s18695_s1 + $0xcc4] ss:$16 sps:$4 sm:$0xff]  }
 0x293   :  { %6267 = vmatprep.mubr.bf16.mxu0 %v16583_v16  ;;  %7811 = vmatprep.mubr.bf16.mxu1 %v16167_v51  ;;  %v13609_v51 = vld [vmem:[%s18695_s1 + $0xacc] ss:$16 sps:$4 sm:$0xff]  }
 0x294   :  { %6407 = vmatpush1.bf16.msra.mxu0 %v13586_v29  ;;  %7951 = vmatpush1.bf16.msra.mxu1 %v13589_v14  ;;  %v13604_v29 = vld [vmem:[%s18695_s1 + $0xcc0] ss:$16 sps:$4 sm:$0xff]   ;;  %v13607_v14 = vld [vmem:[%s18695_s1 + $0xac8] ss:$16 sps:$4 sm:$0xff]  }
 0x295   :  { %6408 = vmatprep.subr.bf16.mxu0 %v13597_v21  ;;  %7952 = vmatprep.subr.bf16.mxu1 %v13600_v10  ;;  %v13615_v21 = vld [vmem:[%s18695_s1 + $0xce4] ss:$16 sps:$4 sm:$0xff]   ;;  %v13618_v10 = vld [vmem:[%s18695_s1 + $0xaec] ss:$16 sps:$4 sm:$0xff]  }
 0x298   :  { %6409 = vmatpush1.bf16.msra.mxu0 %v13595_v27  ;;  %7953 = vmatpush1.bf16.msra.mxu1 %v13598_v7  ;;  %v13613_v27 = vld [vmem:[%s18695_s1 + $0xce0] ss:$16 sps:$4 sm:$0xff]   ;;  %v13616_v7 = vld [vmem:[%s18695_s1 + $0xae8] ss:$16 sps:$4 sm:$0xff]  }
 0x299   :  { %6410 = vmatprep.subr.bf16.mxu0 %v13606_v18  ;;  %7954 = vmatprep.subr.bf16.mxu1 %v13609_v51  ;;  %v16654_v18 = vld [vmem:[%s18694_s0 + $0x268] ss:$72 sps:$4 sm:$0xff]   ;;  %v16659_v51 = vld [vmem:[%s18694_s0 + $0x2fc] ss:$72 sps:$4 sm:$0xff]  }
 0x29a   :  { %6268 = vmatmul.mubr.bf16.gmra.mrb[12].mxu0 %v16616_v60  ;;  %7812 = vmatmul.mubr.bf16.gmra.mrb[44].mxu1 %v16200_v26  ;;  %v13624_v26 = vld [vmem:[%s18695_s1 + $0xd04] ss:$16 sps:$4 sm:$0xff]  }
 0x29b   :  { %6277 = vmatprep.mubr.bf16.mxu0 %v16621_v6  ;;  %7821 = vmatprep.mubr.bf16.mxu1 %v16205_v46  ;;  %v13627_v46 = vld [vmem:[%s18695_s1 + $0xb0c] ss:$16 sps:$4 sm:$0xff]  }
 0x29c   :  { %6411 = vmatpush1.bf16.msra.mxu0 %v13604_v29  ;;  %7955 = vmatpush1.bf16.msra.mxu1 %v13607_v14  ;;  %v13622_v29 = vld [vmem:[%s18695_s1 + $0xd00] ss:$16 sps:$4 sm:$0xff]   ;;  %v13625_v14 = vld [vmem:[%s18695_s1 + $0xb08] ss:$16 sps:$4 sm:$0xff]  }
 0x29d   :  { %6412 = vmatprep.subr.bf16.mxu0 %v13615_v21  ;;  %7956 = vmatprep.subr.bf16.mxu1 %v13618_v10  ;;  %v13633_v21 = vld [vmem:[%s18695_s1 + $0xd24] ss:$16 sps:$4 sm:$0xff]   ;;  %v13636_v10 = vld [vmem:[%s18695_s1 + $0xb2c] ss:$16 sps:$4 sm:$0xff]  }
 0x2a0   :  { %6413 = vmatpush1.bf16.msra.mxu0 %v13613_v27  ;;  %7957 = vmatpush1.bf16.msra.mxu1 %v13616_v7  ;;  %v13631_v27 = vld [vmem:[%s18695_s1 + $0xd20] ss:$16 sps:$4 sm:$0xff]   ;;  %v13634_v7 = vld [vmem:[%s18695_s1 + $0xb28] ss:$16 sps:$4 sm:$0xff]  }
 0x2a1   :  { %6414 = vmatprep.subr.bf16.mxu0 %v13624_v26  ;;  %7958 = vmatprep.subr.bf16.mxu1 %v13627_v46  ;;  %v16692_v26 = vld [vmem:[%s18694_s0 + $0x2f8] ss:$72 sps:$4 sm:$0xff]   ;;  %v16697_v46 = vld [vmem:[%s18694_s0 + $0x38c] ss:$72 sps:$4 sm:$0xff]  }
 0x2a2   :  { %6278 = vmatmul.mubr.bf16.gmra.mrb[16].mxu0 %v16654_v18  ;;  %7822 = vmatmul.mubr.bf16.gmra.mrb[48].mxu1 %v16238_v44  ;;  %v13642_v44 = vld [vmem:[%s18695_s1 + $0xd44] ss:$16 sps:$4 sm:$0xff]  }
 0x2a3   :  { %6287 = vmatprep.mubr.bf16.mxu0 %v16659_v51  ;;  %7831 = vmatprep.mubr.bf16.mxu1 %v16243_v45  ;;  %v13645_v45 = vld [vmem:[%s18695_s1 + $0xb4c] ss:$16 sps:$4 sm:$0xff]  }
 0x2a4   :  { %6415 = vmatpush1.bf16.msra.mxu0 %v13622_v29  ;;  %7959 = vmatpush1.bf16.msra.mxu1 %v13625_v14  ;;  %v13640_v29 = vld [vmem:[%s18695_s1 + $0xd40] ss:$16 sps:$4 sm:$0xff]   ;;  %v13643_v14 = vld [vmem:[%s18695_s1 + $0xb48] ss:$16 sps:$4 sm:$0xff]  }
 0x2a5   :  { %6416 = vmatprep.subr.bf16.mxu0 %v13633_v21  ;;  %7960 = vmatprep.subr.bf16.mxu1 %v13636_v10  ;;  %v13651_v21 = vld [vmem:[%s18695_s1 + $0xd64] ss:$16 sps:$4 sm:$0xff]   ;;  %v13654_v10 = vld [vmem:[%s18695_s1 + $0xb6c] ss:$16 sps:$4 sm:$0xff]  }
 0x2a8   :  { %6417 = vmatpush1.bf16.msra.mxu0 %v13631_v27  ;;  %7961 = vmatpush1.bf16.msra.mxu1 %v13634_v7  ;;  %v13649_v27 = vld [vmem:[%s18695_s1 + $0xd60] ss:$16 sps:$4 sm:$0xff]   ;;  %v13652_v7 = vld [vmem:[%s18695_s1 + $0xb68] ss:$16 sps:$4 sm:$0xff]  }
 0x2a9   :  { %6418 = vmatprep.subr.bf16.mxu0 %v13642_v44  ;;  %7962 = vmatprep.subr.bf16.mxu1 %v13645_v45  ;;  %v16730_v44 = vld [vmem:[%s18694_s0 + $0x388] ss:$72 sps:$4 sm:$0xff]   ;;  %v16735_v45 = vld [vmem:[%s18694_s0 + $0x41c] ss:$72 sps:$4 sm:$0xff]  }
 0x2aa   :  { %6288 = vmatmul.mubr.bf16.gmra.mrb[20].mxu0 %v16692_v26  ;;  %7832 = vmatmul.mubr.bf16.gmra.mrb[52].mxu1 %v16276_v40  ;;  %v13660_v40 = vld [vmem:[%s18695_s1 + $0xd84] ss:$16 sps:$4 sm:$0xff]  }
 0x2ab   :  { %6297 = vmatprep.mubr.bf16.mxu0 %v16697_v46  ;;  %7841 = vmatprep.mubr.bf16.mxu1 %v16281_v11  ;;  %v13663_v11 = vld [vmem:[%s18695_s1 + $0xb8c] ss:$16 sps:$4 sm:$0xff]  }
 0x2ac   :  { %6419 = vmatpush1.bf16.msra.mxu0 %v13640_v29  ;;  %7963 = vmatpush1.bf16.msra.mxu1 %v13643_v14  ;;  %v13658_v29 = vld [vmem:[%s18695_s1 + $0xd80] ss:$16 sps:$4 sm:$0xff]   ;;  %v13661_v14 = vld [vmem:[%s18695_s1 + $0xb88] ss:$16 sps:$4 sm:$0xff]  }
 0x2ad   :  { %6420 = vmatprep.subr.bf16.mxu0 %v13651_v21  ;;  %7964 = vmatprep.subr.bf16.mxu1 %v13654_v10  ;;  %v13669_v21 = vld [vmem:[%s18695_s1 + $0xda4] ss:$16 sps:$4 sm:$0xff]   ;;  %v13672_v10 = vld [vmem:[%s18695_s1 + $0xbac] ss:$16 sps:$4 sm:$0xff]  }
 0x2b0   :  { %6421 = vmatpush1.bf16.msra.mxu0 %v13649_v27  ;;  %7965 = vmatpush1.bf16.msra.mxu1 %v13652_v7  ;;  %v13667_v27 = vld [vmem:[%s18695_s1 + $0xda0] ss:$16 sps:$4 sm:$0xff]   ;;  %v13670_v7 = vld [vmem:[%s18695_s1 + $0xba8] ss:$16 sps:$4 sm:$0xff]  }
 0x2b1   :  { %6422 = vmatprep.subr.bf16.mxu0 %v13660_v40  ;;  %7966 = vmatprep.subr.bf16.mxu1 %v13663_v11  ;;  %v16768_v40 = vld [vmem:[%s18694_s0 + $0x418] ss:$72 sps:$4 sm:$0xff]   ;;  %v16773_v11 = vld [vmem:[%s18694_s0 + $0x4ac] ss:$72 sps:$4 sm:$0xff]  }
 0x2b2   :  { %6298 = vmatmul.mubr.bf16.gmra.mrb[24].mxu0 %v16730_v44  ;;  %7842 = vmatmul.mubr.bf16.gmra.mrb[56].mxu1 %v16314_v54  ;;  %v13678_v54 = vld [vmem:[%s18695_s1 + $0xdc4] ss:$16 sps:$4 sm:$0xff]  }
 0x2b3   :  { %6307 = vmatprep.mubr.bf16.mxu0 %v16735_v45  ;;  %7851 = vmatprep.mubr.bf16.mxu1 %v16319_v62  ;;  %v13681_v62 = vld [vmem:[%s18695_s1 + $0xbcc] ss:$16 sps:$4 sm:$0xff]  }
 0x2b4   :  { %6423 = vmatpush1.bf16.msra.mxu0 %v13658_v29  ;;  %7967 = vmatpush1.bf16.msra.mxu1 %v13661_v14  ;;  %v13676_v29 = vld [vmem:[%s18695_s1 + $0xdc0] ss:$16 sps:$4 sm:$0xff]   ;;  %v13679_v14 = vld [vmem:[%s18695_s1 + $0xbc8] ss:$16 sps:$4 sm:$0xff]  }
 0x2b5   :  { %6424 = vmatprep.subr.bf16.mxu0 %v13669_v21  ;;  %7968 = vmatprep.subr.bf16.mxu1 %v13672_v10  ;;  %v13687_v21 = vld [vmem:[%s18695_s1 + $0xde4] ss:$16 sps:$4 sm:$0xff]   ;;  %v13690_v10 = vld [vmem:[%s18695_s1 + $0xbec] ss:$16 sps:$4 sm:$0xff]  }
 0x2b8   :  { %6425 = vmatpush1.bf16.msra.mxu0 %v13667_v27  ;;  %7969 = vmatpush1.bf16.msra.mxu1 %v13670_v7  ;;  %v13685_v27 = vld [vmem:[%s18695_s1 + $0xde0] ss:$16 sps:$4 sm:$0xff]   ;;  %v13688_v7 = vld [vmem:[%s18695_s1 + $0xbe8] ss:$16 sps:$4 sm:$0xff]  }
 0x2b9   :  { %6426 = vmatprep.subr.bf16.mxu0 %v13678_v54  ;;  %7970 = vmatprep.subr.bf16.mxu1 %v13681_v62  ;;  %v16806_v54 = vld [vmem:[%s18694_s0 + $0x4a8] ss:$72 sps:$4 sm:$0xff]   ;;  %v16811_v62 = vld [vmem:[%s18694_s0 + $0x53c] ss:$72 sps:$4 sm:$0xff]  }
 0x2ba   :  { %6308 = vmatmul.mubr.bf16.gmra.mrb[28].mxu0 %v16768_v40  ;;  %7852 = vmatmul.mubr.bf16.gmra.mrb[60].mxu1 %v16352_v8  ;;  %v13696_v8 = vld [vmem:[%s18695_s1 + $0xe04] ss:$16 sps:$4 sm:$0xff]  }
 0x2bb   :  { %6317 = vmatprep.mubr.bf16.mxu0 %v16773_v11  ;;  %7861 = vmatprep.mubr.bf16.mxu1 %v16357_v12  ;;  %v13699_v12 = vld [vmem:[%s18695_s1 + $0xc0c] ss:$16 sps:$4 sm:$0xff]  }
 0x2bc   :  { %6427 = vmatpush1.bf16.msra.mxu0 %v13676_v29  ;;  %7971 = vmatpush1.bf16.msra.mxu1 %v13679_v14  ;;  %v16820_v29 = vld [vmem:[%s18694_s0 + $0x538] ss:$72 sps:$4 sm:$0xff]   ;;  %v16825_v14 = vld [vmem:[%s18694_s0 + $0x5cc] ss:$72 sps:$4 sm:$0xff]  }
 0x2bd   :  { %6428 = vmatprep.subr.bf16.mxu0 %v13687_v21  ;;  %7972 = vmatprep.subr.bf16.mxu1 %v13690_v10  ;;  %v13697_v21 = vld [vmem:[%s18695_s1 + $0xc08] ss:$16 sps:$4 sm:$0xff]   ;;  %v13708_v10 = vld [vmem:[%s18695_s1 + $0xc2c] ss:$16 sps:$4 sm:$0xff]  }
 0x2c0   :  { %6429 = vmatpush1.bf16.msra.mxu0 %v13685_v27  ;;  %7973 = vmatpush1.bf16.msra.mxu1 %v13688_v7  ;;  %v13703_v27 = vld [vmem:[%s18695_s1 + $0xe20] ss:$16 sps:$4 sm:$0xff]   ;;  %v13706_v7 = vld [vmem:[%s18695_s1 + $0xc28] ss:$16 sps:$4 sm:$0xff]  }
 0x2c1   :  { %6591 = vmatprep.subr.bf16.mxu0 %v13696_v8  ;;  %8135 = vmatprep.subr.bf16.mxu1 %v13699_v12  ;;  %v13714_v8 = vld [vmem:[%s18695_s1 + $0xe44] ss:$16 sps:$4 sm:$0xff]   ;;  %v16956_v12 = vld [vmem:[%s18694_s0 + $0xc0] ss:$72 sps:$4 sm:$0xff]  }
 0x2c2   :  { %6318 = vmatmul.mubr.bf16.gmra.mrb[32].mxu0 %v16806_v54  ;;  %7862 = vmatmul.mubr.bf16.gmra.mrb[64].mxu1 %v16390_v41  ;;  %v16834_v41 = vld [vmem:[%s18694_s0 + $0x5c8] ss:$72 sps:$4 sm:$0xff]  }
 0x2c3   :  { %6327 = vmatprep.mubr.bf16.mxu0 %v16811_v62  ;;  %7871 = vmatprep.mubr.bf16.mxu1 %v16395_v59  ;;  %v16839_v59 = vld [vmem:[%s18694_s0 + $0x65c] ss:$72 sps:$4 sm:$0xff]  }
 0x2ca   :  { %6328 = vmatmul.mubr.bf16.gmra.mrb[36].mxu0 %v16820_v29  ;;  %7872 = vmatmul.mubr.bf16.gmra.mrb[68].mxu1 %v16404_v20  ;;  %v16848_v20 = vld [vmem:[%s18694_s0 + $0x658] ss:$72 sps:$4 sm:$0xff]  }
 0x2cb   :  { %6337 = vmatprep.mubr.bf16.mxu0 %v16825_v14  ;;  %7881 = vmatprep.mubr.bf16.mxu1 %v16409_v5  ;;  %v16853_v5 = vld [vmem:[%s18694_s0 + $0x6ec] ss:$72 sps:$4 sm:$0xff]  }
 0x2d2   :  { %6338 = vmatmul.mubr.bf16.gmra.mrb[40].mxu0 %v16834_v41  ;;  %7882 = vmatmul.mubr.bf16.gmra.mrb[72].mxu1 %v16418_v53  ;;  %v16862_v53 = vld [vmem:[%s18694_s0 + $0x6e8] ss:$72 sps:$4 sm:$0xff]  }
 0x2d3   :  { %6347 = vmatprep.mubr.bf16.mxu0 %v16839_v59  ;;  %7891 = vmatprep.mubr.bf16.mxu1 %v16423_v57  ;;  %v16867_v57 = vld [vmem:[%s18694_s0 + $0x77c] ss:$72 sps:$4 sm:$0xff]  }
 0x2da   :  { %6348 = vmatmul.mubr.bf16.gmra.mrb[44].mxu0 %v16848_v20  ;;  %7892 = vmatmul.mubr.bf16.gmra.mrb[76].mxu1 %v16432_v17  ;;  %v16876_v17 = vld [vmem:[%s18694_s0 + $0x778] ss:$72 sps:$4 sm:$0xff]  }
 0x2db   :  { %6357 = vmatprep.mubr.bf16.mxu0 %v16853_v5  ;;  %7901 = vmatprep.mubr.bf16.mxu1 %v16437_v19  ;;  %v16881_v19 = vld [vmem:[%s18694_s0 + $0x80c] ss:$72 sps:$4 sm:$0xff]  }
 0x2e2   :  { %6358 = vmatmul.mubr.bf16.gmra.mrb[48].mxu0 %v16862_v53  ;;  %7902 = vmatmul.mubr.bf16.gmra.mrb[80].mxu1 %v16446_v30  ;;  %v16890_v30 = vld [vmem:[%s18694_s0 + $0x808] ss:$72 sps:$4 sm:$0xff]  }
 0x2e3   :  { %6367 = vmatprep.mubr.bf16.mxu0 %v16867_v57  ;;  %7911 = vmatprep.mubr.bf16.mxu1 %v16451_v47  ;;  %v16895_v47 = vld [vmem:[%s18694_s0 + $0x89c] ss:$72 sps:$4 sm:$0xff]  }
 0x2ea   :  { %6368 = vmatmul.mubr.bf16.gmra.mrb[52].mxu0 %v16876_v17  ;;  %7912 = vmatmul.mubr.bf16.gmra.mrb[84].mxu1 %v16460_v49  ;;  %v16904_v49 = vld [vmem:[%s18694_s0 + $0x898] ss:$72 sps:$4 sm:$0xff]  }
 0x2eb   :  { %6377 = vmatprep.mubr.bf16.mxu0 %v16881_v19  ;;  %7921 = vmatprep.mubr.bf16.mxu1 %v16465_v50  ;;  %v16909_v50 = vld [vmem:[%s18694_s0 + $0x34] ss:$72 sps:$4 sm:$0xff]  }
 0x2f2   :  { %6378 = vmatmul.mubr.bf16.gmra.mrb[56].mxu0 %v16890_v30  ;;  %7922 = vmatmul.mubr.bf16.gmra.mrb[88].mxu1 %v16474_v1  ;;  %v16918_v1 = vld [vmem:[%s18694_s0 + $0x30] ss:$72 sps:$4 sm:$0xff]  }
 0x2f3   :  { %6387 = vmatprep.mubr.bf16.mxu0 %v16895_v47  ;;  %7931 = vmatprep.mubr.bf16.mxu1 %v16479_v4  ;;  %v13694_v4 = vld [vmem:[%s18695_s1 + $0xe00] ss:$16 sps:$4 sm:$0xff]  }
 0x2fa   :  { %6388 = vmatmul.mubr.bf16.gmra.mrb[60].mxu0 %v16904_v49  ;;  %7932 = vmatmul.mubr.bf16.gmra.mrb[92].mxu1 %v16488_v33  ;;  %v16929_v33 = vld [vmem:[%s18694_s0 + $0xc4] ss:$72 sps:$4 sm:$0xff]  }
 0x2fb   :  { %6430 = vmatprep.mubr.bf16.mxu0 %v16909_v50  ;;  %7974 = vmatprep.mubr.bf16.mxu1 %v16493_v34  ;;  %v13705_v34 = vld [vmem:[%s18695_s1 + $0xe24] ss:$16 sps:$4 sm:$0xff]  }
 0x302   :  { %6431 = vmatmul.mubr.bf16.vlgmr.msra.gmra.mrb[0].mxu0 %v16918_v1  ;;  %7975 = vmatmul.mubr.bf16.vlgmr.msra.gmra.mrb[32].mxu1 %v16502_v55  ;;  %v13717_v55 = vld [vmem:[%s18695_s1 + $0xc4c] ss:$16 sps:$4 sm:$0xff]  }
 0x303   :  { %6592 = vmatpush1.bf16.msra.mxu0 %v13694_v4  ;;  %8136 = vmatpush1.bf16.msra.mxu1 %v13697_v21  ;;  %v13712_v4 = vld [vmem:[%s18695_s1 + $0xe40] ss:$16 sps:$4 sm:$0xff]   ;;  %v13715_v21 = vld [vmem:[%s18695_s1 + $0xc48] ss:$16 sps:$4 sm:$0xff]  }
 0x304   :  { %6440 = vmatprep.mubr.bf16.mxu0 %v16929_v33  ;;  %7984 = vmatprep.mubr.bf16.mxu1 %v16513_v42  ;;  %v16961_v42 = vld [vmem:[%s18694_s0 + $0x154] ss:$72 sps:$4 sm:$0xff]  }
 0x305   :  { %6593 = vmatprep.subr.bf16.mxu0 %v13705_v34  ;;  %8137 = vmatprep.subr.bf16.mxu1 %v13708_v10  ;;  %v13723_v34 = vld [vmem:[%s18695_s1 + $0xe64] ss:$16 sps:$4 sm:$0xff]   ;;  %v13726_v10 = vld [vmem:[%s18695_s1 + $0xc6c] ss:$16 sps:$4 sm:$0xff]  }
 0x307   :  { %6594 = vmatpush1.bf16.msra.mxu0 %v13703_v27  ;;  %8138 = vmatpush1.bf16.msra.mxu1 %v13706_v7  ;;  %v13721_v27 = vld [vmem:[%s18695_s1 + $0xe60] ss:$16 sps:$4 sm:$0xff]   ;;  %v13724_v7 = vld [vmem:[%s18695_s1 + $0xc68] ss:$16 sps:$4 sm:$0xff]  }
 0x308   :  { %6595 = vmatprep.subr.bf16.mxu0 %v13714_v8  ;;  %8139 = vmatprep.subr.bf16.mxu1 %v13717_v55  ;;  %v16994_v8 = vld [vmem:[%s18694_s0 + $0x150] ss:$72 sps:$4 sm:$0xff]   ;;  %v16999_v55 = vld [vmem:[%s18694_s0 + $0x1e4] ss:$72 sps:$4 sm:$0xff]  }
 0x30a   :  { %6441 = vmatmul.mubr.bf16.gmra.mrb[4].mxu0 %v16956_v12  ;;  %7985 = vmatmul.mubr.bf16.gmra.mrb[36].mxu1 %v16540_v23  ;;  %v13732_v23 = vld [vmem:[%s18695_s1 + $0xe84] ss:$16 sps:$4 sm:$0xff]  }
 0x30b   :  { %6450 = vmatprep.mubr.bf16.mxu0 %v16961_v42  ;;  %7994 = vmatprep.mubr.bf16.mxu1 %v16545_v13  ;;  %v13735_v13 = vld [vmem:[%s18695_s1 + $0xc8c] ss:$16 sps:$4 sm:$0xff]  }
 0x30c   :  { %6596 = vmatpush1.bf16.msra.mxu0 %v13712_v4  ;;  %8140 = vmatpush1.bf16.msra.mxu1 %v13715_v21  ;;  %v13730_v4 = vld [vmem:[%s18695_s1 + $0xe80] ss:$16 sps:$4 sm:$0xff]   ;;  %v13733_v21 = vld [vmem:[%s18695_s1 + $0xc88] ss:$16 sps:$4 sm:$0xff]  }
 0x30d   :  { %6597 = vmatprep.subr.bf16.mxu0 %v13723_v34  ;;  %8141 = vmatprep.subr.bf16.mxu1 %v13726_v10  ;;  %v13741_v34 = vld [vmem:[%s18695_s1 + $0xea4] ss:$16 sps:$4 sm:$0xff]   ;;  %v13744_v10 = vld [vmem:[%s18695_s1 + $0xcac] ss:$16 sps:$4 sm:$0xff]  }
 0x310   :  { %6598 = vmatpush1.bf16.msra.mxu0 %v13721_v27  ;;  %8142 = vmatpush1.bf16.msra.mxu1 %v13724_v7  ;;  %v13739_v27 = vld [vmem:[%s18695_s1 + $0xea0] ss:$16 sps:$4 sm:$0xff]   ;;  %v13742_v7 = vld [vmem:[%s18695_s1 + $0xca8] ss:$16 sps:$4 sm:$0xff]  }
 0x311   :  { %6599 = vmatprep.subr.bf16.mxu0 %v13732_v23  ;;  %8143 = vmatprep.subr.bf16.mxu1 %v13735_v13  ;;  %v17032_v23 = vld [vmem:[%s18694_s0 + $0x1e0] ss:$72 sps:$4 sm:$0xff]   ;;  %v17037_v13 = vld [vmem:[%s18694_s0 + $0x274] ss:$72 sps:$4 sm:$0xff]  }
 0x312   :  { %6451 = vmatmul.mubr.bf16.gmra.mrb[8].mxu0 %v16994_v8  ;;  %7995 = vmatmul.mubr.bf16.gmra.mrb[40].mxu1 %v16578_v25  ;;  %v13750_v25 = vld [vmem:[%s18695_s1 + $0xec4] ss:$16 sps:$4 sm:$0xff]  }
 0x313   :  { %6460 = vmatprep.mubr.bf16.mxu0 %v16999_v55  ;;  %8004 = vmatprep.mubr.bf16.mxu1 %v16583_v16  ;;  %v13753_v16 = vld [vmem:[%s18695_s1 + $0xccc] ss:$16 sps:$4 sm:$0xff]  }
 0x314   :  { %6600 = vmatpush1.bf16.msra.mxu0 %v13730_v4  ;;  %8144 = vmatpush1.bf16.msra.mxu1 %v13733_v21  ;;  %v13748_v4 = vld [vmem:[%s18695_s1 + $0xec0] ss:$16 sps:$4 sm:$0xff]   ;;  %v13751_v21 = vld [vmem:[%s18695_s1 + $0xcc8] ss:$16 sps:$4 sm:$0xff]  }
 0x315   :  { %6601 = vmatprep.subr.bf16.mxu0 %v13741_v34  ;;  %8145 = vmatprep.subr.bf16.mxu1 %v13744_v10  ;;  %v13759_v34 = vld [vmem:[%s18695_s1 + $0xee4] ss:$16 sps:$4 sm:$0xff]   ;;  %v13762_v10 = vld [vmem:[%s18695_s1 + $0xcec] ss:$16 sps:$4 sm:$0xff]  }
 0x318   :  { %6602 = vmatpush1.bf16.msra.mxu0 %v13739_v27  ;;  %8146 = vmatpush1.bf16.msra.mxu1 %v13742_v7  ;;  %v13757_v27 = vld [vmem:[%s18695_s1 + $0xee0] ss:$16 sps:$4 sm:$0xff]   ;;  %v13760_v7 = vld [vmem:[%s18695_s1 + $0xce8] ss:$16 sps:$4 sm:$0xff]  }
 0x319   :  { %6603 = vmatprep.subr.bf16.mxu0 %v13750_v25  ;;  %8147 = vmatprep.subr.bf16.mxu1 %v13753_v16  ;;  %v17070_v25 = vld [vmem:[%s18694_s0 + $0x270] ss:$72 sps:$4 sm:$0xff]   ;;  %v17075_v16 = vld [vmem:[%s18694_s0 + $0x304] ss:$72 sps:$4 sm:$0xff]  }
 0x31a   :  { %6461 = vmatmul.mubr.bf16.gmra.mrb[12].mxu0 %v17032_v23  ;;  %8005 = vmatmul.mubr.bf16.gmra.mrb[44].mxu1 %v16616_v60  ;;  %v13768_v60 = vld [vmem:[%s18695_s1 + $0xf04] ss:$16 sps:$4 sm:$0xff]  }
 0x31b   :  { %6470 = vmatprep.mubr.bf16.mxu0 %v17037_v13  ;;  %8014 = vmatprep.mubr.bf16.mxu1 %v16621_v6  ;;  %v13771_v6 = vld [vmem:[%s18695_s1 + $0xd0c] ss:$16 sps:$4 sm:$0xff]  }
 0x31c   :  { %6604 = vmatpush1.bf16.msra.mxu0 %v13748_v4  ;;  %8148 = vmatpush1.bf16.msra.mxu1 %v13751_v21  ;;  %v13766_v4 = vld [vmem:[%s18695_s1 + $0xf00] ss:$16 sps:$4 sm:$0xff]   ;;  %v13769_v21 = vld [vmem:[%s18695_s1 + $0xd08] ss:$16 sps:$4 sm:$0xff]  }
 0x31d   :  { %6605 = vmatprep.subr.bf16.mxu0 %v13759_v34  ;;  %8149 = vmatprep.subr.bf16.mxu1 %v13762_v10  ;;  %v13777_v34 = vld [vmem:[%s18695_s1 + $0xf24] ss:$16 sps:$4 sm:$0xff]   ;;  %v13780_v10 = vld [vmem:[%s18695_s1 + $0xd2c] ss:$16 sps:$4 sm:$0xff]  }
 0x320   :  { %6606 = vmatpush1.bf16.msra.mxu0 %v13757_v27  ;;  %8150 = vmatpush1.bf16.msra.mxu1 %v13760_v7  ;;  %v13775_v27 = vld [vmem:[%s18695_s1 + $0xf20] ss:$16 sps:$4 sm:$0xff]   ;;  %v13778_v7 = vld [vmem:[%s18695_s1 + $0xd28] ss:$16 sps:$4 sm:$0xff]  }
 0x321   :  { %6607 = vmatprep.subr.bf16.mxu0 %v13768_v60  ;;  %8151 = vmatprep.subr.bf16.mxu1 %v13771_v6  ;;  %v17108_v60 = vld [vmem:[%s18694_s0 + $0x300] ss:$72 sps:$4 sm:$0xff]   ;;  %v17113_v6 = vld [vmem:[%s18694_s0 + $0x394] ss:$72 sps:$4 sm:$0xff]  }
 0x322   :  { %6471 = vmatmul.mubr.bf16.gmra.mrb[16].mxu0 %v17070_v25  ;;  %8015 = vmatmul.mubr.bf16.gmra.mrb[48].mxu1 %v16654_v18  ;;  %v13786_v18 = vld [vmem:[%s18695_s1 + $0xf44] ss:$16 sps:$4 sm:$0xff]  }
 0x323   :  { %6480 = vmatprep.mubr.bf16.mxu0 %v17075_v16  ;;  %8024 = vmatprep.mubr.bf16.mxu1 %v16659_v51  ;;  %v13789_v51 = vld [vmem:[%s18695_s1 + $0xd4c] ss:$16 sps:$4 sm:$0xff]  }
 0x324   :  { %6608 = vmatpush1.bf16.msra.mxu0 %v13766_v4  ;;  %8152 = vmatpush1.bf16.msra.mxu1 %v13769_v21  ;;  %v13784_v4 = vld [vmem:[%s18695_s1 + $0xf40] ss:$16 sps:$4 sm:$0xff]   ;;  %v13787_v21 = vld [vmem:[%s18695_s1 + $0xd48] ss:$16 sps:$4 sm:$0xff]  }
 0x325   :  { %6609 = vmatprep.subr.bf16.mxu0 %v13777_v34  ;;  %8153 = vmatprep.subr.bf16.mxu1 %v13780_v10  ;;  %v13795_v34 = vld [vmem:[%s18695_s1 + $0xf64] ss:$16 sps:$4 sm:$0xff]   ;;  %v13798_v10 = vld [vmem:[%s18695_s1 + $0xd6c] ss:$16 sps:$4 sm:$0xff]  }
 0x328   :  { %6610 = vmatpush1.bf16.msra.mxu0 %v13775_v27  ;;  %8154 = vmatpush1.bf16.msra.mxu1 %v13778_v7  ;;  %v13793_v27 = vld [vmem:[%s18695_s1 + $0xf60] ss:$16 sps:$4 sm:$0xff]   ;;  %v13796_v7 = vld [vmem:[%s18695_s1 + $0xd68] ss:$16 sps:$4 sm:$0xff]  }
 0x329   :  { %6611 = vmatprep.subr.bf16.mxu0 %v13786_v18  ;;  %8155 = vmatprep.subr.bf16.mxu1 %v13789_v51  ;;  %v17146_v18 = vld [vmem:[%s18694_s0 + $0x390] ss:$72 sps:$4 sm:$0xff]   ;;  %v17151_v51 = vld [vmem:[%s18694_s0 + $0x424] ss:$72 sps:$4 sm:$0xff]  }
 0x32a   :  { %6481 = vmatmul.mubr.bf16.gmra.mrb[20].mxu0 %v17108_v60  ;;  %8025 = vmatmul.mubr.bf16.gmra.mrb[52].mxu1 %v16692_v26  ;;  %v13804_v26 = vld [vmem:[%s18695_s1 + $0xf84] ss:$16 sps:$4 sm:$0xff]  }
 0x32b   :  { %6490 = vmatprep.mubr.bf16.mxu0 %v17113_v6  ;;  %8034 = vmatprep.mubr.bf16.mxu1 %v16697_v46  ;;  %v13807_v46 = vld [vmem:[%s18695_s1 + $0xd8c] ss:$16 sps:$4 sm:$0xff]  }
 0x32c   :  { %6612 = vmatpush1.bf16.msra.mxu0 %v13784_v4  ;;  %8156 = vmatpush1.bf16.msra.mxu1 %v13787_v21  ;;  %v13802_v4 = vld [vmem:[%s18695_s1 + $0xf80] ss:$16 sps:$4 sm:$0xff]   ;;  %v13805_v21 = vld [vmem:[%s18695_s1 + $0xd88] ss:$16 sps:$4 sm:$0xff]  }
 0x32d   :  { %6613 = vmatprep.subr.bf16.mxu0 %v13795_v34  ;;  %8157 = vmatprep.subr.bf16.mxu1 %v13798_v10  ;;  %v13813_v34 = vld [vmem:[%s18695_s1 + $0xfa4] ss:$16 sps:$4 sm:$0xff]   ;;  %v13816_v10 = vld [vmem:[%s18695_s1 + $0xdac] ss:$16 sps:$4 sm:$0xff]  }
 0x330   :  { %6614 = vmatpush1.bf16.msra.mxu0 %v13793_v27  ;;  %8158 = vmatpush1.bf16.msra.mxu1 %v13796_v7  ;;  %v13811_v27 = vld [vmem:[%s18695_s1 + $0xfa0] ss:$16 sps:$4 sm:$0xff]   ;;  %v13814_v7 = vld [vmem:[%s18695_s1 + $0xda8] ss:$16 sps:$4 sm:$0xff]  }
 0x331   :  { %6615 = vmatprep.subr.bf16.mxu0 %v13804_v26  ;;  %8159 = vmatprep.subr.bf16.mxu1 %v13807_v46  ;;  %v17184_v26 = vld [vmem:[%s18694_s0 + $0x420] ss:$72 sps:$4 sm:$0xff]   ;;  %v17189_v46 = vld [vmem:[%s18694_s0 + $0x4b4] ss:$72 sps:$4 sm:$0xff]  }
 0x332   :  { %6491 = vmatmul.mubr.bf16.gmra.mrb[24].mxu0 %v17146_v18  ;;  %8035 = vmatmul.mubr.bf16.gmra.mrb[56].mxu1 %v16730_v44  ;;  %v13822_v44 = vld [vmem:[%s18695_s1 + $0xfc4] ss:$16 sps:$4 sm:$0xff]  }
 0x333   :  { %6500 = vmatprep.mubr.bf16.mxu0 %v17151_v51  ;;  %8044 = vmatprep.mubr.bf16.mxu1 %v16735_v45  ;;  %v13825_v45 = vld [vmem:[%s18695_s1 + $0xdcc] ss:$16 sps:$4 sm:$0xff]  }
 0x334   :  { %6616 = vmatpush1.bf16.msra.mxu0 %v13802_v4  ;;  %8160 = vmatpush1.bf16.msra.mxu1 %v13805_v21  ;;  %v13820_v4 = vld [vmem:[%s18695_s1 + $0xfc0] ss:$16 sps:$4 sm:$0xff]   ;;  %v13823_v21 = vld [vmem:[%s18695_s1 + $0xdc8] ss:$16 sps:$4 sm:$0xff]  }
 0x335   :  { %6617 = vmatprep.subr.bf16.mxu0 %v13813_v34  ;;  %8161 = vmatprep.subr.bf16.mxu1 %v13816_v10  ;;  %v13831_v34 = vld [vmem:[%s18695_s1 + $0xfe4] ss:$16 sps:$4 sm:$0xff]   ;;  %v13834_v10 = vld [vmem:[%s18695_s1 + $0xdec] ss:$16 sps:$4 sm:$0xff]  }
 0x338   :  { %6618 = vmatpush1.bf16.msra.mxu0 %v13811_v27  ;;  %8162 = vmatpush1.bf16.msra.mxu1 %v13814_v7  ;;  %v13829_v27 = vld [vmem:[%s18695_s1 + $0xfe0] ss:$16 sps:$4 sm:$0xff]   ;;  %v13832_v7 = vld [vmem:[%s18695_s1 + $0xde8] ss:$16 sps:$4 sm:$0xff]  }
 0x339   :  { %6619 = vmatprep.subr.bf16.mxu0 %v13822_v44  ;;  %8163 = vmatprep.subr.bf16.mxu1 %v13825_v45  ;;  %v17222_v44 = vld [vmem:[%s18694_s0 + $0x4b0] ss:$72 sps:$4 sm:$0xff]   ;;  %v17227_v45 = vld [vmem:[%s18694_s0 + $0x544] ss:$72 sps:$4 sm:$0xff]  }
 0x33a   :  { %6501 = vmatmul.mubr.bf16.gmra.mrb[28].mxu0 %v17184_v26  ;;  %8045 = vmatmul.mubr.bf16.gmra.mrb[60].mxu1 %v16768_v40  ;;  %v13840_v40 = vld [vmem:[%s18695_s1 + $0x1004] ss:$16 sps:$4 sm:$0xff]  }
 0x33b   :  { %6510 = vmatprep.mubr.bf16.mxu0 %v17189_v46  ;;  %8054 = vmatprep.mubr.bf16.mxu1 %v16773_v11  ;;  %v13843_v11 = vld [vmem:[%s18695_s1 + $0xe0c] ss:$16 sps:$4 sm:$0xff]  }
 0x33c   :  { %6620 = vmatpush1.bf16.msra.mxu0 %v13820_v4  ;;  %8164 = vmatpush1.bf16.msra.mxu1 %v13823_v21  ;;  %v17236_v4 = vld [vmem:[%s18694_s0 + $0x540] ss:$72 sps:$4 sm:$0xff]   ;;  %v17241_v21 = vld [vmem:[%s18694_s0 + $0x5d4] ss:$72 sps:$4 sm:$0xff]  }
 0x33d   :  { %6621 = vmatprep.subr.bf16.mxu0 %v13831_v34  ;;  %8165 = vmatprep.subr.bf16.mxu1 %v13834_v10  ;;  %v13841_v34 = vld [vmem:[%s18695_s1 + $0xe08] ss:$16 sps:$4 sm:$0xff]   ;;  %v13852_v10 = vld [vmem:[%s18695_s1 + $0xe2c] ss:$16 sps:$4 sm:$0xff]  }
 0x340   :  { %6622 = vmatpush1.bf16.msra.mxu0 %v13829_v27  ;;  %8166 = vmatpush1.bf16.msra.mxu1 %v13832_v7  ;;  %v13847_v27 = vld [vmem:[%s18695_s1 + $0x1020] ss:$16 sps:$4 sm:$0xff]   ;;  %v13850_v7 = vld [vmem:[%s18695_s1 + $0xe28] ss:$16 sps:$4 sm:$0xff]  }
 0x341   :  { %6784 = vmatprep.subr.bf16.mxu0 %v13840_v40  ;;  %8328 = vmatprep.subr.bf16.mxu1 %v13843_v11  ;;  %v13858_v40 = vld [vmem:[%s18695_s1 + $0x1044] ss:$16 sps:$4 sm:$0xff]   ;;  %v17372_v11 = vld [vmem:[%s18694_s0 + $0xc8] ss:$72 sps:$4 sm:$0xff]  }
 0x342   :  { %6511 = vmatmul.mubr.bf16.gmra.mrb[32].mxu0 %v17222_v44  ;;  %8055 = vmatmul.mubr.bf16.gmra.mrb[64].mxu1 %v16806_v54  ;;  %v17250_v54 = vld [vmem:[%s18694_s0 + $0x5d0] ss:$72 sps:$4 sm:$0xff]  }
 0x343   :  { %6520 = vmatprep.mubr.bf16.mxu0 %v17227_v45  ;;  %8064 = vmatprep.mubr.bf16.mxu1 %v16811_v62  ;;  %v17255_v62 = vld [vmem:[%s18694_s0 + $0x664] ss:$72 sps:$4 sm:$0xff]  }
 0x34a   :  { %6521 = vmatmul.mubr.bf16.gmra.mrb[36].mxu0 %v17236_v4  ;;  %8065 = vmatmul.mubr.bf16.gmra.mrb[68].mxu1 %v16820_v29  ;;  %v17264_v29 = vld [vmem:[%s18694_s0 + $0x660] ss:$72 sps:$4 sm:$0xff]  }
 0x34b   :  { %6530 = vmatprep.mubr.bf16.mxu0 %v17241_v21  ;;  %8074 = vmatprep.mubr.bf16.mxu1 %v16825_v14  ;;  %v17269_v14 = vld [vmem:[%s18694_s0 + $0x6f4] ss:$72 sps:$4 sm:$0xff]  }
 0x352   :  { %6531 = vmatmul.mubr.bf16.gmra.mrb[40].mxu0 %v17250_v54  ;;  %8075 = vmatmul.mubr.bf16.gmra.mrb[72].mxu1 %v16834_v41  ;;  %v17278_v41 = vld [vmem:[%s18694_s0 + $0x6f0] ss:$72 sps:$4 sm:$0xff]  }
 0x353   :  { %6540 = vmatprep.mubr.bf16.mxu0 %v17255_v62  ;;  %8084 = vmatprep.mubr.bf16.mxu1 %v16839_v59  ;;  %v17283_v59 = vld [vmem:[%s18694_s0 + $0x784] ss:$72 sps:$4 sm:$0xff]  }
 0x35a   :  { %6541 = vmatmul.mubr.bf16.gmra.mrb[44].mxu0 %v17264_v29  ;;  %8085 = vmatmul.mubr.bf16.gmra.mrb[76].mxu1 %v16848_v20  ;;  %v17292_v20 = vld [vmem:[%s18694_s0 + $0x780] ss:$72 sps:$4 sm:$0xff]  }
 0x35b   :  { %6550 = vmatprep.mubr.bf16.mxu0 %v17269_v14  ;;  %8094 = vmatprep.mubr.bf16.mxu1 %v16853_v5  ;;  %v17297_v5 = vld [vmem:[%s18694_s0 + $0x814] ss:$72 sps:$4 sm:$0xff]  }
 0x362   :  { %6551 = vmatmul.mubr.bf16.gmra.mrb[48].mxu0 %v17278_v41  ;;  %8095 = vmatmul.mubr.bf16.gmra.mrb[80].mxu1 %v16862_v53  ;;  %v17306_v53 = vld [vmem:[%s18694_s0 + $0x810] ss:$72 sps:$4 sm:$0xff]  }
 0x363   :  { %6560 = vmatprep.mubr.bf16.mxu0 %v17283_v59  ;;  %8104 = vmatprep.mubr.bf16.mxu1 %v16867_v57  ;;  %v17311_v57 = vld [vmem:[%s18694_s0 + $0x8a4] ss:$72 sps:$4 sm:$0xff]  }
 0x36a   :  { %6561 = vmatmul.mubr.bf16.gmra.mrb[52].mxu0 %v17292_v20  ;;  %8105 = vmatmul.mubr.bf16.gmra.mrb[84].mxu1 %v16876_v17  ;;  %v17320_v17 = vld [vmem:[%s18694_s0 + $0x8a0] ss:$72 sps:$4 sm:$0xff]  }
 0x36b   :  { %6570 = vmatprep.mubr.bf16.mxu0 %v17297_v5  ;;  %8114 = vmatprep.mubr.bf16.mxu1 %v16881_v19  ;;  %v17325_v19 = vld [vmem:[%s18694_s0 + $0x3c] ss:$72 sps:$4 sm:$0xff]  }
 0x372   :  { %6571 = vmatmul.mubr.bf16.gmra.mrb[56].mxu0 %v17306_v53  ;;  %8115 = vmatmul.mubr.bf16.gmra.mrb[88].mxu1 %v16890_v30  ;;  %v17334_v30 = vld [vmem:[%s18694_s0 + $0x38] ss:$72 sps:$4 sm:$0xff]  }
 0x373   :  { %6580 = vmatprep.mubr.bf16.mxu0 %v17311_v57  ;;  %8124 = vmatprep.mubr.bf16.mxu1 %v16895_v47  ;;  %v13838_v47 = vld [vmem:[%s18695_s1 + $0x1000] ss:$16 sps:$4 sm:$0xff]  }
 0x37a   :  { %6581 = vmatmul.mubr.bf16.gmra.mrb[60].mxu0 %v17320_v17  ;;  %8125 = vmatmul.mubr.bf16.gmra.mrb[92].mxu1 %v16904_v49  ;;  %v17345_v49 = vld [vmem:[%s18694_s0 + $0xcc] ss:$72 sps:$4 sm:$0xff]  }
 0x37b   :  { %6623 = vmatprep.mubr.bf16.mxu0 %v17325_v19  ;;  %8167 = vmatprep.mubr.bf16.mxu1 %v16909_v50  ;;  %v13849_v50 = vld [vmem:[%s18695_s1 + $0x1024] ss:$16 sps:$4 sm:$0xff]  }
 0x382   :  { %6624 = vmatmul.mubr.bf16.vlgmr.msra.gmra.mrb[0].mxu0 %v17334_v30  ;;  %8168 = vmatmul.mubr.bf16.vlgmr.msra.gmra.mrb[32].mxu1 %v16918_v1  ;;  %v13861_v1 = vld [vmem:[%s18695_s1 + $0xe4c] ss:$16 sps:$4 sm:$0xff]  }
 0x383   :  { %6785 = vmatpush1.bf16.msra.mxu0 %v13838_v47  ;;  %8329 = vmatpush1.bf16.msra.mxu1 %v13841_v34  ;;  %v13856_v47 = vld [vmem:[%s18695_s1 + $0x1040] ss:$16 sps:$4 sm:$0xff]   ;;  %v13859_v34 = vld [vmem:[%s18695_s1 + $0xe48] ss:$16 sps:$4 sm:$0xff]  }
 0x384   :  { %6633 = vmatprep.mubr.bf16.mxu0 %v17345_v49  ;;  %8177 = vmatprep.mubr.bf16.mxu1 %v16929_v33  ;;  %v17377_v33 = vld [vmem:[%s18694_s0 + $0x15c] ss:$72 sps:$4 sm:$0xff]  }
 0x385   :  { %6786 = vmatprep.subr.bf16.mxu0 %v13849_v50  ;;  %8330 = vmatprep.subr.bf16.mxu1 %v13852_v10  ;;  %v13867_v50 = vld [vmem:[%s18695_s1 + $0x1064] ss:$16 sps:$4 sm:$0xff]   ;;  %v13870_v10 = vld [vmem:[%s18695_s1 + $0xe6c] ss:$16 sps:$4 sm:$0xff]  }
 0x387   :  { %6787 = vmatpush1.bf16.msra.mxu0 %v13847_v27  ;;  %8331 = vmatpush1.bf16.msra.mxu1 %v13850_v7  ;;  %v13865_v27 = vld [vmem:[%s18695_s1 + $0x1060] ss:$16 sps:$4 sm:$0xff]   ;;  %v13868_v7 = vld [vmem:[%s18695_s1 + $0xe68] ss:$16 sps:$4 sm:$0xff]  }
 0x388   :  { %6788 = vmatprep.subr.bf16.mxu0 %v13858_v40  ;;  %8332 = vmatprep.subr.bf16.mxu1 %v13861_v1  ;;  %v17410_v40 = vld [vmem:[%s18694_s0 + $0x158] ss:$72 sps:$4 sm:$0xff]   ;;  %v17415_v1 = vld [vmem:[%s18694_s0 + $0x1ec] ss:$72 sps:$4 sm:$0xff]  }
 0x38a   :  { %6634 = vmatmul.mubr.bf16.gmra.mrb[4].mxu0 %v17372_v11  ;;  %8178 = vmatmul.mubr.bf16.gmra.mrb[36].mxu1 %v16956_v12  ;;  %v13876_v12 = vld [vmem:[%s18695_s1 + $0x1084] ss:$16 sps:$4 sm:$0xff]  }
 0x38b   :  { %6643 = vmatprep.mubr.bf16.mxu0 %v17377_v33  ;;  %8187 = vmatprep.mubr.bf16.mxu1 %v16961_v42  ;;  %v13879_v42 = vld [vmem:[%s18695_s1 + $0xe8c] ss:$16 sps:$4 sm:$0xff]  }
 0x38c   :  { %6789 = vmatpush1.bf16.msra.mxu0 %v13856_v47  ;;  %8333 = vmatpush1.bf16.msra.mxu1 %v13859_v34  ;;  %v13874_v47 = vld [vmem:[%s18695_s1 + $0x1080] ss:$16 sps:$4 sm:$0xff]   ;;  %v13877_v34 = vld [vmem:[%s18695_s1 + $0xe88] ss:$16 sps:$4 sm:$0xff]  }
 0x38d   :  { %6790 = vmatprep.subr.bf16.mxu0 %v13867_v50  ;;  %8334 = vmatprep.subr.bf16.mxu1 %v13870_v10  ;;  %v13885_v50 = vld [vmem:[%s18695_s1 + $0x10a4] ss:$16 sps:$4 sm:$0xff]   ;;  %v13888_v10 = vld [vmem:[%s18695_s1 + $0xeac] ss:$16 sps:$4 sm:$0xff]  }
 0x390   :  { %6791 = vmatpush1.bf16.msra.mxu0 %v13865_v27  ;;  %8335 = vmatpush1.bf16.msra.mxu1 %v13868_v7  ;;  %v13883_v27 = vld [vmem:[%s18695_s1 + $0x10a0] ss:$16 sps:$4 sm:$0xff]   ;;  %v13886_v7 = vld [vmem:[%s18695_s1 + $0xea8] ss:$16 sps:$4 sm:$0xff]  }
 0x391   :  { %6792 = vmatprep.subr.bf16.mxu0 %v13876_v12  ;;  %8336 = vmatprep.subr.bf16.mxu1 %v13879_v42  ;;  %v17448_v12 = vld [vmem:[%s18694_s0 + $0x1e8] ss:$72 sps:$4 sm:$0xff]   ;;  %v17453_v42 = vld [vmem:[%s18694_s0 + $0x27c] ss:$72 sps:$4 sm:$0xff]  }
 0x392   :  { %6644 = vmatmul.mubr.bf16.gmra.mrb[8].mxu0 %v17410_v40  ;;  %8188 = vmatmul.mubr.bf16.gmra.mrb[40].mxu1 %v16994_v8  ;;  %v13894_v8 = vld [vmem:[%s18695_s1 + $0x10c4] ss:$16 sps:$4 sm:$0xff]  }
 0x393   :  { %6653 = vmatprep.mubr.bf16.mxu0 %v17415_v1  ;;  %8197 = vmatprep.mubr.bf16.mxu1 %v16999_v55  ;;  %v13897_v55 = vld [vmem:[%s18695_s1 + $0xecc] ss:$16 sps:$4 sm:$0xff]  }
 0x394   :  { %6793 = vmatpush1.bf16.msra.mxu0 %v13874_v47  ;;  %8337 = vmatpush1.bf16.msra.mxu1 %v13877_v34  ;;  %v13892_v47 = vld [vmem:[%s18695_s1 + $0x10c0] ss:$16 sps:$4 sm:$0xff]   ;;  %v13895_v34 = vld [vmem:[%s18695_s1 + $0xec8] ss:$16 sps:$4 sm:$0xff]  }
 0x395   :  { %6794 = vmatprep.subr.bf16.mxu0 %v13885_v50  ;;  %8338 = vmatprep.subr.bf16.mxu1 %v13888_v10  ;;  %v13903_v50 = vld [vmem:[%s18695_s1 + $0x10e4] ss:$16 sps:$4 sm:$0xff]   ;;  %v13906_v10 = vld [vmem:[%s18695_s1 + $0xeec] ss:$16 sps:$4 sm:$0xff]  }
 0x398   :  { %6795 = vmatpush1.bf16.msra.mxu0 %v13883_v27  ;;  %8339 = vmatpush1.bf16.msra.mxu1 %v13886_v7  ;;  %v13901_v27 = vld [vmem:[%s18695_s1 + $0x10e0] ss:$16 sps:$4 sm:$0xff]   ;;  %v13904_v7 = vld [vmem:[%s18695_s1 + $0xee8] ss:$16 sps:$4 sm:$0xff]  }
 0x399   :  { %6796 = vmatprep.subr.bf16.mxu0 %v13894_v8  ;;  %8340 = vmatprep.subr.bf16.mxu1 %v13897_v55  ;;  %v17486_v8 = vld [vmem:[%s18694_s0 + $0x278] ss:$72 sps:$4 sm:$0xff]   ;;  %v17491_v55 = vld [vmem:[%s18694_s0 + $0x30c] ss:$72 sps:$4 sm:$0xff]  }
 0x39a   :  { %6654 = vmatmul.mubr.bf16.gmra.mrb[12].mxu0 %v17448_v12  ;;  %8198 = vmatmul.mubr.bf16.gmra.mrb[44].mxu1 %v17032_v23  ;;  %v13912_v23 = vld [vmem:[%s18695_s1 + $0x1104] ss:$16 sps:$4 sm:$0xff]  }
 0x39b   :  { %6663 = vmatprep.mubr.bf16.mxu0 %v17453_v42  ;;  %8207 = vmatprep.mubr.bf16.mxu1 %v17037_v13  ;;  %v13915_v13 = vld [vmem:[%s18695_s1 + $0xf0c] ss:$16 sps:$4 sm:$0xff]  }
 0x39c   :  { %6797 = vmatpush1.bf16.msra.mxu0 %v13892_v47  ;;  %8341 = vmatpush1.bf16.msra.mxu1 %v13895_v34  ;;  %v13910_v47 = vld [vmem:[%s18695_s1 + $0x1100] ss:$16 sps:$4 sm:$0xff]   ;;  %v13913_v34 = vld [vmem:[%s18695_s1 + $0xf08] ss:$16 sps:$4 sm:$0xff]  }
 0x39d   :  { %6798 = vmatprep.subr.bf16.mxu0 %v13903_v50  ;;  %8342 = vmatprep.subr.bf16.mxu1 %v13906_v10  ;;  %v13921_v50 = vld [vmem:[%s18695_s1 + $0x1124] ss:$16 sps:$4 sm:$0xff]   ;;  %v13924_v10 = vld [vmem:[%s18695_s1 + $0xf2c] ss:$16 sps:$4 sm:$0xff]  }
 0x3a0   :  { %6799 = vmatpush1.bf16.msra.mxu0 %v13901_v27  ;;  %8343 = vmatpush1.bf16.msra.mxu1 %v13904_v7  ;;  %v13919_v27 = vld [vmem:[%s18695_s1 + $0x1120] ss:$16 sps:$4 sm:$0xff]   ;;  %v13922_v7 = vld [vmem:[%s18695_s1 + $0xf28] ss:$16 sps:$4 sm:$0xff]  }
 0x3a1   :  { %6800 = vmatprep.subr.bf16.mxu0 %v13912_v23  ;;  %8344 = vmatprep.subr.bf16.mxu1 %v13915_v13  ;;  %v17524_v23 = vld [vmem:[%s18694_s0 + $0x308] ss:$72 sps:$4 sm:$0xff]   ;;  %v17529_v13 = vld [vmem:[%s18694_s0 + $0x39c] ss:$72 sps:$4 sm:$0xff]  }
 0x3a2   :  { %6664 = vmatmul.mubr.bf16.gmra.mrb[16].mxu0 %v17486_v8  ;;  %8208 = vmatmul.mubr.bf16.gmra.mrb[48].mxu1 %v17070_v25  ;;  %v13930_v25 = vld [vmem:[%s18695_s1 + $0x1144] ss:$16 sps:$4 sm:$0xff]  }
 0x3a3   :  { %6673 = vmatprep.mubr.bf16.mxu0 %v17491_v55  ;;  %8217 = vmatprep.mubr.bf16.mxu1 %v17075_v16  ;;  %v13933_v16 = vld [vmem:[%s18695_s1 + $0xf4c] ss:$16 sps:$4 sm:$0xff]  }
 0x3a4   :  { %6801 = vmatpush1.bf16.msra.mxu0 %v13910_v47  ;;  %8345 = vmatpush1.bf16.msra.mxu1 %v13913_v34  ;;  %v13928_v47 = vld [vmem:[%s18695_s1 + $0x1140] ss:$16 sps:$4 sm:$0xff]   ;;  %v13931_v34 = vld [vmem:[%s18695_s1 + $0xf48] ss:$16 sps:$4 sm:$0xff]  }
 0x3a5   :  { %6802 = vmatprep.subr.bf16.mxu0 %v13921_v50  ;;  %8346 = vmatprep.subr.bf16.mxu1 %v13924_v10  ;;  %v13939_v50 = vld [vmem:[%s18695_s1 + $0x1164] ss:$16 sps:$4 sm:$0xff]   ;;  %v13942_v10 = vld [vmem:[%s18695_s1 + $0xf6c] ss:$16 sps:$4 sm:$0xff]  }
 0x3a8   :  { %6803 = vmatpush1.bf16.msra.mxu0 %v13919_v27  ;;  %8347 = vmatpush1.bf16.msra.mxu1 %v13922_v7  ;;  %v13937_v27 = vld [vmem:[%s18695_s1 + $0x1160] ss:$16 sps:$4 sm:$0xff]   ;;  %v13940_v7 = vld [vmem:[%s18695_s1 + $0xf68] ss:$16 sps:$4 sm:$0xff]  }
 0x3a9   :  { %6804 = vmatprep.subr.bf16.mxu0 %v13930_v25  ;;  %8348 = vmatprep.subr.bf16.mxu1 %v13933_v16  ;;  %v17562_v25 = vld [vmem:[%s18694_s0 + $0x398] ss:$72 sps:$4 sm:$0xff]   ;;  %v17567_v16 = vld [vmem:[%s18694_s0 + $0x42c] ss:$72 sps:$4 sm:$0xff]  }
 0x3aa   :  { %6674 = vmatmul.mubr.bf16.gmra.mrb[20].mxu0 %v17524_v23  ;;  %8218 = vmatmul.mubr.bf16.gmra.mrb[52].mxu1 %v17108_v60  ;;  %v13948_v60 = vld [vmem:[%s18695_s1 + $0x1184] ss:$16 sps:$4 sm:$0xff]  }
 0x3ab   :  { %6683 = vmatprep.mubr.bf16.mxu0 %v17529_v13  ;;  %8227 = vmatprep.mubr.bf16.mxu1 %v17113_v6  ;;  %v13951_v6 = vld [vmem:[%s18695_s1 + $0xf8c] ss:$16 sps:$4 sm:$0xff]  }
 0x3ac   :  { %6805 = vmatpush1.bf16.msra.mxu0 %v13928_v47  ;;  %8349 = vmatpush1.bf16.msra.mxu1 %v13931_v34  ;;  %v13946_v47 = vld [vmem:[%s18695_s1 + $0x1180] ss:$16 sps:$4 sm:$0xff]   ;;  %v13949_v34 = vld [vmem:[%s18695_s1 + $0xf88] ss:$16 sps:$4 sm:$0xff]  }
 0x3ad   :  { %6806 = vmatprep.subr.bf16.mxu0 %v13939_v50  ;;  %8350 = vmatprep.subr.bf16.mxu1 %v13942_v10  ;;  %v13957_v50 = vld [vmem:[%s18695_s1 + $0x11a4] ss:$16 sps:$4 sm:$0xff]   ;;  %v13960_v10 = vld [vmem:[%s18695_s1 + $0xfac] ss:$16 sps:$4 sm:$0xff]  }
 0x3b0   :  { %6807 = vmatpush1.bf16.msra.mxu0 %v13937_v27  ;;  %8351 = vmatpush1.bf16.msra.mxu1 %v13940_v7  ;;  %v13955_v27 = vld [vmem:[%s18695_s1 + $0x11a0] ss:$16 sps:$4 sm:$0xff]   ;;  %v13958_v7 = vld [vmem:[%s18695_s1 + $0xfa8] ss:$16 sps:$4 sm:$0xff]  }
 0x3b1   :  { %6808 = vmatprep.subr.bf16.mxu0 %v13948_v60  ;;  %8352 = vmatprep.subr.bf16.mxu1 %v13951_v6  ;;  %v17600_v60 = vld [vmem:[%s18694_s0 + $0x428] ss:$72 sps:$4 sm:$0xff]   ;;  %v17605_v6 = vld [vmem:[%s18694_s0 + $0x4bc] ss:$72 sps:$4 sm:$0xff]  }
 0x3b2   :  { %6684 = vmatmul.mubr.bf16.gmra.mrb[24].mxu0 %v17562_v25  ;;  %8228 = vmatmul.mubr.bf16.gmra.mrb[56].mxu1 %v17146_v18  ;;  %v13966_v18 = vld [vmem:[%s18695_s1 + $0x11c4] ss:$16 sps:$4 sm:$0xff]  }
 0x3b3   :  { %6693 = vmatprep.mubr.bf16.mxu0 %v17567_v16  ;;  %8237 = vmatprep.mubr.bf16.mxu1 %v17151_v51  ;;  %v13969_v51 = vld [vmem:[%s18695_s1 + $0xfcc] ss:$16 sps:$4 sm:$0xff]  }
 0x3b4   :  { %6809 = vmatpush1.bf16.msra.mxu0 %v13946_v47  ;;  %8353 = vmatpush1.bf16.msra.mxu1 %v13949_v34  ;;  %v13964_v47 = vld [vmem:[%s18695_s1 + $0x11c0] ss:$16 sps:$4 sm:$0xff]   ;;  %v13967_v34 = vld [vmem:[%s18695_s1 + $0xfc8] ss:$16 sps:$4 sm:$0xff]  }
 0x3b5   :  { %6810 = vmatprep.subr.bf16.mxu0 %v13957_v50  ;;  %8354 = vmatprep.subr.bf16.mxu1 %v13960_v10  ;;  %v13975_v50 = vld [vmem:[%s18695_s1 + $0x11e4] ss:$16 sps:$4 sm:$0xff]   ;;  %v13978_v10 = vld [vmem:[%s18695_s1 + $0xfec] ss:$16 sps:$4 sm:$0xff]  }
 0x3b8   :  { %6811 = vmatpush1.bf16.msra.mxu0 %v13955_v27  ;;  %8355 = vmatpush1.bf16.msra.mxu1 %v13958_v7  ;;  %v13973_v27 = vld [vmem:[%s18695_s1 + $0x11e0] ss:$16 sps:$4 sm:$0xff]   ;;  %v13976_v7 = vld [vmem:[%s18695_s1 + $0xfe8] ss:$16 sps:$4 sm:$0xff]  }
 0x3b9   :  { %6812 = vmatprep.subr.bf16.mxu0 %v13966_v18  ;;  %8356 = vmatprep.subr.bf16.mxu1 %v13969_v51  ;;  %v17640_v18 = vld [vmem:[%s18694_s0 + $0x54c] ss:$72 sps:$4 sm:$0xff]   ;;  %v17649_v51 = vld [vmem:[%s18694_s0 + $0x548] ss:$72 sps:$4 sm:$0xff]  }
 0x3ba   :  { %6694 = vmatmul.mubr.bf16.gmra.mrb[28].mxu0 %v17600_v60  ;;  %8238 = vmatmul.mubr.bf16.gmra.mrb[60].mxu1 %v17184_v26  ;;  %v13984_v26 = vld [vmem:[%s18695_s1 + $0x100c] ss:$16 sps:$4 sm:$0xff]  }
 0x3bb   :  { %6703 = vmatprep.mubr.bf16.mxu0 %v17605_v6  ;;  %8247 = vmatprep.mubr.bf16.mxu1 %v17189_v46  ;;  %v17635_v46 = vld [vmem:[%s18694_s0 + $0x4b8] ss:$72 sps:$4 sm:$0xff]  }
 0x3bc   :  { %6813 = vmatpush1.bf16.msra.mxu0 %v13964_v47  ;;  %8357 = vmatpush1.bf16.msra.mxu1 %v13967_v34  ;;  %v17654_v47 = vld [vmem:[%s18694_s0 + $0x5dc] ss:$72 sps:$4 sm:$0xff]   ;;  %v17699_v34 = vld [vmem:[%s18694_s0 + $0x78c] ss:$72 sps:$4 sm:$0xff]  }
 0x3bd   :  { %6814 = vmatprep.subr.bf16.mxu0 %v13975_v50  ;;  %8358 = vmatprep.subr.bf16.mxu1 %v13978_v10  ;;  %v17758_v50 = vld [vmem:[%s18694_s0 + $0xd4] ss:$72 sps:$4 sm:$0xff]  }
 0x3be   :  { %v14062_v10 = vld [vmem:[%s18697_s3 + $0x14] ss:$8 sps:$4 sm:$0xff]  }
 0x3c0   :  { %6815 = vmatpush1.bf16.msra.mxu0 %v13973_v27  ;;  %8359 = vmatpush1.bf16.msra.mxu1 %v13976_v7  ;;  %v13988_v27 = vld [vmem:[%s18695_s1 + $0x1028] ss:$16 sps:$4 sm:$0xff]   ;;  %v13996_v7 = vld [vmem:[%s18695_s1 + $0x104c] ss:$16 sps:$4 sm:$0xff]  }
 0x3c1   :  { %8521 = vmatprep.subr.bf16.mxu1 %v13984_v26  ;;  %v17785_v26 = vld [vmem:[%s18694_s0 + $0xd0] ss:$72 sps:$4 sm:$0xff]  }
 0x3c2   :  { %6704 = vmatmul.mubr.bf16.gmra.mrb[32].mxu0 %v17635_v46  ;;  %8248 = vmatmul.mubr.bf16.gmra.mrb[64].mxu1 %v17222_v44  ;;  %v17663_v44 = vld [vmem:[%s18694_s0 + $0x5d8] ss:$72 sps:$4 sm:$0xff]  }
 0x3c3   :  { %6713 = vmatprep.mubr.bf16.mxu0 %v17640_v18  ;;  %8257 = vmatprep.mubr.bf16.mxu1 %v17227_v45  ;;  %v17668_v45 = vld [vmem:[%s18694_s0 + $0x66c] ss:$72 sps:$4 sm:$0xff]  }
 0x3ca   :  { %6714 = vmatmul.mubr.bf16.gmra.mrb[36].mxu0 %v17649_v51  ;;  %8258 = vmatmul.mubr.bf16.gmra.mrb[68].mxu1 %v17236_v4  ;;  %v17677_v4 = vld [vmem:[%s18694_s0 + $0x668] ss:$72 sps:$4 sm:$0xff]  }
 0x3cb   :  { %6723 = vmatprep.mubr.bf16.mxu0 %v17654_v47  ;;  %8267 = vmatprep.mubr.bf16.mxu1 %v17241_v21  ;;  %v17682_v21 = vld [vmem:[%s18694_s0 + $0x6fc] ss:$72 sps:$4 sm:$0xff]  }
 0x3d2   :  { %6724 = vmatmul.mubr.bf16.gmra.mrb[40].mxu0 %v17663_v44  ;;  %8268 = vmatmul.mubr.bf16.gmra.mrb[72].mxu1 %v17250_v54  ;;  %v14053_v54 = vld [vmem:[%s18697_s3 + $0x4] ss:$8 sps:$4 sm:$0xff]  }
 0x3d3   :  { %6733 = vmatprep.mubr.bf16.mxu0 %v17668_v45  ;;  %8277 = vmatprep.mubr.bf16.mxu1 %v17255_v62  ;;  %v17694_v62 = vld [vmem:[%s18694_s0 + $0x6f8] ss:$72 sps:$4 sm:$0xff]  }
 0x3d4   :  { %9302 = vmatprep.subr.bf16.mxu0 %v14053_v54  ;;  %v13994_v54 = vld [vmem:[%s18695_s1 + $0x1048] ss:$16 sps:$4 sm:$0xff]  }
 0x3da   :  { %6734 = vmatmul.mubr.bf16.gmra.mrb[44].mxu0 %v17677_v4  ;;  %8278 = vmatmul.mubr.bf16.gmra.mrb[76].mxu1 %v17264_v29  ;;  %v17708_v29 = vld [vmem:[%s18694_s0 + $0x788] ss:$72 sps:$4 sm:$0xff]  }
 0x3db   :  { %6743 = vmatprep.mubr.bf16.mxu0 %v17682_v21  ;;  %8287 = vmatprep.mubr.bf16.mxu1 %v17269_v14  ;;  %v17713_v14 = vld [vmem:[%s18694_s0 + $0x81c] ss:$72 sps:$4 sm:$0xff]  }
 0x3e2   :  { %6744 = vmatmul.mubr.bf16.gmra.mrb[48].mxu0 %v17694_v62  ;;  %8288 = vmatmul.mubr.bf16.gmra.mrb[80].mxu1 %v17278_v41  ;;  %v17722_v41 = vld [vmem:[%s18694_s0 + $0x818] ss:$72 sps:$4 sm:$0xff]  }
 0x3e3   :  { %6753 = vmatprep.mubr.bf16.mxu0 %v17699_v34  ;;  %8297 = vmatprep.mubr.bf16.mxu1 %v17283_v59  ;;  %v17727_v59 = vld [vmem:[%s18694_s0 + $0x8ac] ss:$72 sps:$4 sm:$0xff]  }
 0x3ea   :  { %6754 = vmatmul.mubr.bf16.gmra.mrb[52].mxu0 %v17708_v29  ;;  %8298 = vmatmul.mubr.bf16.gmra.mrb[84].mxu1 %v17292_v20  ;;  %v17736_v20 = vld [vmem:[%s18694_s0 + $0x8a8] ss:$72 sps:$4 sm:$0xff]  }
 0x3eb   :  { %6763 = vmatprep.mubr.bf16.mxu0 %v17713_v14  ;;  %8307 = vmatprep.mubr.bf16.mxu1 %v17297_v5  ;;  %v17741_v5 = vld [vmem:[%s18694_s0 + $0x44] ss:$72 sps:$4 sm:$0xff]  }
 0x3f2   :  { %6764 = vmatmul.mubr.bf16.gmra.mrb[56].mxu0 %v17722_v41  ;;  %8308 = vmatmul.mubr.bf16.gmra.mrb[88].mxu1 %v17306_v53  ;;  %v17750_v53 = vld [vmem:[%s18694_s0 + $0x40] ss:$72 sps:$4 sm:$0xff]  }
 0x3f3   :  { %6773 = vmatprep.mubr.bf16.mxu0 %v17727_v59  ;;  %8317 = vmatprep.mubr.bf16.mxu1 %v17311_v57  ;;  %v13982_v57 = vld [vmem:[%s18695_s1 + $0x1008] ss:$16 sps:$4 sm:$0xff]  }
 0x3fa   :  { %6774 = vmatmul.mubr.bf16.gmra.mrb[60].mxu0 %v17736_v20  ;;  %8318 = vmatmul.mubr.bf16.gmra.mrb[92].mxu1 %v17320_v17  ;;  %v13990_v17 = vld [vmem:[%s18695_s1 + $0x102c] ss:$16 sps:$4 sm:$0xff]  }
 0x3fb   :  { %6816 = vmatprep.mubr.bf16.mxu0 %v17741_v5  ;;  %8360 = vmatprep.mubr.bf16.mxu1 %v17325_v19  ;;  %v14051_v19 = vld [vmem:[%s18697_s3] ss:$8 sps:$4 sm:$0xff]  }
 0x402   :  { %6817 = vmatmul.mubr.bf16.vlgmr.msra.gmra.mrb[0].mxu0 %v17750_v53  ;;  %8361 = vmatmul.mubr.bf16.vlgmr.msra.gmra.mrb[32].mxu1 %v17334_v30  ;;  %v14060_v30 = vld [vmem:[%s18697_s3 + $0x10] ss:$8 sps:$4 sm:$0xff]  }
 0x403   :  { %8522 = vmatpush1.bf16.msra.mxu1 %v13982_v57  ;;  %6826 = vmatprep.mubr.bf16.mxu0 %v17758_v50  ;;  %v14071_v57 = vld [vmem:[%s18697_s3 + $0x24] ss:$8 sps:$4 sm:$0xff]  }
 0x404   :  { %8370 = vmatprep.mubr.bf16.mxu1 %v17345_v49  ;;  %8523 = vmatprep.subr.bf16.mxu1 %v13990_v17  ;;  %v17790_v49 = vld [vmem:[%s18694_s0 + $0x164] ss:$72 sps:$4 sm:$0xff]  }
 0x405   :  { %9303 = vmatpush1.bf16.msra.mxu0 %v14051_v19  ;;  %v14002_v17 = vld [vmem:[%s18695_s1 + $0x106c] ss:$16 sps:$4 sm:$0xff]   ;;  %v14069_v19 = vld [vmem:[%s18697_s3 + $0x20] ss:$8 sps:$4 sm:$0xff]  }
 0x406   :  { %9304 = vmatprep.subr.bf16.mxu0 %v14062_v10  ;;  %v14080_v10 = vld [vmem:[%s18697_s3 + $0x34] ss:$8 sps:$4 sm:$0xff]  }
 0x407   :  { %8524 = vmatpush1.bf16.msra.mxu1 %v13988_v27  ;;  %v14000_v27 = vld [vmem:[%s18695_s1 + $0x1068] ss:$16 sps:$4 sm:$0xff]  }
 0x408   :  { %8525 = vmatprep.subr.bf16.mxu1 %v13996_v7  ;;  %v14008_v7 = vld [vmem:[%s18695_s1 + $0x108c] ss:$16 sps:$4 sm:$0xff]  }
 0x409   :  { %9305 = vmatpush1.bf16.msra.mxu0 %v14060_v30  ;;  %v17828_v30 = vld [vmem:[%s18694_s0 + $0x1f4] ss:$72 sps:$4 sm:$0xff]  }
 0x40a   :  { %6827 = vmatmul.mubr.bf16.gmra.mrb[4].mxu0 %v17785_v26  ;;  %8371 = vmatmul.mubr.bf16.gmra.mrb[36].mxu1 %v17372_v11  ;;  %v14078_v11 = vld [vmem:[%s18697_s3 + $0x30] ss:$8 sps:$4 sm:$0xff]  }
 0x40b   :  { %6836 = vmatprep.mubr.bf16.mxu0 %v17790_v49  ;;  %8380 = vmatprep.mubr.bf16.mxu1 %v17377_v33  ;;  %v17823_v33 = vld [vmem:[%s18694_s0 + $0x160] ss:$72 sps:$4 sm:$0xff]  }
 0x40c   :  { %8526 = vmatpush1.bf16.msra.mxu1 %v13994_v54  ;;  %9306 = vmatprep.subr.bf16.mxu0 %v14071_v57  ;;  %v14006_v54 = vld [vmem:[%s18695_s1 + $0x1088] ss:$16 sps:$4 sm:$0xff]   ;;  %v14089_v57 = vld [vmem:[%s18697_s3 + $0x44] ss:$8 sps:$4 sm:$0xff]  }
 0x40d   :  { %8527 = vmatprep.subr.bf16.mxu1 %v14002_v17  ;;  %9307 = vmatpush1.bf16.msra.mxu0 %v14069_v19  ;;  %v14014_v17 = vld [vmem:[%s18695_s1 + $0x10ac] ss:$16 sps:$4 sm:$0xff]   ;;  %v14087_v19 = vld [vmem:[%s18697_s3 + $0x40] ss:$8 sps:$4 sm:$0xff]  }
 0x40e   :  { %9308 = vmatprep.subr.bf16.mxu0 %v14080_v10  ;;  %v14092_v10 = vld [vmem:[%s18697_s3 + $0x54] ss:$8 sps:$4 sm:$0xff]  }
 0x410   :  { %8528 = vmatpush1.bf16.msra.mxu1 %v14000_v27  ;;  %v14012_v27 = vld [vmem:[%s18695_s1 + $0x10a8] ss:$16 sps:$4 sm:$0xff]  }
 0x411   :  { %8529 = vmatprep.subr.bf16.mxu1 %v14008_v7  ;;  %9309 = vmatpush1.bf16.msra.mxu0 %v14078_v11  ;;  %v14020_v7 = vld [vmem:[%s18695_s1 + $0x10cc] ss:$16 sps:$4 sm:$0xff]  }
 0x412   :  { %6837 = vmatmul.mubr.bf16.gmra.mrb[8].mxu0 %v17823_v33  ;;  %8381 = vmatmul.mubr.bf16.gmra.mrb[40].mxu1 %v17410_v40  ;;  %v14090_v40 = vld [vmem:[%s18697_s3 + $0x50] ss:$8 sps:$4 sm:$0xff]   ;;  %v17866_v11 = vld [vmem:[%s18694_s0 + $0x284] ss:$72 sps:$4 sm:$0xff]  }
 0x413   :  { %6846 = vmatprep.mubr.bf16.mxu0 %v17828_v30  ;;  %8390 = vmatprep.mubr.bf16.mxu1 %v17415_v1  ;;  %v17861_v1 = vld [vmem:[%s18694_s0 + $0x1f0] ss:$72 sps:$4 sm:$0xff]  }
 0x414   :  { %8530 = vmatpush1.bf16.msra.mxu1 %v14006_v54  ;;  %9310 = vmatprep.subr.bf16.mxu0 %v14089_v57  ;;  %v14018_v54 = vld [vmem:[%s18695_s1 + $0x10c8] ss:$16 sps:$4 sm:$0xff]   ;;  %v14095_v57 = vld [vmem:[%s18697_s3 + $0x64] ss:$8 sps:$4 sm:$0xff]  }
 0x415   :  { %8531 = vmatprep.subr.bf16.mxu1 %v14014_v17  ;;  %9311 = vmatpush1.bf16.msra.mxu0 %v14087_v19  ;;  %v14026_v17 = vld [vmem:[%s18695_s1 + $0x10ec] ss:$16 sps:$4 sm:$0xff]   ;;  %v14093_v19 = vld [vmem:[%s18697_s3 + $0x60] ss:$8 sps:$4 sm:$0xff]  }
 0x416   :  { %9312 = vmatprep.subr.bf16.mxu0 %v14092_v10  ;;  %v14098_v10 = vld [vmem:[%s18697_s3 + $0x74] ss:$8 sps:$4 sm:$0xff]  }
 0x418   :  { %8532 = vmatpush1.bf16.msra.mxu1 %v14012_v27  ;;  %v14024_v27 = vld [vmem:[%s18695_s1 + $0x10e8] ss:$16 sps:$4 sm:$0xff]  }
 0x419   :  { %8533 = vmatprep.subr.bf16.mxu1 %v14020_v7  ;;  %9313 = vmatpush1.bf16.msra.mxu0 %v14090_v40  ;;  %v14032_v7 = vld [vmem:[%s18695_s1 + $0x110c] ss:$16 sps:$4 sm:$0xff]  }
 0x41a   :  { %6847 = vmatmul.mubr.bf16.gmra.mrb[12].mxu0 %v17861_v1  ;;  %8391 = vmatmul.mubr.bf16.gmra.mrb[44].mxu1 %v17448_v12  ;;  %v14096_v12 = vld [vmem:[%s18697_s3 + $0x70] ss:$8 sps:$4 sm:$0xff]   ;;  %v17904_v40 = vld [vmem:[%s18694_s0 + $0x314] ss:$72 sps:$4 sm:$0xff]  }
 0x41b   :  { %6856 = vmatprep.mubr.bf16.mxu0 %v17866_v11  ;;  %8400 = vmatprep.mubr.bf16.mxu1 %v17453_v42  ;;  %v17899_v42 = vld [vmem:[%s18694_s0 + $0x280] ss:$72 sps:$4 sm:$0xff]  }
 0x41c   :  { %8534 = vmatpush1.bf16.msra.mxu1 %v14018_v54  ;;  %9314 = vmatprep.subr.bf16.mxu0 %v14095_v57  ;;  %v14030_v54 = vld [vmem:[%s18695_s1 + $0x1108] ss:$16 sps:$4 sm:$0xff]   ;;  %v14101_v57 = vld [vmem:[%s18697_s3 + $0x84] ss:$8 sps:$4 sm:$0xff]  }
 0x41d   :  { %8535 = vmatprep.subr.bf16.mxu1 %v14026_v17  ;;  %9315 = vmatpush1.bf16.msra.mxu0 %v14093_v19  ;;  %v14038_v17 = vld [vmem:[%s18695_s1 + $0x112c] ss:$16 sps:$4 sm:$0xff]   ;;  %v14099_v19 = vld [vmem:[%s18697_s3 + $0x80] ss:$8 sps:$4 sm:$0xff]  }
 0x41e   :  { %9316 = vmatprep.subr.bf16.mxu0 %v14098_v10  ;;  %v14104_v10 = vld [vmem:[%s18697_s3 + $0x94] ss:$8 sps:$4 sm:$0xff]  }
 0x420   :  { %8536 = vmatpush1.bf16.msra.mxu1 %v14024_v27  ;;  %v14036_v27 = vld [vmem:[%s18695_s1 + $0x1128] ss:$16 sps:$4 sm:$0xff]  }
 0x421   :  { %8537 = vmatprep.subr.bf16.mxu1 %v14032_v7  ;;  %9317 = vmatpush1.bf16.msra.mxu0 %v14096_v12  ;;  %v14044_v7 = vld [vmem:[%s18695_s1 + $0x114c] ss:$16 sps:$4 sm:$0xff]  }
 0x422   :  { %6857 = vmatmul.mubr.bf16.gmra.mrb[16].mxu0 %v17899_v42  ;;  %8401 = vmatmul.mubr.bf16.gmra.mrb[48].mxu1 %v17486_v8  ;;  %v14102_v8 = vld [vmem:[%s18697_s3 + $0x90] ss:$8 sps:$4 sm:$0xff]   ;;  %v17942_v12 = vld [vmem:[%s18694_s0 + $0x3a4] ss:$72 sps:$4 sm:$0xff]  }
 0x423   :  { %6866 = vmatprep.mubr.bf16.mxu0 %v17904_v40  ;;  %8410 = vmatprep.mubr.bf16.mxu1 %v17491_v55  ;;  %v17937_v55 = vld [vmem:[%s18694_s0 + $0x310] ss:$72 sps:$4 sm:$0xff]  }
 0x424   :  { %8538 = vmatpush1.bf16.msra.mxu1 %v14030_v54  ;;  %9318 = vmatprep.subr.bf16.mxu0 %v14101_v57  ;;  %v14042_v54 = vld [vmem:[%s18695_s1 + $0x1148] ss:$16 sps:$4 sm:$0xff]   ;;  %v14050_v57 = vld [vmem:[%s18695_s1 + $0x116c] ss:$16 sps:$4 sm:$0xff]  }
 0x425   :  { %8539 = vmatprep.subr.bf16.mxu1 %v14038_v17  ;;  %9319 = vmatpush1.bf16.msra.mxu0 %v14099_v19  ;;  %v14105_v17 = vld [vmem:[%s18697_s3 + $0xa0] ss:$8 sps:$4 sm:$0xff]   ;;  %v14107_v19 = vld [vmem:[%s18697_s3 + $0xa4] ss:$8 sps:$4 sm:$0xff]  }
 0x426   :  { %9320 = vmatprep.subr.bf16.mxu0 %v14104_v10  ;;  %v14048_v10 = vld [vmem:[%s18695_s1 + $0x1168] ss:$16 sps:$4 sm:$0xff]  }
 0x428   :  { %8540 = vmatpush1.bf16.msra.mxu1 %v14036_v27  ;;  %v17969_v27 = vld [vmem:[%s18694_s0 + $0x3a0] ss:$72 sps:$4 sm:$0xff]  }
 0x429   :  { %8541 = vmatprep.subr.bf16.mxu1 %v14044_v7  ;;  %9321 = vmatpush1.bf16.msra.mxu0 %v14102_v8  ;;  %v14057_v7 = vld [vmem:[%s18695_s1 + $0x1188] ss:$16 sps:$4 sm:$0xff]   ;;  %v14068_v8 = vld [vmem:[%s18695_s1 + $0x11ac] ss:$16 sps:$4 sm:$0xff]  }
 0x42a   :  { %6867 = vmatmul.mubr.bf16.gmra.mrb[20].mxu0 %v17937_v55  ;;  %8411 = vmatmul.mubr.bf16.gmra.mrb[52].mxu1 %v17524_v23  ;;  %v14059_v23 = vld [vmem:[%s18695_s1 + $0x118c] ss:$16 sps:$4 sm:$0xff]  }
 0x42b   :  { %6876 = vmatprep.mubr.bf16.mxu0 %v17942_v12  ;;  %8420 = vmatprep.mubr.bf16.mxu1 %v17529_v13  ;;  %v17974_v13 = vld [vmem:[%s18694_s0 + $0x434] ss:$72 sps:$4 sm:$0xff]  }
 0x42c   :  { %8542 = vmatpush1.bf16.msra.mxu1 %v14042_v54  ;;  %9322 = vmatprep.subr.bf16.mxu0 %v14107_v19  ;;  %v14108_v54 = vld [vmem:[%s18697_s3 + $0xb0] ss:$8 sps:$4 sm:$0xff]  }
 0x42d   :  { %8543 = vmatprep.subr.bf16.mxu1 %v14050_v57  ;;  %9323 = vmatpush1.bf16.msra.mxu0 %v14105_v17  ;;  %v14110_v57 = vld [vmem:[%s18697_s3 + $0xb4] ss:$8 sps:$4 sm:$0xff]   ;;  %v14066_v17 = vld [vmem:[%s18695_s1 + $0x11a8] ss:$16 sps:$4 sm:$0xff]  }
 0x42e   :  { %9324 = vmatprep.subr.bf16.mxu0 %v14110_v57  ;;  %v18001_v19 = vld [vmem:[%s18694_s0 + $0x430] ss:$72 sps:$4 sm:$0xff]   ;;  %v18035_v57 = vld [vmem:[%s18694_s0 + $0x554] ss:$72 sps:$4 sm:$0xff]  }
 0x430   :  { %8544 = vmatpush1.bf16.msra.mxu1 %v14048_v10  ;;  %v14075_v10 = vld [vmem:[%s18695_s1 + $0x11c8] ss:$16 sps:$4 sm:$0xff]  }
 0x431   :  { %8545 = vmatprep.subr.bf16.mxu1 %v14059_v23  ;;  %9325 = vmatpush1.bf16.msra.mxu0 %v14108_v54  ;;  %v14086_v23 = vld [vmem:[%s18695_s1 + $0x11ec] ss:$16 sps:$4 sm:$0xff]   ;;  %v14084_v54 = vld [vmem:[%s18695_s1 + $0x11e8] ss:$16 sps:$4 sm:$0xff]  }
 0x432   :  { %6877 = vmatmul.mubr.bf16.gmra.mrb[24].mxu0 %v17969_v27  ;;  %8421 = vmatmul.mubr.bf16.gmra.mrb[56].mxu1 %v17562_v25  ;;  %v14077_v25 = vld [vmem:[%s18695_s1 + $0x11cc] ss:$16 sps:$4 sm:$0xff]   ;;  %s14275_s1 = scalar_lea.vmem %s10363_s17, 32 }
 0x433   :  { %6886 = vmatprep.mubr.bf16.mxu0 %v17974_v13  ;;  %8430 = vmatprep.mubr.bf16.mxu1 %v17567_v16  ;;  %v18006_v16 = vld [vmem:[%s18694_s0 + $0x4c4] ss:$72 sps:$4 sm:$0xff]   ;;  %p14276_p0 = scmp.ne.s32.totalorder %s10363_s17, %s14275_s1  ;;  %p14281_p2 = scmp.lt.s32.totalorder %s14275_s1, %s14275_s1 }
 0x434   :  { %8546 = vmatpush1.bf16.msra.mxu1 %v14057_v7  ;;  %v14111_v7 = vld [vmem:[%s18697_s3 + $0xc0] ss:$8 sps:$4 sm:$0xff]  }
 0x435   :  { %8547 = vmatprep.subr.bf16.mxu1 %v14068_v8  ;;  %v14113_v8 = vld [vmem:[%s18697_s3 + $0xc4] ss:$8 sps:$4 sm:$0xff]   ;;  %p14282_p3 = por %p14281_p2, %p14280_p1 }
 0x436   :  { %9326 = vmatprep.subr.bf16.mxu0 %v14113_v8  ;;  %v18104_v8 = vld [vmem:[%s18694_s0 + $0x700] ss:$72 sps:$4 sm:$0xff]  }
 0x437   :  { %9327 = vmatpush1.bf16.msra.mxu0 %v14111_v7  ;;  %v18089_v7 = vld [vmem:[%s18694_s0 + $0x704] ss:$72 sps:$4 sm:$0xff]   ;;  %p14283_p4 = pnand %p14282_p3, %p14276_p0 }
 0x438   :  { %8548 = vmatpush1.bf16.msra.mxu1 %v14066_v17  ;;  %v14116_v17 = vld [vmem:[%s18697_s3 + $0xd4] ss:$8 sps:$4 sm:$0xff]  }
 0x439   :  { %8549 = vmatprep.subr.bf16.mxu1 %v14077_v25  ;;  %9328 = vmatprep.subr.bf16.mxu0 %v14116_v17  ;;  %v18050_v25 = vld [vmem:[%s18694_s0 + $0x550] ss:$72 sps:$4 sm:$0xff]  }
 0x43a   :  { %6887 = vmatmul.mubr.bf16.gmra.mrb[28].mxu0 %v18001_v19  ;;  %8431 = vmatmul.mubr.bf16.gmra.mrb[60].mxu1 %v17600_v60  ;;  %v18030_v60 = vld [vmem:[%s18694_s0 + $0x4c0] ss:$72 sps:$4 sm:$0xff]  }
 0x43b   :  { %6896 = vmatprep.mubr.bf16.mxu0 %v18006_v16  ;;  %8440 = vmatprep.mubr.bf16.mxu1 %v17605_v6  ;;  %v14114_v6 = vld [vmem:[%s18697_s3 + $0xd0] ss:$8 sps:$4 sm:$0xff]  }
 0x43c   :  { %8550 = vmatpush1.bf16.msra.mxu1 %v14075_v10  ;;  %9329 = vmatpush1.bf16.msra.mxu0 %v14114_v6  ;;  %v14119_v10 = vld [vmem:[%s18697_s3 + $0xe4] ss:$8 sps:$4 sm:$0xff]  }
 0x43d   :  { %8551 = vmatprep.subr.bf16.mxu1 %v14086_v23  ;;  %9330 = vmatprep.subr.bf16.mxu0 %v14119_v10  ;;  %v18070_v23 = vld [vmem:[%s18694_s0 + $0x5e0] ss:$72 sps:$4 sm:$0xff]   ;;  %v18126_v6 = vld [vmem:[%s18694_s0 + $0x824] ss:$72 sps:$4 sm:$0xff]  }
 0x440   :  { %8552 = vmatpush1.bf16.msra.mxu1 %v14084_v54  ;;  %v18121_v54 = vld [vmem:[%s18694_s0 + $0x790] ss:$72 sps:$4 sm:$0xff]  }
 0x442   :  { %6897 = vmatmul.mubr.bf16.gmra.mrb[32].mxu0 %v18030_v60  ;;  %8441 = vmatmul.mubr.bf16.gmra.mrb[64].mxu1 %v17635_v46  ;;  %v18055_v46 = vld [vmem:[%s18694_s0 + $0x5e4] ss:$72 sps:$4 sm:$0xff]  }
 0x443   :  { %6906 = vmatprep.mubr.bf16.mxu0 %v18035_v57  ;;  %8450 = vmatprep.mubr.bf16.mxu1 %v17640_v18  ;;  %v14117_v18 = vld [vmem:[%s18697_s3 + $0xe0] ss:$8 sps:$4 sm:$0xff]  }
 0x444   :  { %9331 = vmatpush1.bf16.msra.mxu0 %v14117_v18 }
 0x44a   :  { %6907 = vmatmul.mubr.bf16.gmra.mrb[36].mxu0 %v18050_v25  ;;  %8451 = vmatmul.mubr.bf16.gmra.mrb[68].mxu1 %v17649_v51  ;;  %v18075_v51 = vld [vmem:[%s18694_s0 + $0x674] ss:$72 sps:$4 sm:$0xff]  }
 0x44b   :  { %6916 = vmatprep.mubr.bf16.mxu0 %v18055_v46  ;;  %8460 = vmatprep.mubr.bf16.mxu1 %v17654_v47  ;;  %v18084_v47 = vld [vmem:[%s18694_s0 + $0x670] ss:$72 sps:$4 sm:$0xff]  }
 0x452   :  { %6917 = vmatmul.mubr.bf16.gmra.mrb[40].mxu0 %v18070_v23  ;;  %8461 = vmatmul.mubr.bf16.gmra.mrb[72].mxu1 %v17663_v44  ;;  %v14122_v44 = vld [vmem:[%s18697_s3 + $0xf4] ss:$8 sps:$4 sm:$0xff]  }
 0x453   :  { %6926 = vmatprep.mubr.bf16.mxu0 %v18075_v51  ;;  %8470 = vmatprep.mubr.bf16.mxu1 %v17668_v45  ;;  %v14120_v45 = vld [vmem:[%s18697_s3 + $0xf0] ss:$8 sps:$4 sm:$0xff]  }
 0x454   :  { %9332 = vmatprep.subr.bf16.mxu0 %v14122_v44 }
 0x455   :  { %9333 = vmatpush1.bf16.msra.mxu0 %v14120_v45 }
 0x45a   :  { %6927 = vmatmul.mubr.bf16.gmra.mrb[44].mxu0 %v18084_v47  ;;  %8471 = vmatmul.mubr.bf16.gmra.mrb[76].mxu1 %v17677_v4  ;;  %v18109_v4 = vld [vmem:[%s18694_s0 + $0x794] ss:$72 sps:$4 sm:$0xff]  }
 0x45b   :  { %6936 = vmatprep.mubr.bf16.mxu0 %v18089_v7  ;;  %8480 = vmatprep.mubr.bf16.mxu1 %v17682_v21  ;;  %v14125_v21 = vld [vmem:[%s18697_s3 + $0x104] ss:$8 sps:$4 sm:$0xff]  }
 0x45c   :  { %9495 = vmatprep.subr.bf16.mxu0 %v14125_v21  ;;  %v14131_v21 = vld [vmem:[%s18697_s3 + $0x124] ss:$8 sps:$4 sm:$0xff]  }
 0x462   :  { %6937 = vmatmul.mubr.bf16.gmra.mrb[48].mxu0 %v18104_v8  ;;  %8481 = vmatmul.mubr.bf16.gmra.mrb[80].mxu1 %v17694_v62  ;;  %v18135_v62 = vld [vmem:[%s18694_s0 + $0x820] ss:$72 sps:$4 sm:$0xff]  }
 0x463   :  { %6946 = vmatprep.mubr.bf16.mxu0 %v18109_v4  ;;  %8490 = vmatprep.mubr.bf16.mxu1 %v17699_v34  ;;  %v18140_v34 = vld [vmem:[%s18694_s0 + $0x8b4] ss:$72 sps:$4 sm:$0xff]  }
 0x46a   :  { %6947 = vmatmul.mubr.bf16.gmra.mrb[52].mxu0 %v18121_v54  ;;  %8491 = vmatmul.mubr.bf16.gmra.mrb[84].mxu1 %v17708_v29  ;;  %v18149_v29 = vld [vmem:[%s18694_s0 + $0x8b0] ss:$72 sps:$4 sm:$0xff]  }
 0x46b   :  { %6956 = vmatprep.mubr.bf16.mxu0 %v18126_v6  ;;  %8500 = vmatprep.mubr.bf16.mxu1 %v17713_v14  ;;  %v900_v14 = vlaneseq }
 0x472   :  { %6957 = vmatmul.mubr.bf16.gmra.mrb[56].mxu0 %v18135_v62  ;;  %8501 = vmatmul.mubr.bf16.gmra.mrb[88].mxu1 %v17722_v41  ;;  %v18174_v41 = vshrl.u32 %v900_v14, 7 }
 0x473   :  { %6966 = vmatprep.mubr.bf16.mxu0 %v18140_v34  ;;  %8510 = vmatprep.mubr.bf16.mxu1 %v17727_v59 }
 0x474   :  { %v902_v59 = vsub.s32 0, %v18174_v41 }
 0x47a   :  { %6967 = vmatmul.mubr.bf16.gmra.mrb[60].mxu0 %v18149_v29  ;;  %8511 = vmatmul.mubr.bf16.gmra.mrb[92].mxu1 %v17736_v20  ;;  %v18180_v20 = vld [vmem:[%s18696_s2] sm:$0xf] }
 0x47b   :  { %8553 = vmatprep.mubr.bf16.mxu1 %v17741_v5  ;;  %v906_v5 = vsub.s32 1, %v18174_v41 }
 0x482   :  { %8554 = vmatmul.mubr.bf16.vlgmr.msra.gmra.mrb[32].mxu1 %v17750_v53  ;;  %v18188_v53 = vrot.slane %v18180_v20, %v902_v59 }
 0x483   :  { %8563 = vmatprep.mubr.bf16.mxu1 %v17758_v50  ;;  %v18193_v50 = vrot.slane %v18180_v20, %v906_v5 }
 0x48a   :  { %8564 = vmatmul.mubr.bf16.gmra.mrb[36].mxu1 %v17785_v26 }
 0x48b   :  { %8573 = vmatprep.mubr.bf16.mxu1 %v17790_v49 }
 0x492   :  { %8574 = vmatmul.mubr.bf16.gmra.mrb[40].mxu1 %v17823_v33 }
 0x493   :  { %8583 = vmatprep.mubr.bf16.mxu1 %v17828_v30 }
 0x49a   :  { %8584 = vmatmul.mubr.bf16.gmra.mrb[44].mxu1 %v17861_v1 }
 0x49b   :  { %8593 = vmatprep.mubr.bf16.mxu1 %v17866_v11 }
 0x4a2   :  { %8594 = vmatmul.mubr.bf16.gmra.mrb[48].mxu1 %v17899_v42 }
 0x4a3   :  { %8603 = vmatprep.mubr.bf16.mxu1 %v17904_v40 }
 0x4aa   :  { %8604 = vmatmul.mubr.bf16.gmra.mrb[52].mxu1 %v17937_v55 }
 0x4ab   :  { %8613 = vmatprep.mubr.bf16.mxu1 %v17942_v12 }
 0x4b2   :  { %8614 = vmatmul.mubr.bf16.gmra.mrb[56].mxu1 %v17969_v27 }
 0x4b3   :  { %8623 = vmatprep.mubr.bf16.mxu1 %v17974_v13 }
 0x4ba   :  { %8624 = vmatmul.mubr.bf16.gmra.mrb[60].mxu1 %v18001_v19 }
 0x4bb   :  { %8633 = vmatprep.mubr.bf16.mxu1 %v18006_v16 }
 0x4c2   :  { %8634 = vmatmul.mubr.bf16.gmra.mrb[64].mxu1 %v18030_v60 }
 0x4c3   :  { %8643 = vmatprep.mubr.bf16.mxu1 %v18035_v57  ;;  %v14123_v57 = vld [vmem:[%s18697_s3 + $0x100] ss:$8 sps:$4 sm:$0xff]  }
 0x4ca   :  { %8644 = vmatmul.mubr.bf16.gmra.mrb[68].mxu1 %v18050_v25 }
 0x4cb   :  { %8653 = vmatprep.mubr.bf16.mxu1 %v18055_v46  ;;  %v14128_v46 = vld [vmem:[%s18697_s3 + $0x114] ss:$8 sps:$4 sm:$0xff]  }
 0x4d2   :  { %8654 = vmatmul.mubr.bf16.gmra.mrb[72].mxu1 %v18070_v23 }
 0x4d3   :  { %8663 = vmatprep.mubr.bf16.mxu1 %v18075_v51 }
 0x4d5   :  { %v6818_v26 = vpop.f32.mrb[0].mxu0 }
 0x4d6   :  { %v11498_v49 = vadd.f32 %v6818_v26, %v18188_v53  ;;  %v6820_v33 = vpop.f32.mrb[1].mxu0 }
 0x4d7   :  { %v11499_v30 = vadd.f32 %v6820_v33, %v18193_v50  ;;  %v6822_v1 = vpop.f32.mrb[2].mxu0 }
 0x4d8   :  { %v11500_v11 = vadd.f32 %v6822_v1, %v18188_v53  ;;  %v6824_v42 = vpop.f32.mrb[3].mxu0  ;;  %v8714_v55 = vmax.f32 %v11498_v49, 0.0  ;;  %v14129_v1 = vld [vmem:[%s18697_s3 + $0x120] ss:$8 sps:$4 sm:$0xff]  }
 0x4d9   :  { %v11501_v40 = vadd.f32 %v6824_v42, %v18193_v50  ;;  %v8715_v27 = vmax.f32 %v11499_v30, 0.0  ;;  %v14134_v42 = vld [vmem:[%s18697_s3 + $0x134] ss:$8 sps:$4 sm:$0xff]  }
 0x4da   :  { %v8718_v12 = vmax.f32 %v11500_v11, 0.0  ;;  %8664 = vmatmul.mubr.bf16.gmra.mrb[76].mxu1 %v18084_v47 }
 0x4db   :  { %v8719_v13 = vmax.f32 %v11501_v40, 0.0  ;;  %8673 = vmatprep.mubr.bf16.mxu1 %v18089_v7  ;;  %v14126_v7 = vld [vmem:[%s18697_s3 + $0x110] ss:$8 sps:$4 sm:$0xff]  }
 0x4dc   :  { %v8842_v19 = vpack.c.bf16 %v8718_v12, %v8714_v55 }
 0x4dd   :  { %v8843_v16 = vpack.c.bf16 %v8719_v13, %v8715_v27  ;;  %v6828_v60 = vpop.f32.mrb[4].mxu0  ;;  %v14132_v13 = vld [vmem:[%s18697_s3 + $0x130] ss:$8 sps:$4 sm:$0xff]  }
 0x4de   :  { %v11502_v17 = vadd.f32 %v6828_v60, %v18188_v53  ;;  %v6830_v25 = vpop.f32.mrb[5].mxu0  ;;  %v14137_v60 = vld [vmem:[%s18697_s3 + $0x144] ss:$8 sps:$4 sm:$0xff]  }
 0x4df   :  { %v11503_v18 = vadd.f32 %v6830_v25, %v18193_v50  ;;  %v6832_v10 = vpop.f32.mrb[6].mxu0  ;;  %9334 = vmatprep.mubr.bf16.mxu0 %v8843_v16 }
 0x4e0   :  { %v11504_v23 = vadd.f32 %v6832_v10, %v18188_v53  ;;  %v6834_v51 = vpop.f32.mrb[7].mxu0  ;;  %9335 = vmatmul.mubr.bf16.vlgmr.msra.gmra.mrb[64].mxu0 %v8842_v19  ;;  %v8722_v44 = vmax.f32 %v11502_v17, 0.0  ;;  %v14135_v10 = vld [vmem:[%s18697_s3 + $0x140] ss:$8 sps:$4 sm:$0xff]  }
 0x4e1   :  { %v11505_v47 = vadd.f32 %v6834_v51, %v18193_v50  ;;  %9496 = vmatpush1.bf16.msra.mxu0 %v14123_v57  ;;  %v8723_v14 = vmax.f32 %v11503_v18, 0.0  ;;  %v14140_v51 = vld [vmem:[%s18697_s3 + $0x154] ss:$8 sps:$4 sm:$0xff]  }
 0x4e2   :  { %v8726_v45 = vmax.f32 %v11504_v23, 0.0  ;;  %8674 = vmatmul.mubr.bf16.gmra.mrb[80].mxu1 %v18104_v8  ;;  %9497 = vmatprep.subr.bf16.mxu0 %v14128_v46 }
 0x4e3   :  { %v8727_v26 = vmax.f32 %v11505_v47, 0.0  ;;  %8683 = vmatprep.mubr.bf16.mxu1 %v18109_v4 }
 0x4e4   :  { %v8846_v49 = vpack.c.bf16 %v8726_v45, %v8722_v44 }
 0x4e5   :  { %v8847_v33 = vpack.c.bf16 %v8727_v26, %v8723_v14  ;;  %v6838_v30 = vpop.f32.mrb[8].mxu0  ;;  %9498 = vmatpush1.bf16.msra.mxu0 %v14126_v7 }
 0x4e6   :  { %v11506_v11 = vadd.f32 %v6838_v30, %v18188_v53  ;;  %v6840_v8 = vpop.f32.mrb[9].mxu0  ;;  %9499 = vmatprep.subr.bf16.mxu0 %v14131_v21  ;;  %v14138_v21 = vld [vmem:[%s18697_s3 + $0x150] ss:$8 sps:$4 sm:$0xff]  }
 0x4e7   :  { %v11507_v40 = vadd.f32 %v6840_v8, %v18193_v50  ;;  %v6842_v55 = vpop.f32.mrb[10].mxu0  ;;  %9344 = vmatprep.mubr.bf16.mxu0 %v8847_v33 }
 0x4e8   :  { %v11508_v4 = vadd.f32 %v6842_v55, %v18188_v53  ;;  %v6844_v12 = vpop.f32.mrb[11].mxu0  ;;  %9345 = vmatmul.mubr.bf16.gmra.mrb[68].mxu0 %v8846_v49  ;;  %v8730_v19 = vmax.f32 %v11506_v11, 0.0  ;;  %v14143_v49 = vld [vmem:[%s18697_s3 + $0x164] ss:$8 sps:$4 sm:$0xff]   ;;  %v14146_v55 = vld [vmem:[%s18697_s3 + $0x174] ss:$8 sps:$4 sm:$0xff]  }
 0x4e9   :  { %v11509_v27 = vadd.f32 %v6844_v12, %v18193_v50  ;;  %9500 = vmatpush1.bf16.msra.mxu0 %v14129_v1  ;;  %v8731_v57 = vmax.f32 %v11507_v40, 0.0 }
 0x4ea   :  { %v8734_v16 = vmax.f32 %v11508_v4, 0.0  ;;  %8684 = vmatmul.mubr.bf16.gmra.mrb[84].mxu1 %v18121_v54  ;;  %9501 = vmatprep.subr.bf16.mxu0 %v14134_v42  ;;  %v14141_v42 = vld [vmem:[%s18697_s3 + $0x160] ss:$8 sps:$4 sm:$0xff]  }
 0x4eb   :  { %v8735_v17 = vmax.f32 %v11509_v27, 0.0  ;;  %8693 = vmatprep.mubr.bf16.mxu1 %v18126_v6 }
 0x4ec   :  { %v8850_v25 = vpack.c.bf16 %v8734_v16, %v8730_v19  ;;  %v14144_v19 = vld [vmem:[%s18697_s3 + $0x170] ss:$8 sps:$4 sm:$0xff]  }
 0x4ed   :  { %v8851_v46 = vpack.c.bf16 %v8735_v17, %v8731_v57  ;;  %v6848_v18 = vpop.f32.mrb[12].mxu0  ;;  %9502 = vmatpush1.bf16.msra.mxu0 %v14132_v13  ;;  %v14149_v57 = vld [vmem:[%s18697_s3 + $0x184] ss:$8 sps:$4 sm:$0xff]  }
 0x4ee   :  { %v11510_v23 = vadd.f32 %v6848_v18, %v18188_v53  ;;  %v6850_v54 = vpop.f32.mrb[13].mxu0  ;;  %9503 = vmatprep.subr.bf16.mxu0 %v14137_v60 }
 0x4ef   :  { %v11511_v47 = vadd.f32 %v6850_v54, %v18193_v50  ;;  %v6852_v7 = vpop.f32.mrb[14].mxu0  ;;  %9354 = vmatprep.mubr.bf16.mxu0 %v8851_v46 }
 0x4f0   :  { %v11512_v6 = vadd.f32 %v6852_v7, %v18188_v53  ;;  %v6854_v44 = vpop.f32.mrb[15].mxu0  ;;  %9355 = vmatmul.mubr.bf16.gmra.mrb[72].mxu0 %v8850_v25  ;;  %v8738_v14 = vmax.f32 %v11510_v23, 0.0  ;;  %v14147_v23 = vld [vmem:[%s18697_s3 + $0x180] ss:$8 sps:$4 sm:$0xff]  }
 0x4f1   :  { %v11513_v45 = vadd.f32 %v6854_v44, %v18193_v50  ;;  %9504 = vmatpush1.bf16.msra.mxu0 %v14135_v10  ;;  %v8739_v33 = vmax.f32 %v11511_v47, 0.0 }
 0x4f2   :  { %v8742_v26 = vmax.f32 %v11512_v6, 0.0  ;;  %8694 = vmatmul.mubr.bf16.gmra.mrb[88].mxu1 %v18135_v62  ;;  %9505 = vmatprep.subr.bf16.mxu0 %v14140_v51 }
 0x4f3   :  { %v8743_v30 = vmax.f32 %v11513_v45, 0.0  ;;  %8703 = vmatprep.mubr.bf16.mxu1 %v18140_v34 }
 0x4f4   :  { %v8854_v1 = vpack.c.bf16 %v8742_v26, %v8738_v14 }
 0x4f5   :  { %v8855_v11 = vpack.c.bf16 %v8743_v30, %v8739_v33  ;;  %v6858_v8 = vpop.f32.mrb[16].mxu0  ;;  %9506 = vmatpush1.bf16.msra.mxu0 %v14138_v21  ;;  %v14150_v21 = vld [vmem:[%s18697_s3 + $0x190] ss:$8 sps:$4 sm:$0xff]  }
 0x4f6   :  { %v11514_v40 = vadd.f32 %v6858_v8, %v18188_v53  ;;  %v6860_v62 = vpop.f32.mrb[17].mxu0  ;;  %9507 = vmatprep.subr.bf16.mxu0 %v14143_v49  ;;  %v14155_v49 = vld [vmem:[%s18697_s3 + $0x1a4] ss:$8 sps:$4 sm:$0xff]  }
 0x4f7   :  { %v11515_v4 = vadd.f32 %v6860_v62, %v18193_v50  ;;  %v6862_v12 = vpop.f32.mrb[18].mxu0  ;;  %9364 = vmatprep.mubr.bf16.mxu0 %v8855_v11 }
 0x4f8   :  { %v11516_v34 = vadd.f32 %v6862_v12, %v18188_v53  ;;  %v6864_v27 = vpop.f32.mrb[19].mxu0  ;;  %9365 = vmatmul.mubr.bf16.gmra.mrb[76].mxu0 %v8854_v1  ;;  %v8746_v16 = vmax.f32 %v11514_v40, 0.0 }
 0x4f9   :  { %v11517_v13 = vadd.f32 %v6864_v27, %v18193_v50  ;;  %9508 = vmatpush1.bf16.msra.mxu0 %v14141_v42  ;;  %v8747_v17 = vmax.f32 %v11515_v4, 0.0  ;;  %v14153_v42 = vld [vmem:[%s18697_s3 + $0x1a0] ss:$8 sps:$4 sm:$0xff]  }
 0x4fa   :  { %v8750_v60 = vmax.f32 %v11516_v34, 0.0  ;;  %8704 = vmatmul.mubr.bf16.gmra.mrb[92].mxu1 %v18149_v29  ;;  %9509 = vmatprep.subr.bf16.mxu0 %v14146_v55  ;;  %v14152_v29 = vld [vmem:[%s18697_s3 + $0x194] ss:$8 sps:$4 sm:$0xff]  }
 0x4fb   :  { %v8751_v25 = vmax.f32 %v11517_v13, 0.0  ;;  %v14158_v55 = vld [vmem:[%s18697_s3 + $0x1b4] ss:$8 sps:$4 sm:$0xff]  }
 0x4fc   :  { %v8858_v46 = vpack.c.bf16 %v8750_v60, %v8746_v16 }
 0x4fd   :  { %v8859_v18 = vpack.c.bf16 %v8751_v25, %v8747_v17  ;;  %v6868_v10 = vpop.f32.mrb[20].mxu0  ;;  %9510 = vmatpush1.bf16.msra.mxu0 %v14144_v19  ;;  %v14156_v19 = vld [vmem:[%s18697_s3 + $0x1b0] ss:$8 sps:$4 sm:$0xff]  }
 0x4fe   :  { %v11518_v54 = vadd.f32 %v6868_v10, %v18188_v53  ;;  %v6870_v51 = vpop.f32.mrb[21].mxu0  ;;  %9511 = vmatprep.subr.bf16.mxu0 %v14149_v57  ;;  %v14161_v57 = vld [vmem:[%s18697_s3 + $0x1c4] ss:$8 sps:$4 sm:$0xff]  }
 0x4ff   :  { %v11519_v47 = vadd.f32 %v6870_v51, %v18193_v50  ;;  %v6872_v7 = vpop.f32.mrb[22].mxu0  ;;  %9374 = vmatprep.mubr.bf16.mxu0 %v8859_v18 }
 0x500   :  { %v11520_v6 = vadd.f32 %v6872_v7, %v18188_v53  ;;  %v6874_v44 = vpop.f32.mrb[23].mxu0  ;;  %9375 = vmatmul.mubr.bf16.gmra.mrb[80].mxu0 %v8858_v46  ;;  %v8754_v14 = vmax.f32 %v11518_v54, 0.0 }
 0x501   :  { %v11521_v45 = vadd.f32 %v6874_v44, %v18193_v50  ;;  %9512 = vmatpush1.bf16.msra.mxu0 %v14147_v23  ;;  %v8755_v33 = vmax.f32 %v11519_v47, 0.0  ;;  %v14159_v23 = vld [vmem:[%s18697_s3 + $0x1c0] ss:$8 sps:$4 sm:$0xff]  }
 0x502   :  { %v8758_v26 = vmax.f32 %v11520_v6, 0.0  ;;  %9513 = vmatprep.subr.bf16.mxu0 %v14152_v29  ;;  %v14164_v29 = vld [vmem:[%s18697_s3 + $0x1d4] ss:$8 sps:$4 sm:$0xff]  }
 0x503   :  { %v8759_v30 = vmax.f32 %v11521_v45, 0.0 }
 0x504   :  { %v8862_v1 = vpack.c.bf16 %v8758_v26, %v8754_v14 }
 0x505   :  { %v8863_v11 = vpack.c.bf16 %v8759_v30, %v8755_v33  ;;  %v6878_v8 = vpop.f32.mrb[24].mxu0  ;;  %9514 = vmatpush1.bf16.msra.mxu0 %v14150_v21  ;;  %v14162_v21 = vld [vmem:[%s18697_s3 + $0x1d0] ss:$8 sps:$4 sm:$0xff]  }
 0x506   :  { %v11522_v40 = vadd.f32 %v6878_v8, %v18188_v53  ;;  %v6880_v62 = vpop.f32.mrb[25].mxu0  ;;  %9515 = vmatprep.subr.bf16.mxu0 %v14155_v49  ;;  %v14167_v49 = vld [vmem:[%s18697_s3 + $0x1e4] ss:$8 sps:$4 sm:$0xff]   ;;  %v5357_v8 = vadd.f32 %v15271_v37, %v18193_v50  ;;  %v5361_v37 = vadd.f32 %v15287_v2, %v18193_v50  ;;  %v5365_v2 = vadd.f32 %v15310_v52, %v18188_v53 }
 0x507   :  { %v11523_v4 = vadd.f32 %v6880_v62, %v18193_v50  ;;  %v6882_v12 = vpop.f32.mrb[26].mxu0  ;;  %9384 = vmatprep.mubr.bf16.mxu0 %v8863_v11  ;;  %v14165_v62 = vld [vmem:[%s18697_s3 + $0x1e0] ss:$8 sps:$4 sm:$0xff]  }
 0x508   :  { %v11524_v34 = vadd.f32 %v6882_v12, %v18188_v53  ;;  %v6884_v27 = vpop.f32.mrb[27].mxu0  ;;  %9385 = vmatmul.mubr.bf16.gmra.mrb[84].mxu0 %v8862_v1  ;;  %v8762_v16 = vmax.f32 %v11522_v40, 0.0  ;;  %v5355_v1 = vadd.f32 %v15266_v36, %v18188_v53  ;;  %v14170_v36 = vld [vmem:[%s18697_s3 + $0x1f4] ss:$8 sps:$4 sm:$0xff]  }
 0x509   :  { %v11525_v13 = vadd.f32 %v6884_v27, %v18193_v50  ;;  %9516 = vmatpush1.bf16.msra.mxu0 %v14153_v42  ;;  %v8763_v17 = vmax.f32 %v11523_v4, 0.0 }
 0x50a   :  { %v8766_v60 = vmax.f32 %v11524_v34, 0.0  ;;  %9517 = vmatprep.subr.bf16.mxu0 %v14158_v55  ;;  %v5359_v55 = vadd.f32 %v15279_v39, %v18188_v53  ;;  %v14168_v39 = vld [vmem:[%s18697_s3 + $0x1f0] ss:$8 sps:$4 sm:$0xff]  }
 0x50b   :  { %v8767_v25 = vmax.f32 %v11525_v13, 0.0 }
 0x50c   :  { %v8866_v46 = vpack.c.bf16 %v8766_v60, %v8762_v16 }
 0x50d   :  { %v8867_v18 = vpack.c.bf16 %v8767_v25, %v8763_v17  ;;  %v6888_v10 = vpop.f32.mrb[28].mxu0  ;;  %9518 = vmatpush1.bf16.msra.mxu0 %v14156_v19 }
 0x50e   :  { %v11526_v54 = vadd.f32 %v6888_v10, %v18188_v53  ;;  %v6890_v51 = vpop.f32.mrb[29].mxu0  ;;  %9519 = vmatprep.subr.bf16.mxu0 %v14161_v57 }
 0x50f   :  { %v11527_v47 = vadd.f32 %v6890_v51, %v18193_v50  ;;  %v6892_v7 = vpop.f32.mrb[30].mxu0  ;;  %9394 = vmatprep.mubr.bf16.mxu0 %v8867_v18  ;;  %v5367_v18 = vadd.f32 %v15315_v15, %v18193_v50 }
 0x510   :  { %v11528_v6 = vadd.f32 %v6892_v7, %v18188_v53  ;;  %v6894_v44 = vpop.f32.mrb[31].mxu0  ;;  %9395 = vmatmul.mubr.bf16.gmra.mrb[88].mxu0 %v8866_v46  ;;  %v8770_v14 = vmax.f32 %v11526_v54, 0.0  ;;  %v5369_v54 = vadd.f32 %v15323_v58, %v18188_v53 }
 0x511   :  { %v11529_v45 = vadd.f32 %v6894_v44, %v18193_v50  ;;  %9520 = vmatpush1.bf16.msra.mxu0 %v14159_v23  ;;  %v8771_v33 = vmax.f32 %v11527_v47, 0.0  ;;  %v5371_v47 = vadd.f32 %v15331_v0, %v18193_v50 }
 0x512   :  { %v8774_v26 = vmax.f32 %v11528_v6, 0.0  ;;  %9521 = vmatprep.subr.bf16.mxu0 %v14164_v29 }
 0x513   :  { %v8775_v30 = vmax.f32 %v11529_v45, 0.0 }
 0x514   :  { %v8870_v11 = vpack.c.bf16 %v8774_v26, %v8770_v14 }
 0x515   :  { %v8871_v42 = vpack.c.bf16 %v8775_v30, %v8771_v33  ;;  %v6898_v40 = vpop.f32.mrb[32].mxu0  ;;  %9522 = vmatpush1.bf16.msra.mxu0 %v14162_v21  ;;  %v5377_v33 = vadd.f32 %v15359_v56, %v18193_v50 }
 0x516   :  { %v11531_v4 = vadd.f32 %v6898_v40, %v5355_v1  ;;  %v6900_v12 = vpop.f32.mrb[33].mxu0  ;;  %9523 = vmatprep.subr.bf16.mxu0 %v14167_v49  ;;  %v5375_v49 = vadd.f32 %v15354_v9, %v18188_v53  ;;  %v5379_v1 = vadd.f32 %v15367_v63, %v18188_v53 }
 0x517   :  { %v11533_v34 = vadd.f32 %v6900_v12, %v5357_v8  ;;  %v6902_v27 = vpop.f32.mrb[34].mxu0  ;;  %9404 = vmatprep.mubr.bf16.mxu0 %v8871_v42  ;;  %v5381_v42 = vadd.f32 %v15375_v32, %v18193_v50 }
 0x518   :  { %v11535_v13 = vadd.f32 %v6902_v27, %v5359_v55  ;;  %v6904_v19 = vpop.f32.mrb[35].mxu0  ;;  %9405 = vmatmul.mubr.bf16.gmra.mrb[92].mxu0 %v8870_v11  ;;  %v8778_v60 = vmax.f32 %v11531_v4, 0.0  ;;  %v5387_v27 = vadd.f32 %v15403_v24, %v18193_v50 }
 0x519   :  { %v11537_v16 = vadd.f32 %v6904_v19, %v5361_v37  ;;  %9524 = vmatpush1.bf16.msra.mxu0 %v14165_v62  ;;  %v8779_v17 = vmax.f32 %v11533_v34, 0.0  ;;  %v5385_v34 = vadd.f32 %v15398_v35, %v18188_v53  ;;  %v5389_v19 = vadd.f32 %v15411_v22, %v18188_v53 }
 0x51a   :  { %v8782_v57 = vmax.f32 %v11535_v13, 0.0  ;;  %9525 = vmatprep.subr.bf16.mxu0 %v14170_v36 }
 0x51b   :  { %v8783_v25 = vmax.f32 %v11537_v16, 0.0 }
 0x51c   :  { %v8874_v46 = vpack.c.bf16 %v8782_v57, %v8778_v60  ;;  %v5391_v60 = vadd.f32 %v15419_v28, %v18193_v50 }
 0x51d   :  { %v8875_v10 = vpack.c.bf16 %v8783_v25, %v8779_v17  ;;  %v6908_v23 = vpop.f32.mrb[36].mxu0  ;;  %9526 = vmatpush1.bf16.msra.mxu0 %v14168_v39 }
 0x51e   :  { %v11539_v51 = vadd.f32 %v6908_v23, %v5365_v2  ;;  %v6910_v29 = vpop.f32.mrb[37].mxu0  ;;  %v5395_v23 = vadd.f32 %v15442_v31, %v18188_v53 }
 0x51f   :  { %v11541_v7 = vadd.f32 %v6910_v29, %v5367_v18  ;;  %v6912_v6 = vpop.f32.mrb[38].mxu0  ;;  %9414 = vmatprep.mubr.bf16.mxu0 %v8875_v10  ;;  %v5399_v29 = vadd.f32 %v15455_v43, %v18188_v53 }
 0x520   :  { %v11543_v44 = vadd.f32 %v6912_v6, %v5369_v54  ;;  %v6914_v52 = vpop.f32.mrb[39].mxu0  ;;  %9415 = vmatmul.mubr.bf16.gmra.mrb[96].mxu0 %v8874_v46  ;;  %v8786_v21 = vmax.f32 %v11539_v51, 0.0  ;;  %v5397_v54 = vadd.f32 %v15447_v38, %v18193_v50  ;;  %v5401_v6 = vadd.f32 %v15463_v48, %v18193_v50 }
 0x521   :  { %v11545_v45 = vadd.f32 %v6914_v52, %v5371_v47  ;;  %v8787_v14 = vmax.f32 %v11541_v7, 0.0 }
 0x522   :  { %v8790_v15 = vmax.f32 %v11543_v44, 0.0 }
 0x523   :  { %v8791_v26 = vmax.f32 %v11545_v45, 0.0 }
 0x524   :  { %v8878_v58 = vpack.c.bf16 %v8790_v15, %v8786_v21 }
 0x525   :  { %v8879_v30 = vpack.c.bf16 %v8791_v26, %v8787_v14  ;;  %v6918_v0 = vpop.f32.mrb[40].mxu0 }
 0x526   :  { %v11547_v11 = vadd.f32 %v6918_v0, %v5375_v49  ;;  %v6920_v8 = vpop.f32.mrb[41].mxu0  ;;  %v5405_v49 = vadd.f32 %v15486_v61, %v18188_v53 }
 0x527   :  { %v11549_v40 = vadd.f32 %v6920_v8, %v5377_v33  ;;  %v6922_v62 = vpop.f32.mrb[42].mxu0  ;;  %9424 = vmatprep.mubr.bf16.mxu0 %v8879_v30  ;;  %v18714_v30 = vld [vmem:[#allocation5_spill] sm:$0xff]  ;;  %v18715_v8 = vld [vmem:[#allocation6_spill] sm:$0xff] }
 0x528   :  { %v11551_v55 = vadd.f32 %v6922_v62, %v5379_v1  ;;  %v6924_v4 = vpop.f32.mrb[43].mxu0  ;;  %9425 = vmatmul.mubr.bf16.gmra.mrb[100].mxu0 %v8878_v58  ;;  %v8794_v12 = vmax.f32 %v11547_v11, 0.0  ;;  %v5407_v58 = vadd.f32 %v15491_v3, %v18193_v50  ;;  %v5409_v0 = vadd.f32 %v18714_v30, %v18188_v53  ;;  %v14171_v3 = vld [vmem:[%s18699_s5 + $0x40] sm:$0xff]  }
 0x529   :  { %v11553_v9 = vadd.f32 %v6924_v4, %v5381_v42  ;;  %v8795_v56 = vmax.f32 %v11549_v40, 0.0  ;;  %v5411_v42 = vadd.f32 %v18715_v8, %v18193_v50  ;;  %11332 = vmatprep.subr.bf16.mxu1 %v14171_v3 }
 0x52a   :  { %v8798_v36 = vmax.f32 %v11551_v55, 0.0 }
 0x52b   :  { %v8799_v37 = vmax.f32 %v11553_v9, 0.0 }
 0x52c   :  { %v8882_v63 = vpack.c.bf16 %v8798_v36, %v8794_v12 }
 0x52d   :  { %v8883_v13 = vpack.c.bf16 %v8799_v37, %v8795_v56  ;;  %v6928_v32 = vpop.f32.mrb[44].mxu0  ;;  %v18716_v37 = vld [vmem:[#allocation7_spill] sm:$0xff] }
 0x52e   :  { %v11555_v16 = vadd.f32 %v6928_v32, %v5385_v34  ;;  %v6930_v39 = vpop.f32.mrb[45].mxu0  ;;  %v5415_v34 = vadd.f32 %v18716_v37, %v18188_v53  ;;  %v14176_v37 = vld [vmem:[%s18699_s5 + $0x10] sm:$0xff]  }
 0x52f   :  { %v11557_v57 = vadd.f32 %v6930_v39, %v5387_v27  ;;  %v6932_v17 = vpop.f32.mrb[46].mxu0  ;;  %9434 = vmatprep.mubr.bf16.mxu0 %v8883_v13  ;;  %v14172_v27 = vld [vmem:[%s18699_s5] sm:$0xff]  }
 0x530   :  { %v11559_v25 = vadd.f32 %v6932_v17, %v5389_v19  ;;  %v6934_v2 = vpop.f32.mrb[47].mxu0  ;;  %9435 = vmatmul.mubr.bf16.gmra.mrb[104].mxu0 %v8882_v63  ;;  %v8802_v46 = vmax.f32 %v11555_v16, 0.0  ;;  %v18717_v13 = vld [vmem:[#allocation8_spill] sm:$0xff]  ;;  %v18718_v39 = vld [vmem:[#allocation9_spill] sm:$0xff]  ;;  %11333 = vmatpush3.bf16.msra.mxu1 %v14172_v27 }
 0x531   :  { %v11561_v35 = vadd.f32 %v6934_v2, %v5391_v60  ;;  %v8803_v24 = vmax.f32 %v11557_v57, 0.0  ;;  %v5417_v32 = vadd.f32 %v18717_v13, %v18193_v50  ;;  %v5419_v60 = vadd.f32 %v18718_v39, %v18188_v53 }
 0x532   :  { %v8806_v18 = vmax.f32 %v11559_v25, 0.0  ;;  %v18719_v25 = vld [vmem:[#allocation10_spill] sm:$0xff] }
 0x533   :  { %v8807_v10 = vmax.f32 %v11561_v35, 0.0  ;;  %v5421_v2 = vadd.f32 %v18719_v25, %v18193_v50 }
 0x534   :  { %v8886_v22 = vpack.c.bf16 %v8806_v18, %v8802_v46 }
 0x535   :  { %v8887_v51 = vpack.c.bf16 %v8807_v10, %v8803_v24  ;;  %v6938_v28 = vpop.f32.mrb[48].mxu0 }
 0x536   :  { %v11563_v47 = vadd.f32 %v6938_v28, %v5395_v23  ;;  %v6940_v7 = vpop.f32.mrb[49].mxu0  ;;  %v18720_v28 = vld [vmem:[#allocation11_spill] sm:$0xff] }
 0x537   :  { %v11565_v44 = vadd.f32 %v6940_v7, %v5397_v54  ;;  %v6942_v52 = vpop.f32.mrb[50].mxu0  ;;  %9444 = vmatprep.mubr.bf16.mxu0 %v8887_v51  ;;  %v18721_v7 = vld [vmem:[#allocation12_spill] sm:$0xff] }
 0x538   :  { %v11567_v45 = vadd.f32 %v6942_v52, %v5399_v29  ;;  %v6944_v21 = vpop.f32.mrb[51].mxu0  ;;  %9445 = vmatmul.mubr.bf16.gmra.mrb[108].mxu0 %v8886_v22  ;;  %v8810_v15 = vmax.f32 %v11563_v47, 0.0  ;;  %v5425_v29 = vadd.f32 %v18720_v28, %v18188_v53 }
 0x539   :  { %v11569_v31 = vadd.f32 %v6944_v21, %v5401_v6  ;;  %v8811_v38 = vmax.f32 %v11565_v44, 0.0  ;;  %v5427_v6 = vadd.f32 %v18721_v7, %v18193_v50 }
 0x53a   :  { %v8814_v14 = vmax.f32 %v11567_v45, 0.0  ;;  %v18722_v45 = vld [vmem:[#allocation13_spill] sm:$0xff] }
 0x53b   :  { %v8815_v26 = vmax.f32 %v11569_v31, 0.0  ;;  %v5429_v21 = vadd.f32 %v18722_v45, %v18188_v53  ;;  %v14173_v53 = vld [vmem:[%s18699_s5 + $0x48] sm:$0xff]  }
 0x53c   :  { %v8890_v43 = vpack.c.bf16 %v8814_v14, %v8810_v15  ;;  %v910_v14 = vsub.s32 2, %v18174_v41  ;;  %11334 = vmatprep.subr.bf16.mxu1 %v14173_v53  ;;  %v14186_v53 = vld [vmem:[%s18699_s5 + $0x38] sm:$0xff]  }
 0x53d   :  { %v8891_v33 = vpack.c.bf16 %v8815_v26, %v8811_v38  ;;  %v6948_v48 = vpop.f32.mrb[52].mxu0  ;;  %v18723_v38 = vld [vmem:[#allocation14_spill] sm:$0xff] }
 0x53e   :  { %v11571_v1 = vadd.f32 %v6948_v48, %v5405_v49  ;;  %v6950_v11 = vpop.f32.mrb[53].mxu0  ;;  %v5431_v26 = vadd.f32 %v18723_v38, %v18193_v50 }
 0x53f   :  { %v11573_v40 = vadd.f32 %v6950_v11, %v5407_v58  ;;  %v6952_v62 = vpop.f32.mrb[54].mxu0  ;;  %9454 = vmatprep.mubr.bf16.mxu0 %v8891_v33  ;;  %v914_v58 = vsub.s32 3, %v18174_v41  ;;  %v18405_v11 = vrot.slane %v18180_v20, %v910_v14  ;;  %v14184_v14 = vld [vmem:[%s18699_s5 + $0x30] sm:$0xff]  }
 0x540   :  { %v11575_v55 = vadd.f32 %v6952_v62, %v5409_v0  ;;  %v6954_v4 = vpop.f32.mrb[55].mxu0  ;;  %9455 = vmatmul.mubr.bf16.gmra.mrb[112].mxu0 %v8890_v43  ;;  %v8818_v9 = vmax.f32 %v11571_v1, 0.0  ;;  %v14174_v62 = vld [vmem:[%s18699_s5 + $0x8] sm:$0xff]  }
 0x541   :  { %v11577_v61 = vadd.f32 %v6954_v4, %v5411_v42  ;;  %v8819_v36 = vmax.f32 %v11573_v40, 0.0  ;;  %v18408_v42 = vrot.slane %v18180_v20, %v914_v58  ;;  %11335 = vmatpush3.bf16.msra.mxu1 %v14174_v62 }
 0x542   :  { %v8822_v12 = vmax.f32 %v11575_v55, 0.0 }
 0x543   :  { %v8823_v56 = vmax.f32 %v11577_v61, 0.0 }
 0x544   :  { %v8894_v63 = vpack.c.bf16 %v8822_v12, %v8818_v9 }
 0x545   :  { %v8895_v19 = vpack.c.bf16 %v8823_v56, %v8819_v36  ;;  %v6958_v16 = vpop.f32.mrb[56].mxu0  ;;  %v14175_v56 = vld [vmem:[%s18699_s5 + $0x50] sm:$0xff]  }
 0x546   :  { %v11579_v57 = vadd.f32 %v6958_v16, %v5415_v34  ;;  %v6960_v17 = vpop.f32.mrb[57].mxu0  ;;  %v14177_v34 = vld [vmem:[%s18699_s5 + $0x58] sm:$0xff]   ;;  %11336 = vmatprep.subr.bf16.mxu1 %v14175_v56 }
 0x547   :  { %v11581_v35 = vadd.f32 %v6960_v17, %v5417_v32  ;;  %v6962_v46 = vpop.f32.mrb[58].mxu0  ;;  %9464 = vmatprep.mubr.bf16.mxu0 %v8895_v19  ;;  %11337 = vmatpush3.bf16.msra.mxu1 %v14176_v37  ;;  %v14178_v16 = vld [vmem:[%s18699_s5 + $0x18] sm:$0xff]  }
 0x548   :  { %v11583_v18 = vadd.f32 %v6962_v46, %v5419_v60  ;;  %v6964_v24 = vpop.f32.mrb[59].mxu0  ;;  %9465 = vmatmul.mubr.bf16.gmra.mrb[116].mxu0 %v8894_v63  ;;  %v8826_v23 = vmax.f32 %v11579_v57, 0.0  ;;  %11338 = vmatprep.subr.bf16.mxu1 %v14177_v34  ;;  %v14179_v60 = vld [vmem:[%s18699_s5 + $0x60] sm:$0xff]  }
 0x549   :  { %v11585_v10 = vadd.f32 %v6964_v24, %v5421_v2  ;;  %v8827_v54 = vmax.f32 %v11581_v35, 0.0 }
 0x54a   :  { %v8830_v22 = vmax.f32 %v11583_v18, 0.0  ;;  %v14180_v18 = vld [vmem:[%s18699_s5 + $0x20] sm:$0xff]  }
 0x54b   :  { %v8831_v51 = vmax.f32 %v11585_v10, 0.0  ;;  %11339 = vmatpush3.bf16.msra.mxu1 %v14178_v16 }
 0x54c   :  { %v8898_v47 = vpack.c.bf16 %v8830_v22, %v8826_v23  ;;  %11340 = vmatprep.subr.bf16.mxu1 %v14179_v60  ;;  %v14181_v23 = vld [vmem:[%s18699_s5 + $0x68] sm:$0xff]  }
 0x54d   :  { %v8899_v44 = vpack.c.bf16 %v8831_v51, %v8827_v54  ;;  %v6968_v52 = vpop.f32.mrb[60].mxu0 }
 0x54e   :  { %v11587_v31 = vadd.f32 %v6968_v52, %v5425_v29  ;;  %v6970_v15 = vpop.f32.mrb[61].mxu0 }
 0x54f   :  { %v11589_v49 = vadd.f32 %v6970_v15, %v5427_v6  ;;  %v6972_v43 = vpop.f32.mrb[62].mxu0  ;;  %9474 = vmatprep.mubr.bf16.mxu0 %v8899_v44  ;;  %11341 = vmatpush3.bf16.msra.mxu1 %v14180_v18  ;;  %v14183_v6 = vld [vmem:[%s18699_s5 + $0x70] sm:$0xff]  }
 0x550   :  { %v11591_v33 = vadd.f32 %v6972_v43, %v5429_v21  ;;  %v6974_v48 = vpop.f32.mrb[63].mxu0  ;;  %9475 = vmatmul.mubr.bf16.gmra.mrb[120].mxu0 %v8898_v47  ;;  %v8834_v0 = vmax.f32 %v11587_v31, 0.0  ;;  %v14182_v47 = vld [vmem:[%s18699_s5 + $0x28] sm:$0xff]   ;;  %11342 = vmatprep.subr.bf16.mxu1 %v14181_v23 }
 0x551   :  { %v11593_v30 = vadd.f32 %v6974_v48, %v5431_v26  ;;  %v8835_v8 = vmax.f32 %v11589_v49, 0.0  ;;  %v14185_v49 = vld [vmem:[%s18699_s5 + $0x78] sm:$0xff]  }
 0x552   :  { %v8838_v1 = vmax.f32 %v11591_v33, 0.0 }
 0x553   :  { %v8839_v50 = vmax.f32 %v11593_v30, 0.0  ;;  %11343 = vmatpush3.bf16.msra.mxu1 %v14182_v47 }
 0x554   :  { %v8902_v40 = vpack.c.bf16 %v8838_v1, %v8834_v0  ;;  %11344 = vmatprep.subr.bf16.mxu1 %v14183_v6 }
 0x555   :  { %v8903_v55 = vpack.c.bf16 %v8839_v50, %v8835_v8  ;;  %v8555_v4 = vpop.f32.mrb[32].mxu1 }
 0x556   :  { %v11594_v61 = vadd.f32 %v8555_v4, %v18405_v11  ;;  %v8557_v3 = vpop.f32.mrb[33].mxu1 }
 0x557   :  { %v11595_v9 = vadd.f32 %v8557_v3, %v18408_v42  ;;  %v8559_v12 = vpop.f32.mrb[34].mxu1  ;;  %9484 = vmatprep.mubr.bf16.mxu0 %v8903_v55  ;;  %11345 = vmatpush3.bf16.msra.mxu1 %v14184_v14 }
 0x558   :  { %v11596_v36 = vadd.f32 %v8559_v12, %v18405_v11  ;;  %v8561_v20 = vpop.f32.mrb[35].mxu1  ;;  %9485 = vmatmul.mubr.bf16.gmra.mrb[124].mxu0 %v8902_v40  ;;  %v8716_v27 = vmax.f32 %v11594_v61, 0.0  ;;  %11346 = vmatprep.subr.bf16.mxu1 %v14185_v49 }
 0x559   :  { %v11597_v63 = vadd.f32 %v8561_v20, %v18408_v42  ;;  %v8717_v32 = vmax.f32 %v11595_v9, 0.0 }
 0x55a   :  { %v8720_v13 = vmax.f32 %v11596_v36, 0.0 }
 0x55b   :  { %v8721_v19 = vmax.f32 %v11597_v63, 0.0  ;;  %11347 = vmatpush3.bf16.msra.mxu1 %v14186_v53 }
 0x55c   :  { %v8844_v39 = vpack.c.bf16 %v8720_v13, %v8716_v27 }
 0x55d   :  { %v8845_v57 = vpack.c.bf16 %v8721_v19, %v8717_v32  ;;  %v8565_v17 = vpop.f32.mrb[36].mxu1 }
 0x55e   :  { %v11598_v25 = vadd.f32 %v8565_v17, %v18405_v11  ;;  %v8567_v2 = vpop.f32.mrb[37].mxu1 }
 0x55f   :  { %v11599_v35 = vadd.f32 %v8567_v2, %v18408_v42  ;;  %v8569_v46 = vpop.f32.mrb[38].mxu1  ;;  %9527 = vmatprep.mubr.bf16.mxu0 %v8845_v57 }
 0x560   :  { %v11600_v24 = vadd.f32 %v8569_v46, %v18405_v11  ;;  %v8571_v10 = vpop.f32.mrb[39].mxu1  ;;  %9528 = vmatmul.mubr.bf16.vlgmr.msra.gmra.mrb[64].mxu0 %v8844_v39  ;;  %v8724_v54 = vmax.f32 %v11598_v25, 0.0 }
 0x561   :  { %v11601_v22 = vadd.f32 %v8571_v10, %v18408_v42  ;;  %v8725_v28 = vmax.f32 %v11599_v35, 0.0 }
 0x562   :  { %v8728_v51 = vmax.f32 %v11600_v24, 0.0 }
 0x563   :  { %v8729_v29 = vmax.f32 %v11601_v22, 0.0 }
 0x564   :  { %v8848_v7 = vpack.c.bf16 %v8728_v51, %v8724_v54 }
 0x565   :  { %v8849_v44 = vpack.c.bf16 %v8729_v29, %v8725_v28  ;;  %v8575_v52 = vpop.f32.mrb[40].mxu1 }
 0x566   :  { %v11602_v45 = vadd.f32 %v8575_v52, %v18405_v11  ;;  %v8577_v21 = vpop.f32.mrb[41].mxu1 }
 0x567   :  { %v11603_v31 = vadd.f32 %v8577_v21, %v18408_v42  ;;  %v8579_v15 = vpop.f32.mrb[42].mxu1  ;;  %9537 = vmatprep.mubr.bf16.mxu0 %v8849_v44 }
 0x568   :  { %v11604_v38 = vadd.f32 %v8579_v15, %v18405_v11  ;;  %v8581_v26 = vpop.f32.mrb[43].mxu1  ;;  %9538 = vmatmul.mubr.bf16.gmra.mrb[68].mxu0 %v8848_v7  ;;  %v8732_v58 = vmax.f32 %v11602_v45, 0.0 }
 0x569   :  { %v11605_v43 = vadd.f32 %v8581_v26, %v18408_v42  ;;  %v8733_v48 = vmax.f32 %v11603_v31, 0.0 }
 0x56a   :  { %v8736_v33 = vmax.f32 %v11604_v38, 0.0 }
 0x56b   :  { %v8737_v30 = vmax.f32 %v11605_v43, 0.0 }
 0x56c   :  { %v8852_v0 = vpack.c.bf16 %v8736_v33, %v8732_v58 }
 0x56d   :  { %v8853_v1 = vpack.c.bf16 %v8737_v30, %v8733_v48  ;;  %v8585_v8 = vpop.f32.mrb[44].mxu1 }
 0x56e   :  { %v11606_v50 = vadd.f32 %v8585_v8, %v18405_v11  ;;  %v8587_v40 = vpop.f32.mrb[45].mxu1 }
 0x56f   :  { %v11607_v62 = vadd.f32 %v8587_v40, %v18408_v42  ;;  %v8589_v55 = vpop.f32.mrb[46].mxu1  ;;  %9547 = vmatprep.mubr.bf16.mxu0 %v8853_v1 }
 0x570   :  { %v11608_v4 = vadd.f32 %v8589_v55, %v18405_v11  ;;  %v8591_v61 = vpop.f32.mrb[47].mxu1  ;;  %9548 = vmatmul.mubr.bf16.gmra.mrb[72].mxu0 %v8852_v0  ;;  %v8740_v9 = vmax.f32 %v11606_v50, 0.0 }
 0x571   :  { %v11609_v3 = vadd.f32 %v8591_v61, %v18408_v42  ;;  %v8741_v36 = vmax.f32 %v11607_v62, 0.0 }
 0x572   :  { %v8744_v12 = vmax.f32 %v11608_v4, 0.0 }
 0x573   :  { %v8745_v20 = vmax.f32 %v11609_v3, 0.0 }
 0x574   :  { %v8856_v56 = vpack.c.bf16 %v8744_v12, %v8740_v9 }
 0x575   :  { %v8857_v37 = vpack.c.bf16 %v8745_v20, %v8741_v36  ;;  %v8595_v34 = vpop.f32.mrb[48].mxu1 }
 0x576   :  { %v11610_v63 = vadd.f32 %v8595_v34, %v18405_v11  ;;  %v8597_v27 = vpop.f32.mrb[49].mxu1 }
 0x577   :  { %v11611_v13 = vadd.f32 %v8597_v27, %v18408_v42  ;;  %v8599_v32 = vpop.f32.mrb[50].mxu1  ;;  %9557 = vmatprep.mubr.bf16.mxu0 %v8857_v37 }
 0x578   :  { %v11612_v19 = vadd.f32 %v8599_v32, %v18405_v11  ;;  %v8601_v16 = vpop.f32.mrb[51].mxu1  ;;  %9558 = vmatmul.mubr.bf16.gmra.mrb[76].mxu0 %v8856_v56  ;;  %v8748_v60 = vmax.f32 %v11610_v63, 0.0 }
 0x579   :  { %v11613_v39 = vadd.f32 %v8601_v16, %v18408_v42  ;;  %v8749_v17 = vmax.f32 %v11611_v13, 0.0 }
 0x57a   :  { %v8752_v57 = vmax.f32 %v11612_v19, 0.0 }
 0x57b   :  { %v8753_v25 = vmax.f32 %v11613_v39, 0.0 }
 0x57c   :  { %v8860_v2 = vpack.c.bf16 %v8752_v57, %v8748_v60 }
 0x57d   :  { %v8861_v35 = vpack.c.bf16 %v8753_v25, %v8749_v17  ;;  %v8605_v46 = vpop.f32.mrb[52].mxu1 }
 0x57e   :  { %v11614_v18 = vadd.f32 %v8605_v46, %v18405_v11  ;;  %v8607_v24 = vpop.f32.mrb[53].mxu1 }
 0x57f   :  { %v11615_v10 = vadd.f32 %v8607_v24, %v18408_v42  ;;  %v8609_v23 = vpop.f32.mrb[54].mxu1  ;;  %9567 = vmatprep.mubr.bf16.mxu0 %v8861_v35 }
 0x580   :  { %v11616_v22 = vadd.f32 %v8609_v23, %v18405_v11  ;;  %v8611_v54 = vpop.f32.mrb[55].mxu1  ;;  %9568 = vmatmul.mubr.bf16.gmra.mrb[80].mxu0 %v8860_v2  ;;  %v8756_v28 = vmax.f32 %v11614_v18, 0.0 }
 0x581   :  { %v11617_v51 = vadd.f32 %v8611_v54, %v18408_v42  ;;  %v8757_v47 = vmax.f32 %v11615_v10, 0.0 }
 0x582   :  { %v8760_v29 = vmax.f32 %v11616_v22, 0.0 }
 0x583   :  { %v8761_v7 = vmax.f32 %v11617_v51, 0.0 }
 0x584   :  { %v8864_v6 = vpack.c.bf16 %v8760_v29, %v8756_v28 }
 0x585   :  { %v8865_v44 = vpack.c.bf16 %v8761_v7, %v8757_v47  ;;  %v8615_v52 = vpop.f32.mrb[56].mxu1 }
 0x586   :  { %v11618_v45 = vadd.f32 %v8615_v52, %v18405_v11  ;;  %v8617_v21 = vpop.f32.mrb[57].mxu1 }
 0x587   :  { %v11619_v31 = vadd.f32 %v8617_v21, %v18408_v42  ;;  %v8619_v15 = vpop.f32.mrb[58].mxu1  ;;  %9577 = vmatprep.mubr.bf16.mxu0 %v8865_v44 }
 0x588   :  { %v11620_v14 = vadd.f32 %v8619_v15, %v18405_v11  ;;  %v8621_v38 = vpop.f32.mrb[59].mxu1  ;;  %9578 = vmatmul.mubr.bf16.gmra.mrb[84].mxu0 %v8864_v6  ;;  %v8764_v49 = vmax.f32 %v11618_v45, 0.0 }
 0x589   :  { %v11621_v26 = vadd.f32 %v8621_v38, %v18408_v42  ;;  %v8765_v58 = vmax.f32 %v11619_v31, 0.0 }
 0x58a   :  { %v8768_v43 = vmax.f32 %v11620_v14, 0.0 }
 0x58b   :  { %v8769_v33 = vmax.f32 %v11621_v26, 0.0 }
 0x58c   :  { %v8868_v48 = vpack.c.bf16 %v8768_v43, %v8764_v49 }
 0x58d   :  { %v8869_v30 = vpack.c.bf16 %v8769_v33, %v8765_v58  ;;  %v8625_v53 = vpop.f32.mrb[60].mxu1 }
 0x58e   :  { %v11622_v0 = vadd.f32 %v8625_v53, %v18405_v11  ;;  %v8627_v1 = vpop.f32.mrb[61].mxu1 }
 0x58f   :  { %v11623_v8 = vadd.f32 %v8627_v1, %v18408_v42  ;;  %v8629_v50 = vpop.f32.mrb[62].mxu1  ;;  %9587 = vmatprep.mubr.bf16.mxu0 %v8869_v30 }
 0x590   :  { %v11624_v40 = vadd.f32 %v8629_v50, %v18405_v11  ;;  %v8631_v62 = vpop.f32.mrb[63].mxu1  ;;  %9588 = vmatmul.mubr.bf16.gmra.mrb[88].mxu0 %v8868_v48  ;;  %v8772_v4 = vmax.f32 %v11622_v0, 0.0 }
 0x591   :  { %v11625_v55 = vadd.f32 %v8631_v62, %v18408_v42  ;;  %v8773_v3 = vmax.f32 %v11623_v8, 0.0 }
 0x592   :  { %v8776_v61 = vmax.f32 %v11624_v40, 0.0 }
 0x593   :  { %v8777_v9 = vmax.f32 %v11625_v55, 0.0 }
 0x594   :  { %v8872_v12 = vpack.c.bf16 %v8776_v61, %v8772_v4 }
 0x595   :  { %v8873_v36 = vpack.c.bf16 %v8777_v9, %v8773_v3  ;;  %v8635_v20 = vpop.f32.mrb[64].mxu1 }
 0x596   :  { %v11626_v56 = vadd.f32 %v8635_v20, %v18405_v11  ;;  %v8637_v37 = vpop.f32.mrb[65].mxu1 }
 0x597   :  { %v11627_v34 = vadd.f32 %v8637_v37, %v18408_v42  ;;  %v8639_v63 = vpop.f32.mrb[66].mxu1  ;;  %9597 = vmatprep.mubr.bf16.mxu0 %v8873_v36 }
 0x598   :  { %v11628_v27 = vadd.f32 %v8639_v63, %v18405_v11  ;;  %v8641_v13 = vpop.f32.mrb[67].mxu1  ;;  %9598 = vmatmul.mubr.bf16.gmra.mrb[92].mxu0 %v8872_v12  ;;  %v8780_v19 = vmax.f32 %v11626_v56, 0.0 }
 0x599   :  { %v11629_v32 = vadd.f32 %v8641_v13, %v18408_v42  ;;  %v8781_v39 = vmax.f32 %v11627_v34, 0.0 }
 0x59a   :  { %v8784_v16 = vmax.f32 %v11628_v27, 0.0 }
 0x59b   :  { %v8785_v60 = vmax.f32 %v11629_v32, 0.0 }
 0x59c   :  { %v8876_v57 = vpack.c.bf16 %v8784_v16, %v8780_v19 }
 0x59d   :  { %v8877_v17 = vpack.c.bf16 %v8785_v60, %v8781_v39  ;;  %v8645_v25 = vpop.f32.mrb[68].mxu1 }
 0x59e   :  { %v11630_v2 = vadd.f32 %v8645_v25, %v18405_v11  ;;  %v8647_v35 = vpop.f32.mrb[69].mxu1 }
 0x59f   :  { %v11631_v46 = vadd.f32 %v8647_v35, %v18408_v42  ;;  %v8649_v18 = vpop.f32.mrb[70].mxu1  ;;  %9607 = vmatprep.mubr.bf16.mxu0 %v8877_v17 }
 0x5a0   :  { %v11632_v24 = vadd.f32 %v8649_v18, %v18405_v11  ;;  %v8651_v10 = vpop.f32.mrb[71].mxu1  ;;  %9608 = vmatmul.mubr.bf16.gmra.mrb[96].mxu0 %v8876_v57  ;;  %v8788_v22 = vmax.f32 %v11630_v2, 0.0 }
 0x5a1   :  { %v11633_v23 = vadd.f32 %v8651_v10, %v18408_v42  ;;  %v8789_v51 = vmax.f32 %v11631_v46, 0.0 }
 0x5a2   :  { %v8792_v54 = vmax.f32 %v11632_v24, 0.0 }
 0x5a3   :  { %v8793_v28 = vmax.f32 %v11633_v23, 0.0 }
 0x5a4   :  { %v8880_v29 = vpack.c.bf16 %v8792_v54, %v8788_v22 }
 0x5a5   :  { %v8881_v47 = vpack.c.bf16 %v8793_v28, %v8789_v51  ;;  %v8655_v7 = vpop.f32.mrb[72].mxu1 }
 0x5a6   :  { %v11634_v6 = vadd.f32 %v8655_v7, %v18405_v11  ;;  %v8657_v44 = vpop.f32.mrb[73].mxu1 }
 0x5a7   :  { %v11635_v52 = vadd.f32 %v8657_v44, %v18408_v42  ;;  %v8659_v45 = vpop.f32.mrb[74].mxu1  ;;  %9617 = vmatprep.mubr.bf16.mxu0 %v8881_v47 }
 0x5a8   :  { %v11636_v21 = vadd.f32 %v8659_v45, %v18405_v11  ;;  %v8661_v31 = vpop.f32.mrb[75].mxu1  ;;  %9618 = vmatmul.mubr.bf16.gmra.mrb[100].mxu0 %v8880_v29  ;;  %v8796_v14 = vmax.f32 %v11634_v6, 0.0 }
 0x5a9   :  { %v11637_v15 = vadd.f32 %v8661_v31, %v18408_v42  ;;  %v8797_v26 = vmax.f32 %v11635_v52, 0.0 }
 0x5aa   :  { %v8800_v38 = vmax.f32 %v11636_v21, 0.0 }
 0x5ab   :  { %v8801_v49 = vmax.f32 %v11637_v15, 0.0 }
 0x5ac   :  { %v8884_v43 = vpack.c.bf16 %v8800_v38, %v8796_v14 }
 0x5ad   :  { %v8885_v58 = vpack.c.bf16 %v8801_v49, %v8797_v26  ;;  %v8665_v33 = vpop.f32.mrb[76].mxu1 }
 0x5ae   :  { %v11638_v48 = vadd.f32 %v8665_v33, %v18405_v11  ;;  %v8667_v30 = vpop.f32.mrb[77].mxu1 }
 0x5af   :  { %v11639_v53 = vadd.f32 %v8667_v30, %v18408_v42  ;;  %v8669_v0 = vpop.f32.mrb[78].mxu1  ;;  %9627 = vmatprep.mubr.bf16.mxu0 %v8885_v58 }
 0x5b0   :  { %v11640_v1 = vadd.f32 %v8669_v0, %v18405_v11  ;;  %v8671_v8 = vpop.f32.mrb[79].mxu1  ;;  %9628 = vmatmul.mubr.bf16.gmra.mrb[104].mxu0 %v8884_v43  ;;  %v8804_v40 = vmax.f32 %v11638_v48, 0.0 }
 0x5b1   :  { %v11641_v50 = vadd.f32 %v8671_v8, %v18408_v42  ;;  %v8805_v55 = vmax.f32 %v11639_v53, 0.0 }
 0x5b2   :  { %v8808_v62 = vmax.f32 %v11640_v1, 0.0 }
 0x5b3   :  { %v8809_v4 = vmax.f32 %v11641_v50, 0.0 }
 0x5b4   :  { %v8888_v61 = vpack.c.bf16 %v8808_v62, %v8804_v40 }
 0x5b5   :  { %v8889_v3 = vpack.c.bf16 %v8809_v4, %v8805_v55  ;;  %v8675_v9 = vpop.f32.mrb[80].mxu1  ;;  %v8970_v4 = vld [vmem:[%s18698_s4] sm:$0x3] }
 0x5b6   :  { %v11642_v12 = vadd.f32 %v8675_v9, %v18405_v11  ;;  %v8677_v36 = vpop.f32.mrb[81].mxu1 }
 0x5b7   :  { %v11643_v20 = vadd.f32 %v8677_v36, %v18408_v42  ;;  %v8679_v56 = vpop.f32.mrb[82].mxu1  ;;  %9637 = vmatprep.mubr.bf16.mxu0 %v8889_v3 }
 0x5b8   :  { %v11644_v37 = vadd.f32 %v8679_v56, %v18405_v11  ;;  %v8681_v34 = vpop.f32.mrb[83].mxu1  ;;  %9638 = vmatmul.mubr.bf16.gmra.mrb[108].mxu0 %v8888_v61  ;;  %v8812_v27 = vmax.f32 %v11642_v12, 0.0  ;;  %v18518_v61 = vrot.slane %v8970_v4, %v902_v59 }
 0x5b9   :  { %v11645_v63 = vadd.f32 %v8681_v34, %v18408_v42  ;;  %v8813_v32 = vmax.f32 %v11643_v20, 0.0 }
 0x5ba   :  { %v8816_v13 = vmax.f32 %v11644_v37, 0.0 }
 0x5bb   :  { %v8817_v19 = vmax.f32 %v11645_v63, 0.0 }
 0x5bc   :  { %v8892_v16 = vpack.c.bf16 %v8816_v13, %v8812_v27 }
 0x5bd   :  { %v8893_v39 = vpack.c.bf16 %v8817_v19, %v8813_v32  ;;  %v8685_v60 = vpop.f32.mrb[84].mxu1 }
 0x5be   :  { %v11646_v57 = vadd.f32 %v8685_v60, %v18405_v11  ;;  %v8687_v17 = vpop.f32.mrb[85].mxu1 }
 0x5bf   :  { %v11647_v25 = vadd.f32 %v8687_v17, %v18408_v42  ;;  %v8689_v2 = vpop.f32.mrb[86].mxu1  ;;  %9647 = vmatprep.mubr.bf16.mxu0 %v8893_v39 }
 0x5c0   :  { %v11648_v35 = vadd.f32 %v8689_v2, %v18405_v11  ;;  %v8691_v46 = vpop.f32.mrb[87].mxu1  ;;  %9648 = vmatmul.mubr.bf16.gmra.mrb[112].mxu0 %v8892_v16  ;;  %v8820_v24 = vmax.f32 %v11646_v57, 0.0 }
 0x5c1   :  { %v11649_v18 = vadd.f32 %v8691_v46, %v18408_v42  ;;  %v8821_v23 = vmax.f32 %v11647_v25, 0.0 }
 0x5c2   :  { %v8824_v10 = vmax.f32 %v11648_v35, 0.0 }
 0x5c3   :  { %v8825_v22 = vmax.f32 %v11649_v18, 0.0 }
 0x5c4   :  { %v8896_v54 = vpack.c.bf16 %v8824_v10, %v8820_v24 }
 0x5c5   :  { %v8897_v51 = vpack.c.bf16 %v8825_v22, %v8821_v23  ;;  %v8695_v28 = vpop.f32.mrb[88].mxu1 }
 0x5c6   :  { %v11650_v29 = vadd.f32 %v8695_v28, %v18405_v11  ;;  %v8697_v47 = vpop.f32.mrb[89].mxu1 }
 0x5c7   :  { %v11651_v7 = vadd.f32 %v8697_v47, %v18408_v42  ;;  %v8699_v6 = vpop.f32.mrb[90].mxu1  ;;  %9657 = vmatprep.mubr.bf16.mxu0 %v8897_v51 }
 0x5c8   :  { %v11652_v44 = vadd.f32 %v8699_v6, %v18405_v11  ;;  %v8701_v52 = vpop.f32.mrb[91].mxu1  ;;  %9658 = vmatmul.mubr.bf16.gmra.mrb[116].mxu0 %v8896_v54  ;;  %v8828_v21 = vmax.f32 %v11650_v29, 0.0 }
 0x5c9   :  { %v11653_v45 = vadd.f32 %v8701_v52, %v18408_v42  ;;  %v8829_v15 = vmax.f32 %v11651_v7, 0.0 }
 0x5ca   :  { %v8832_v31 = vmax.f32 %v11652_v44, 0.0 }
 0x5cb   :  { %v8833_v14 = vmax.f32 %v11653_v45, 0.0 }
 0x5cc   :  { %v8900_v38 = vpack.c.bf16 %v8832_v31, %v8828_v21 }
 0x5cd   :  { %v8901_v26 = vpack.c.bf16 %v8833_v14, %v8829_v15  ;;  %v8705_v49 = vpop.f32.mrb[92].mxu1 }
 0x5ce   :  { %v11654_v43 = vadd.f32 %v8705_v49, %v18405_v11  ;;  %v8707_v58 = vpop.f32.mrb[93].mxu1 }
 0x5cf   :  { %v11655_v33 = vadd.f32 %v8707_v58, %v18408_v42  ;;  %v8709_v48 = vpop.f32.mrb[94].mxu1  ;;  %9667 = vmatprep.mubr.bf16.mxu0 %v8901_v26 }
 0x5d0   :  { %v11656_v30 = vadd.f32 %v8709_v48, %v18405_v11  ;;  %v8711_v53 = vpop.f32.mrb[95].mxu1  ;;  %9668 = vmatmul.mubr.bf16.gmra.mrb[120].mxu0 %v8900_v38  ;;  %v8836_v1 = vmax.f32 %v11654_v43, 0.0  ;;  %v18522_v11 = vrot.slane %v8970_v4, %v906_v5 }
 0x5d1   :  { %v11657_v0 = vadd.f32 %v8711_v53, %v18408_v42  ;;  %v8837_v50 = vmax.f32 %v11655_v33, 0.0 }
 0x5d2   :  { %v8840_v8 = vmax.f32 %v11656_v30, 0.0 }
 0x5d3   :  { %v8841_v40 = vmax.f32 %v11657_v0, 0.0 }
 0x5d4   :  { %v8904_v62 = vpack.c.bf16 %v8840_v8, %v8836_v1 }
 0x5d5   :  { %v8905_v55 = vpack.c.bf16 %v8841_v40, %v8837_v50 }
 0x5d7   :  { %9677 = vmatprep.mubr.bf16.mxu0 %v8905_v55 }
 0x5d8   :  { %9678 = vmatmul.mubr.bf16.gmra.mrb[124].mxu0 %v8904_v62 }
 0x633   :  { %v9529_v42 = vpop.f32.mrb[64].mxu0 }
 0x634   :  { %v11658_v3 = vadd.f32 %v9529_v42, %v18518_v61  ;;  %v9531_v9 = vpop.f32.mrb[65].mxu0 }
 0x635   :  { %v11659_v12 = vadd.f32 %v9531_v9, %v18522_v11  ;;  %v9533_v36 = vpop.f32.mrb[66].mxu0 }
 0x636   :  { %v11660_v20 = vadd.f32 %v9533_v36, %v18518_v61  ;;  %v9535_v56 = vpop.f32.mrb[67].mxu0  ;;  %v9688_v34 = vmax.f32 %v11658_v3, 0.0 }
 0x637   :  { %v11661_v37 = vadd.f32 %v9535_v56, %v18522_v11  ;;  %v9689_v59 = vmax.f32 %v11659_v12, 0.0 }
 0x638   :  { %v9690_v63 = vmax.f32 %v11660_v20, 0.0 }
 0x639   :  { %v9691_v27 = vmax.f32 %v11661_v37, 0.0 }
 0x63a   :  { %v9752_v13 = vpack.c.bf16 %v9690_v63, %v9688_v34 }
 0x63b   :  { %v9753_v41 = vpack.c.bf16 %v9691_v27, %v9689_v59  ;;  %v9539_v5 = vpop.f32.mrb[68].mxu0 }
 0x63c   :  { %v11662_v32 = vadd.f32 %v9539_v5, %v18518_v61  ;;  %v9541_v19 = vpop.f32.mrb[69].mxu0 }
 0x63d   :  { %v11663_v16 = vadd.f32 %v9541_v19, %v18522_v11  ;;  %v9543_v39 = vpop.f32.mrb[70].mxu0  ;;  %9951 = vmatprep.mubr.bf16.mxu1 %v9753_v41 }
 0x63e   :  { %v11664_v60 = vadd.f32 %v9543_v39, %v18518_v61  ;;  %v9545_v57 = vpop.f32.mrb[71].mxu0  ;;  %9952 = vmatmul.mubr.bf16.vlgmr.msra.gmra.mrb[96].mxu1 %v9752_v13  ;;  %v9692_v25 = vmax.f32 %v11662_v32, 0.0 }
 0x63f   :  { %v11665_v17 = vadd.f32 %v9545_v57, %v18522_v11  ;;  %v9693_v35 = vmax.f32 %v11663_v16, 0.0 }
 0x640   :  { %v9694_v2 = vmax.f32 %v11664_v60, 0.0 }
 0x641   :  { %v9695_v46 = vmax.f32 %v11665_v17, 0.0 }
 0x642   :  { %v9754_v18 = vpack.c.bf16 %v9694_v2, %v9692_v25 }
 0x643   :  { %v9755_v24 = vpack.c.bf16 %v9695_v46, %v9693_v35  ;;  %v9549_v10 = vpop.f32.mrb[72].mxu0 }
 0x644   :  { %v11666_v23 = vadd.f32 %v9549_v10, %v18518_v61  ;;  %v9551_v22 = vpop.f32.mrb[73].mxu0 }
 0x645   :  { %v11667_v54 = vadd.f32 %v9551_v22, %v18522_v11  ;;  %v9553_v51 = vpop.f32.mrb[74].mxu0  ;;  %9959 = vmatprep.mubr.bf16.mxu1 %v9755_v24 }
 0x646   :  { %v11668_v28 = vadd.f32 %v9553_v51, %v18518_v61  ;;  %v9555_v29 = vpop.f32.mrb[75].mxu0  ;;  %9960 = vmatmul.mubr.bf16.gmra.mrb[100].mxu1 %v9754_v18  ;;  %v9696_v7 = vmax.f32 %v11666_v23, 0.0 }
 0x647   :  { %v11669_v47 = vadd.f32 %v9555_v29, %v18522_v11  ;;  %v9697_v44 = vmax.f32 %v11667_v54, 0.0 }
 0x648   :  { %v9698_v6 = vmax.f32 %v11668_v28, 0.0 }
 0x649   :  { %v9699_v52 = vmax.f32 %v11669_v47, 0.0 }
 0x64a   :  { %v9756_v45 = vpack.c.bf16 %v9698_v6, %v9696_v7 }
 0x64b   :  { %v9757_v21 = vpack.c.bf16 %v9699_v52, %v9697_v44  ;;  %v9559_v31 = vpop.f32.mrb[76].mxu0 }
 0x64c   :  { %v11670_v15 = vadd.f32 %v9559_v31, %v18518_v61  ;;  %v9561_v14 = vpop.f32.mrb[77].mxu0 }
 0x64d   :  { %v11671_v38 = vadd.f32 %v9561_v14, %v18522_v11  ;;  %v9563_v26 = vpop.f32.mrb[78].mxu0  ;;  %9967 = vmatprep.mubr.bf16.mxu1 %v9757_v21 }
 0x64e   :  { %v11672_v49 = vadd.f32 %v9563_v26, %v18518_v61  ;;  %v9565_v43 = vpop.f32.mrb[79].mxu0  ;;  %9968 = vmatmul.mubr.bf16.gmra.mrb[104].mxu1 %v9756_v45  ;;  %v9700_v33 = vmax.f32 %v11670_v15, 0.0 }
 0x64f   :  { %v11673_v58 = vadd.f32 %v9565_v43, %v18522_v11  ;;  %v9701_v30 = vmax.f32 %v11671_v38, 0.0 }
 0x650   :  { %v9702_v48 = vmax.f32 %v11672_v49, 0.0 }
 0x651   :  { %v9703_v53 = vmax.f32 %v11673_v58, 0.0 }
 0x652   :  { %v9758_v0 = vpack.c.bf16 %v9702_v48, %v9700_v33 }
 0x653   :  { %v9759_v1 = vpack.c.bf16 %v9703_v53, %v9701_v30  ;;  %v9569_v8 = vpop.f32.mrb[80].mxu0 }
 0x654   :  { %v11674_v50 = vadd.f32 %v9569_v8, %v18518_v61  ;;  %v9571_v40 = vpop.f32.mrb[81].mxu0 }
 0x655   :  { %v11675_v62 = vadd.f32 %v9571_v40, %v18522_v11  ;;  %v9573_v55 = vpop.f32.mrb[82].mxu0  ;;  %9975 = vmatprep.mubr.bf16.mxu1 %v9759_v1 }
 0x656   :  { %v11676_v4 = vadd.f32 %v9573_v55, %v18518_v61  ;;  %v9575_v42 = vpop.f32.mrb[83].mxu0  ;;  %9976 = vmatmul.mubr.bf16.gmra.mrb[108].mxu1 %v9758_v0  ;;  %v9704_v9 = vmax.f32 %v11674_v50, 0.0 }
 0x657   :  { %v11677_v3 = vadd.f32 %v9575_v42, %v18522_v11  ;;  %v9705_v36 = vmax.f32 %v11675_v62, 0.0 }
 0x658   :  { %v9706_v12 = vmax.f32 %v11676_v4, 0.0 }
 0x659   :  { %v9707_v20 = vmax.f32 %v11677_v3, 0.0 }
 0x65a   :  { %v9760_v56 = vpack.c.bf16 %v9706_v12, %v9704_v9 }
 0x65b   :  { %v9761_v37 = vpack.c.bf16 %v9707_v20, %v9705_v36  ;;  %v9579_v34 = vpop.f32.mrb[84].mxu0 }
 0x65c   :  { %v11678_v63 = vadd.f32 %v9579_v34, %v18518_v61  ;;  %v9581_v59 = vpop.f32.mrb[85].mxu0 }
 0x65d   :  { %v11679_v27 = vadd.f32 %v9581_v59, %v18522_v11  ;;  %v9583_v13 = vpop.f32.mrb[86].mxu0  ;;  %9983 = vmatprep.mubr.bf16.mxu1 %v9761_v37 }
 0x65e   :  { %v11680_v41 = vadd.f32 %v9583_v13, %v18518_v61  ;;  %v9585_v5 = vpop.f32.mrb[87].mxu0  ;;  %9984 = vmatmul.mubr.bf16.gmra.mrb[112].mxu1 %v9760_v56  ;;  %v9708_v19 = vmax.f32 %v11678_v63, 0.0 }
 0x65f   :  { %v11681_v32 = vadd.f32 %v9585_v5, %v18522_v11  ;;  %v9709_v39 = vmax.f32 %v11679_v27, 0.0 }
 0x660   :  { %v9710_v16 = vmax.f32 %v11680_v41, 0.0 }
 0x661   :  { %v9711_v60 = vmax.f32 %v11681_v32, 0.0 }
 0x662   :  { %v9762_v57 = vpack.c.bf16 %v9710_v16, %v9708_v19 }
 0x663   :  { %v9763_v17 = vpack.c.bf16 %v9711_v60, %v9709_v39  ;;  %v9589_v25 = vpop.f32.mrb[88].mxu0 }
 0x664   :  { %v11682_v2 = vadd.f32 %v9589_v25, %v18518_v61  ;;  %v9591_v35 = vpop.f32.mrb[89].mxu0 }
 0x665   :  { %v11683_v46 = vadd.f32 %v9591_v35, %v18522_v11  ;;  %v9593_v18 = vpop.f32.mrb[90].mxu0  ;;  %9991 = vmatprep.mubr.bf16.mxu1 %v9763_v17 }
 0x666   :  { %v11684_v24 = vadd.f32 %v9593_v18, %v18518_v61  ;;  %v9595_v10 = vpop.f32.mrb[91].mxu0  ;;  %9992 = vmatmul.mubr.bf16.gmra.mrb[116].mxu1 %v9762_v57  ;;  %v9712_v22 = vmax.f32 %v11682_v2, 0.0 }
 0x667   :  { %v11685_v23 = vadd.f32 %v9595_v10, %v18522_v11  ;;  %v9713_v51 = vmax.f32 %v11683_v46, 0.0 }
 0x668   :  { %v9714_v54 = vmax.f32 %v11684_v24, 0.0 }
 0x669   :  { %v9715_v28 = vmax.f32 %v11685_v23, 0.0 }
 0x66a   :  { %v9764_v29 = vpack.c.bf16 %v9714_v54, %v9712_v22 }
 0x66b   :  { %v9765_v47 = vpack.c.bf16 %v9715_v28, %v9713_v51  ;;  %v9599_v7 = vpop.f32.mrb[92].mxu0 }
 0x66c   :  { %v11686_v6 = vadd.f32 %v9599_v7, %v18518_v61  ;;  %v9601_v44 = vpop.f32.mrb[93].mxu0 }
 0x66d   :  { %v11687_v52 = vadd.f32 %v9601_v44, %v18522_v11  ;;  %v9603_v45 = vpop.f32.mrb[94].mxu0  ;;  %9999 = vmatprep.mubr.bf16.mxu1 %v9765_v47 }
 0x66e   :  { %v11688_v21 = vadd.f32 %v9603_v45, %v18518_v61  ;;  %v9605_v31 = vpop.f32.mrb[95].mxu0  ;;  %10000 = vmatmul.mubr.bf16.gmra.mrb[120].mxu1 %v9764_v29  ;;  %v9716_v14 = vmax.f32 %v11686_v6, 0.0 }
 0x66f   :  { %v11689_v15 = vadd.f32 %v9605_v31, %v18522_v11  ;;  %v9717_v26 = vmax.f32 %v11687_v52, 0.0 }
 0x670   :  { %v9718_v38 = vmax.f32 %v11688_v21, 0.0 }
 0x671   :  { %v9719_v49 = vmax.f32 %v11689_v15, 0.0 }
 0x672   :  { %v9766_v43 = vpack.c.bf16 %v9718_v38, %v9716_v14 }
 0x673   :  { %v9767_v58 = vpack.c.bf16 %v9719_v49, %v9717_v26  ;;  %v9609_v33 = vpop.f32.mrb[96].mxu0 }
 0x674   :  { %v11690_v48 = vadd.f32 %v9609_v33, %v18518_v61  ;;  %v9611_v30 = vpop.f32.mrb[97].mxu0 }
 0x675   :  { %v11691_v53 = vadd.f32 %v9611_v30, %v18522_v11  ;;  %v9613_v0 = vpop.f32.mrb[98].mxu0  ;;  %10007 = vmatprep.mubr.bf16.mxu1 %v9767_v58 }
 0x676   :  { %v11692_v1 = vadd.f32 %v9613_v0, %v18518_v61  ;;  %v9615_v8 = vpop.f32.mrb[99].mxu0  ;;  %10008 = vmatmul.mubr.bf16.gmra.mrb[124].mxu1 %v9766_v43  ;;  %v9720_v40 = vmax.f32 %v11690_v48, 0.0 }
 0x677   :  { %v11693_v50 = vadd.f32 %v9615_v8, %v18522_v11  ;;  %v9721_v55 = vmax.f32 %v11691_v53, 0.0 }
 0x678   :  { %v9722_v62 = vmax.f32 %v11692_v1, 0.0 }
 0x679   :  { %v9723_v4 = vmax.f32 %v11693_v50, 0.0 }
 0x67a   :  { %v9768_v42 = vpack.c.bf16 %v9722_v62, %v9720_v40 }
 0x67b   :  { %v9769_v3 = vpack.c.bf16 %v9723_v4, %v9721_v55  ;;  %v9619_v9 = vpop.f32.mrb[100].mxu0 }
 0x67c   :  { %v11694_v12 = vadd.f32 %v9619_v9, %v18518_v61  ;;  %v9621_v36 = vpop.f32.mrb[101].mxu0 }
 0x67d   :  { %v11695_v20 = vadd.f32 %v9621_v36, %v18522_v11  ;;  %v9623_v56 = vpop.f32.mrb[102].mxu0  ;;  %10015 = vmatprep.mubr.bf16.mxu1 %v9769_v3 }
 0x67e   :  { %v11696_v37 = vadd.f32 %v9623_v56, %v18518_v61  ;;  %v9625_v34 = vpop.f32.mrb[103].mxu0  ;;  %10016 = vmatmul.mubr.bf16.gmra.mrb[128].mxu1 %v9768_v42  ;;  %v9724_v59 = vmax.f32 %v11694_v12, 0.0 }
 0x67f   :  { %v11697_v63 = vadd.f32 %v9625_v34, %v18522_v11  ;;  %v9725_v13 = vmax.f32 %v11695_v20, 0.0 }
 0x680   :  { %v9726_v27 = vmax.f32 %v11696_v37, 0.0 }
 0x681   :  { %v9727_v41 = vmax.f32 %v11697_v63, 0.0 }
 0x682   :  { %v9770_v5 = vpack.c.bf16 %v9726_v27, %v9724_v59 }
 0x683   :  { %v9771_v32 = vpack.c.bf16 %v9727_v41, %v9725_v13  ;;  %v9629_v19 = vpop.f32.mrb[104].mxu0 }
 0x684   :  { %v11698_v16 = vadd.f32 %v9629_v19, %v18518_v61  ;;  %v9631_v39 = vpop.f32.mrb[105].mxu0 }
 0x685   :  { %v11699_v60 = vadd.f32 %v9631_v39, %v18522_v11  ;;  %v9633_v57 = vpop.f32.mrb[106].mxu0  ;;  %10023 = vmatprep.mubr.bf16.mxu1 %v9771_v32 }
 0x686   :  { %v11700_v17 = vadd.f32 %v9633_v57, %v18518_v61  ;;  %v9635_v25 = vpop.f32.mrb[107].mxu0  ;;  %10024 = vmatmul.mubr.bf16.gmra.mrb[132].mxu1 %v9770_v5  ;;  %v9728_v35 = vmax.f32 %v11698_v16, 0.0 }
 0x687   :  { %v11701_v2 = vadd.f32 %v9635_v25, %v18522_v11  ;;  %v9729_v18 = vmax.f32 %v11699_v60, 0.0 }
 0x688   :  { %v9730_v46 = vmax.f32 %v11700_v17, 0.0 }
 0x689   :  { %v9731_v24 = vmax.f32 %v11701_v2, 0.0 }
 0x68a   :  { %v9772_v10 = vpack.c.bf16 %v9730_v46, %v9728_v35  ;;  %v14187_v46 = vld [vmem:[%s18701_s7 + $0x40] sm:$0xff]  }
 0x68b   :  { %v9773_v23 = vpack.c.bf16 %v9731_v24, %v9729_v18  ;;  %v9639_v22 = vpop.f32.mrb[108].mxu0  ;;  %v14188_v18 = vld [vmem:[%s18701_s7] sm:$0xff]   ;;  %11444 = vmatprep.subr.bf16.mxu1 %v14187_v46 }
 0x68c   :  { %v11702_v54 = vadd.f32 %v9639_v22, %v18518_v61  ;;  %v9641_v51 = vpop.f32.mrb[109].mxu0  ;;  %11445 = vmatpush3.bf16.msra.mxu1 %v14188_v18 }
 0x68d   :  { %v11703_v28 = vadd.f32 %v9641_v51, %v18522_v11  ;;  %v9643_v29 = vpop.f32.mrb[110].mxu0  ;;  %10031 = vmatprep.mubr.bf16.mxu1 %v9773_v23 }
 0x68e   :  { %v11704_v47 = vadd.f32 %v9643_v29, %v18518_v61  ;;  %v9645_v7 = vpop.f32.mrb[111].mxu0  ;;  %10032 = vmatmul.mubr.bf16.gmra.mrb[136].mxu1 %v9772_v10  ;;  %v9732_v44 = vmax.f32 %v11702_v54, 0.0 }
 0x68f   :  { %v11705_v6 = vadd.f32 %v9645_v7, %v18522_v11  ;;  %v9733_v45 = vmax.f32 %v11703_v28, 0.0 }
 0x690   :  { %v9734_v52 = vmax.f32 %v11704_v47, 0.0 }
 0x691   :  { %v9735_v21 = vmax.f32 %v11705_v6, 0.0 }
 0x692   :  { %v9774_v31 = vpack.c.bf16 %v9734_v52, %v9732_v44 }
 0x693   :  { %v9775_v15 = vpack.c.bf16 %v9735_v21, %v9733_v45  ;;  %v9649_v14 = vpop.f32.mrb[112].mxu0  ;;  %v14189_v45 = vld [vmem:[%s18701_s7 + $0x48] sm:$0xff]   ;;  %v14192_v21 = vld [vmem:[%s18701_s7 + $0x10] sm:$0xff]  }
 0x694   :  { %v11706_v38 = vadd.f32 %v9649_v14, %v18518_v61  ;;  %v9651_v26 = vpop.f32.mrb[113].mxu0  ;;  %11446 = vmatprep.subr.bf16.mxu1 %v14189_v45  ;;  %v14195_v14 = vld [vmem:[%s18701_s7 + $0x60] sm:$0xff]  }
 0x695   :  { %v11707_v49 = vadd.f32 %v9651_v26, %v18522_v11  ;;  %v9653_v43 = vpop.f32.mrb[114].mxu0  ;;  %10039 = vmatprep.mubr.bf16.mxu1 %v9775_v15  ;;  %v14194_v15 = vld [vmem:[%s18701_s7 + $0x18] sm:$0xff]   ;;  %v14197_v26 = vld [vmem:[%s18701_s7 + $0x68] sm:$0xff]  }
 0x696   :  { %v11708_v58 = vadd.f32 %v9653_v43, %v18518_v61  ;;  %v9655_v33 = vpop.f32.mrb[115].mxu0  ;;  %10040 = vmatmul.mubr.bf16.gmra.mrb[140].mxu1 %v9774_v31  ;;  %v9736_v30 = vmax.f32 %v11706_v38, 0.0  ;;  %v14193_v31 = vld [vmem:[%s18701_s7 + $0x58] sm:$0xff]   ;;  %v14196_v38 = vld [vmem:[%s18701_s7 + $0x20] sm:$0xff]   ;;  %v14199_v43 = vld [vmem:[%s18701_s7 + $0x70] sm:$0xff]  }
 0x697   :  { %v11709_v48 = vadd.f32 %v9655_v33, %v18522_v11  ;;  %v9737_v0 = vmax.f32 %v11707_v49, 0.0  ;;  %v14198_v49 = vld [vmem:[%s18701_s7 + $0x28] sm:$0xff]  }
 0x698   :  { %v9738_v53 = vmax.f32 %v11708_v58, 0.0  ;;  %v14200_v58 = vld [vmem:[%s18701_s7 + $0x30] sm:$0xff]  }
 0x699   :  { %v9739_v1 = vmax.f32 %v11709_v48, 0.0  ;;  %v18633_v48 = vld [vmem:[%s18700_s6] ss:$0 sm:$0xff] }
 0x69a   :  { %v9776_v8 = vpack.c.bf16 %v9738_v53, %v9736_v30 }
 0x69b   :  { %v9777_v50 = vpack.c.bf16 %v9739_v1, %v9737_v0  ;;  %v9659_v40 = vpop.f32.mrb[116].mxu0 }
 0x69c   :  { %v11710_v62 = vadd.f32 %v9659_v40, %v18518_v61  ;;  %v9661_v55 = vpop.f32.mrb[117].mxu0 }
 0x69d   :  { %v11711_v4 = vadd.f32 %v9661_v55, %v18522_v11  ;;  %v9663_v42 = vpop.f32.mrb[118].mxu0  ;;  %10047 = vmatprep.mubr.bf16.mxu1 %v9777_v50 }
 0x69e   :  { %v11712_v3 = vadd.f32 %v9663_v42, %v18518_v61  ;;  %v9665_v9 = vpop.f32.mrb[119].mxu0  ;;  %10048 = vmatmul.mubr.bf16.gmra.mrb[144].mxu1 %v9776_v8  ;;  %v9740_v36 = vmax.f32 %v11710_v62, 0.0 }
 0x69f   :  { %v11713_v12 = vadd.f32 %v9665_v9, %v18522_v11  ;;  %v9741_v56 = vmax.f32 %v11711_v4, 0.0 }
 0x6a0   :  { %v9742_v20 = vmax.f32 %v11712_v3, 0.0 }
 0x6a1   :  { %v9743_v37 = vmax.f32 %v11713_v12, 0.0 }
 0x6a2   :  { %v9778_v34 = vpack.c.bf16 %v9742_v20, %v9740_v36 }
 0x6a3   :  { %v9779_v63 = vpack.c.bf16 %v9743_v37, %v9741_v56  ;;  %v9669_v59 = vpop.f32.mrb[120].mxu0  ;;  %v14201_v37 = vld [vmem:[%s18701_s7 + $0x78] sm:$0xff]  }
 0x6a4   :  { %v11714_v27 = vadd.f32 %v9669_v59, %v18518_v61  ;;  %v9671_v13 = vpop.f32.mrb[121].mxu0 }
 0x6a5   :  { %v11715_v41 = vadd.f32 %v9671_v13, %v18522_v11  ;;  %v9673_v5 = vpop.f32.mrb[122].mxu0  ;;  %10055 = vmatprep.mubr.bf16.mxu1 %v9779_v63 }
 0x6a6   :  { %v11716_v32 = vadd.f32 %v9673_v5, %v18518_v61  ;;  %v9675_v19 = vpop.f32.mrb[123].mxu0  ;;  %10056 = vmatmul.mubr.bf16.gmra.mrb[148].mxu1 %v9778_v34  ;;  %v9744_v39 = vmax.f32 %v11714_v27, 0.0  ;;  %v14202_v34 = vld [vmem:[%s18701_s7 + $0x38] sm:$0xff]  }
 0x6a7   :  { %v11717_v16 = vadd.f32 %v9675_v19, %v18522_v11  ;;  %v9745_v57 = vmax.f32 %v11715_v41, 0.0 }
 0x6a8   :  { %v9746_v60 = vmax.f32 %v11716_v32, 0.0 }
 0x6a9   :  { %v9747_v17 = vmax.f32 %v11717_v16, 0.0 }
 0x6aa   :  { %v9780_v25 = vpack.c.bf16 %v9746_v60, %v9744_v39 }
 0x6ab   :  { %v9781_v2 = vpack.c.bf16 %v9747_v17, %v9745_v57  ;;  %v9679_v35 = vpop.f32.mrb[124].mxu0 }
 0x6ac   :  { %v11718_v24 = vadd.f32 %v9679_v35, %v18518_v61  ;;  %v9681_v10 = vpop.f32.mrb[125].mxu0 }
 0x6ad   :  { %v11719_v23 = vadd.f32 %v9681_v10, %v18522_v11  ;;  %v9683_v22 = vpop.f32.mrb[126].mxu0  ;;  %10063 = vmatprep.mubr.bf16.mxu1 %v9781_v2 }
 0x6ae   :  { %v11720_v54 = vadd.f32 %v9683_v22, %v18518_v61  ;;  %v9685_v51 = vpop.f32.mrb[127].mxu0  ;;  %10064 = vmatmul.mubr.bf16.gmra.mrb[152].mxu1 %v9780_v25  ;;  %v9748_v29 = vmax.f32 %v11718_v24, 0.0  ;;  %v14190_v61 = vld [vmem:[%s18701_s7 + $0x8] sm:$0xff]  }
 0x6af   :  { %v11721_v28 = vadd.f32 %v9685_v51, %v18522_v11  ;;  %v9749_v7 = vmax.f32 %v11719_v23, 0.0  ;;  %11447 = vmatpush3.bf16.msra.mxu1 %v14190_v61  ;;  %v14191_v11 = vld [vmem:[%s18701_s7 + $0x50] sm:$0xff]  }
 0x6b0   :  { %v9750_v47 = vmax.f32 %v11720_v54, 0.0  ;;  %11448 = vmatprep.subr.bf16.mxu1 %v14191_v11 }
 0x6b1   :  { %v9751_v6 = vmax.f32 %v11721_v28, 0.0 }
 0x6b2   :  { %v9782_v44 = vpack.c.bf16 %v9750_v47, %v9748_v29 }
 0x6b3   :  { %v9783_v52 = vpack.c.bf16 %v9751_v6, %v9749_v7  ;;  %11449 = vmatpush3.bf16.msra.mxu1 %v14192_v21 }
 0x6b4   :  { %11450 = vmatprep.subr.bf16.mxu1 %v14193_v31 }
 0x6b5   :  { %10071 = vmatprep.mubr.bf16.mxu1 %v9783_v52 }
 0x6b6   :  { %10072 = vmatmul.mubr.bf16.gmra.mrb[156].mxu1 %v9782_v44 }
 0x6b7   :  { %11451 = vmatpush3.bf16.msra.mxu1 %v14194_v15 }
 0x6b8   :  { %11452 = vmatprep.subr.bf16.mxu1 %v14195_v14 }
 0x6bb   :  { %11453 = vmatpush3.bf16.msra.mxu1 %v14196_v38 }
 0x6bc   :  { %11454 = vmatprep.subr.bf16.mxu1 %v14197_v26 }
 0x6bf   :  { %11455 = vmatpush3.bf16.msra.mxu1 %v14198_v49 }
 0x6c0   :  { %11456 = vmatprep.subr.bf16.mxu1 %v14199_v43 }
 0x6c3   :  { %11457 = vmatpush3.bf16.msra.mxu1 %v14200_v58 }
 0x6c4   :  { %11458 = vmatprep.subr.bf16.mxu1 %v14201_v37 }
 0x6c7   :  { %11459 = vmatpush3.bf16.msra.mxu1 %v14202_v34 }
 0x711   :  { %v11348_v33 = vpop.f32.mrb[96].mxu1 }
 0x712   :  { %v11349_v30 = vpop.f32.mrb[97].mxu1 }
 0x713   :  { %v11350_v53 = vadd.f32 %v11349_v30, %v11348_v33  ;;  %v11351_v0 = vpop.f32.mrb[98].mxu1 }
 0x714   :  { %v11352_v1 = vpop.f32.mrb[99].mxu1 }
 0x715   :  { %v9954_v8 = vadd.f32 %v11350_v53, %v18633_v48  ;;  %v11353_v50 = vadd.f32 %v11352_v1, %v11351_v0 }
 0x717   :  { %v9957_v40 = vadd.f32 %v11353_v50, %v18633_v48  ;;  %v10080_v62 = vmax.f32 %v9954_v8, 0.0 }
 0x719   :  { %v10081_v55 = vmax.f32 %v9957_v40, 0.0  ;;  %v11354_v4 = vpop.f32.mrb[100].mxu1 }
 0x71a   :  { %v11355_v42 = vpop.f32.mrb[101].mxu1 }
 0x71b   :  { %v10112_v3 = vadd.f32 %v10081_v55, %v10080_v62  ;;  %v11356_v9 = vadd.f32 %v11355_v42, %v11354_v4  ;;  %v11357_v12 = vpop.f32.mrb[102].mxu1 }
 0x71c   :  { %v11358_v36 = vpop.f32.mrb[103].mxu1 }
 0x71d   :  { %v9962_v20 = vadd.f32 %v11356_v9, %v18633_v48  ;;  %v11359_v56 = vadd.f32 %v11358_v36, %v11357_v12 }
 0x71f   :  { %v10082_v63 = vmax.f32 %v9962_v20, 0.0  ;;  %v9965_v59 = vadd.f32 %v11359_v56, %v18633_v48 }
 0x721   :  { %v10113_v27 = vadd.f32 %v10112_v3, %v10082_v63  ;;  %v10083_v13 = vmax.f32 %v9965_v59, 0.0  ;;  %v11360_v41 = vpop.f32.mrb[104].mxu1 }
 0x722   :  { %v11361_v5 = vpop.f32.mrb[105].mxu1 }
 0x723   :  { %v10114_v32 = vadd.f32 %v10113_v27, %v10083_v13  ;;  %v11362_v19 = vadd.f32 %v11361_v5, %v11360_v41  ;;  %v11363_v16 = vpop.f32.mrb[106].mxu1 }
 0x724   :  { %v11364_v39 = vpop.f32.mrb[107].mxu1 }
 0x725   :  { %v9970_v60 = vadd.f32 %v11362_v19, %v18633_v48  ;;  %v11365_v57 = vadd.f32 %v11364_v39, %v11363_v16 }
 0x727   :  { %v10084_v17 = vmax.f32 %v9970_v60, 0.0  ;;  %v9973_v25 = vadd.f32 %v11365_v57, %v18633_v48 }
 0x729   :  { %v10115_v2 = vadd.f32 %v10114_v32, %v10084_v17  ;;  %v10085_v35 = vmax.f32 %v9973_v25, 0.0  ;;  %v11366_v46 = vpop.f32.mrb[108].mxu1 }
 0x72a   :  { %v11367_v18 = vpop.f32.mrb[109].mxu1 }
 0x72b   :  { %v10116_v24 = vadd.f32 %v10115_v2, %v10085_v35  ;;  %v11368_v10 = vadd.f32 %v11367_v18, %v11366_v46  ;;  %v11369_v23 = vpop.f32.mrb[110].mxu1 }
 0x72c   :  { %v11370_v22 = vpop.f32.mrb[111].mxu1 }
 0x72d   :  { %v9978_v54 = vadd.f32 %v11368_v10, %v18633_v48  ;;  %v11371_v51 = vadd.f32 %v11370_v22, %v11369_v23 }
 0x72f   :  { %v10086_v28 = vmax.f32 %v9978_v54, 0.0  ;;  %v9981_v29 = vadd.f32 %v11371_v51, %v18633_v48 }
 0x731   :  { %v10117_v47 = vadd.f32 %v10116_v24, %v10086_v28  ;;  %v10087_v7 = vmax.f32 %v9981_v29, 0.0  ;;  %v11372_v6 = vpop.f32.mrb[112].mxu1 }
 0x732   :  { %v11373_v44 = vpop.f32.mrb[113].mxu1 }
 0x733   :  { %v10118_v52 = vadd.f32 %v10117_v47, %v10087_v7  ;;  %v11374_v45 = vadd.f32 %v11373_v44, %v11372_v6  ;;  %v11375_v61 = vpop.f32.mrb[114].mxu1 }
 0x734   :  { %v11376_v11 = vpop.f32.mrb[115].mxu1 }
 0x735   :  { %v9986_v21 = vadd.f32 %v11374_v45, %v18633_v48  ;;  %v11377_v31 = vadd.f32 %v11376_v11, %v11375_v61  ;;  %v10119_v37 = vrot.slane %v10118_v52, 4 }
 0x737   :  { %v9989_v15 = vadd.f32 %v11377_v31, %v18633_v48  ;;  %v10088_v14 = vmax.f32 %v9986_v21, 0.0  ;;  %v10120_v19 = vadd.f32 %v10119_v37, %v10118_v52 }
 0x739   :  { %v10089_v38 = vmax.f32 %v9989_v15, 0.0  ;;  %v11378_v26 = vpop.f32.mrb[116].mxu1  ;;  %v10121_v17 = vrot.slane %v10120_v19, 2 }
 0x73a   :  { %v11379_v49 = vpop.f32.mrb[117].mxu1 }
 0x73b   :  { %v10125_v43 = vadd.f32 %v10089_v38, %v10088_v14  ;;  %v11380_v58 = vadd.f32 %v11379_v49, %v11378_v26  ;;  %v11381_v33 = vpop.f32.mrb[118].mxu1  ;;  %v10122_v22 = vadd.f32 %v10121_v17, %v10120_v19 }
 0x73c   :  { %v11382_v30 = vpop.f32.mrb[119].mxu1 }
 0x73d   :  { %v9994_v53 = vadd.f32 %v11380_v58, %v18633_v48  ;;  %v11383_v0 = vadd.f32 %v11382_v30, %v11381_v33  ;;  %v10123_v7 = vrot.slane %v10122_v22, 1 }
 0x73f   :  { %v10090_v1 = vmax.f32 %v9994_v53, 0.0  ;;  %v9997_v8 = vadd.f32 %v11383_v0, %v18633_v48  ;;  %v10124_v38 = vadd.f32 %v10123_v7, %v10122_v22 }
 0x741   :  { %v10126_v50 = vadd.f32 %v10125_v43, %v10090_v1  ;;  %v10091_v40 = vmax.f32 %v9997_v8, 0.0  ;;  %v11384_v62 = vpop.f32.mrb[120].mxu1  ;;  %v10165_v53 = vmul.f32 0.015625, %v10124_v38 }
 0x742   :  { %v11385_v55 = vpop.f32.mrb[121].mxu1 }
 0x743   :  { %v10127_v4 = vadd.f32 %v10126_v50, %v10091_v40  ;;  %v11386_v42 = vadd.f32 %v11385_v55, %v11384_v62  ;;  %v11387_v3 = vpop.f32.mrb[122].mxu1 }
 0x744   :  { %v11388_v9 = vpop.f32.mrb[123].mxu1 }
 0x745   :  { %v10002_v12 = vadd.f32 %v11386_v42, %v18633_v48  ;;  %v11389_v36 = vadd.f32 %v11388_v9, %v11387_v3 }
 0x747   :  { %v10092_v20 = vmax.f32 %v10002_v12, 0.0  ;;  %v10005_v56 = vadd.f32 %v11389_v36, %v18633_v48 }
 0x749   :  { %v10128_v34 = vadd.f32 %v10127_v4, %v10092_v20  ;;  %v10093_v63 = vmax.f32 %v10005_v56, 0.0  ;;  %v11390_v59 = vpop.f32.mrb[124].mxu1 }
 0x74a   :  { %v11391_v27 = vpop.f32.mrb[125].mxu1 }
 0x74b   :  { %v10129_v13 = vadd.f32 %v10128_v34, %v10093_v63  ;;  %v11392_v41 = vadd.f32 %v11391_v27, %v11390_v59  ;;  %v11393_v5 = vpop.f32.mrb[126].mxu1 }
 0x74c   :  { %v11394_v32 = vpop.f32.mrb[127].mxu1 }
 0x74d   :  { %v10010_v16 = vadd.f32 %v11392_v41, %v18633_v48  ;;  %v11395_v39 = vadd.f32 %v11394_v32, %v11393_v5 }
 0x74f   :  { %v10094_v60 = vmax.f32 %v10010_v16, 0.0  ;;  %v10013_v57 = vadd.f32 %v11395_v39, %v18633_v48 }
 0x751   :  { %v10130_v25 = vadd.f32 %v10129_v13, %v10094_v60  ;;  %v10095_v2 = vmax.f32 %v10013_v57, 0.0  ;;  %v11396_v35 = vpop.f32.mrb[128].mxu1 }
 0x752   :  { %v11397_v46 = vpop.f32.mrb[129].mxu1 }
 0x753   :  { %v10131_v18 = vadd.f32 %v10130_v25, %v10095_v2  ;;  %v11398_v24 = vadd.f32 %v11397_v46, %v11396_v35  ;;  %v11399_v10 = vpop.f32.mrb[130].mxu1 }
 0x754   :  { %v11400_v23 = vpop.f32.mrb[131].mxu1 }
 0x755   :  { %v10132_v54 = vrot.slane %v10131_v18, 4  ;;  %v10018_v51 = vadd.f32 %v11398_v24, %v18633_v48  ;;  %v11401_v28 = vadd.f32 %v11400_v23, %v11399_v10 }
 0x757   :  { %v10133_v29 = vadd.f32 %v10132_v54, %v10131_v18  ;;  %v10021_v47 = vadd.f32 %v11401_v28, %v18633_v48  ;;  %v10096_v44 = vmax.f32 %v10018_v51, 0.0 }
 0x759   :  { %v10134_v6 = vrot.slane %v10133_v29, 2  ;;  %v10097_v52 = vmax.f32 %v10021_v47, 0.0  ;;  %v11402_v45 = vpop.f32.mrb[132].mxu1 }
 0x75a   :  { %v11403_v61 = vpop.f32.mrb[133].mxu1 }
 0x75b   :  { %v10135_v11 = vadd.f32 %v10134_v6, %v10133_v29  ;;  %v10138_v21 = vadd.f32 %v10097_v52, %v10096_v44  ;;  %v11404_v31 = vadd.f32 %v11403_v61, %v11402_v45  ;;  %v11405_v15 = vpop.f32.mrb[134].mxu1 }
 0x75c   :  { %v11406_v14 = vpop.f32.mrb[135].mxu1 }
 0x75d   :  { %v10136_v26 = vrot.slane %v10135_v11, 1  ;;  %v10026_v49 = vadd.f32 %v11404_v31, %v18633_v48  ;;  %v11407_v43 = vadd.f32 %v11406_v14, %v11405_v15 }
 0x75f   :  { %v10137_v58 = vadd.f32 %v10136_v26, %v10135_v11  ;;  %v10098_v33 = vmax.f32 %v10026_v49, 0.0  ;;  %v10029_v30 = vadd.f32 %v11407_v43, %v18633_v48 }
 0x761   :  { %v10166_v0 = vmul.f32 0.015625, %v10137_v58  ;;  %v10139_v1 = vadd.f32 %v10138_v21, %v10098_v33  ;;  %v10099_v8 = vmax.f32 %v10029_v30, 0.0  ;;  %v11408_v50 = vpop.f32.mrb[136].mxu1 }
 0x762   :  { %v11409_v40 = vpop.f32.mrb[137].mxu1 }
 0x763   :  { %v10140_v62 = vadd.f32 %v10139_v1, %v10099_v8  ;;  %v11410_v55 = vadd.f32 %v11409_v40, %v11408_v50  ;;  %v11411_v4 = vpop.f32.mrb[138].mxu1  ;;  %v18662_v42 = vsel %vm10171_vm0, %v10166_v0, %v10165_v53 }
 0x764   :  { %v11412_v3 = vpop.f32.mrb[139].mxu1 }
 0x765   :  { %v10034_v9 = vadd.f32 %v11410_v55, %v18633_v48  ;;  %v11413_v12 = vadd.f32 %v11412_v3, %v11411_v4 }
 0x767   :  { %v10100_v36 = vmax.f32 %v10034_v9, 0.0  ;;  %v10037_v20 = vadd.f32 %v11413_v12, %v18633_v48 }
 0x769   :  { %v10141_v56 = vadd.f32 %v10140_v62, %v10100_v36  ;;  %v10101_v37 = vmax.f32 %v10037_v20, 0.0  ;;  %v11414_v34 = vpop.f32.mrb[140].mxu1 }
 0x76a   :  { %v11415_v63 = vpop.f32.mrb[141].mxu1 }
 0x76b   :  { %v10142_v59 = vadd.f32 %v10141_v56, %v10101_v37  ;;  %v11416_v27 = vadd.f32 %v11415_v63, %v11414_v34  ;;  %v11417_v13 = vpop.f32.mrb[142].mxu1 }
 0x76c   :  { %v11418_v41 = vpop.f32.mrb[143].mxu1 }
 0x76d   :  { %v10042_v5 = vadd.f32 %v11416_v27, %v18633_v48  ;;  %v11419_v32 = vadd.f32 %v11418_v41, %v11417_v13 }
 0x76f   :  { %v10102_v19 = vmax.f32 %v10042_v5, 0.0  ;;  %v10045_v16 = vadd.f32 %v11419_v32, %v18633_v48 }
 0x771   :  { %v10143_v39 = vadd.f32 %v10142_v59, %v10102_v19  ;;  %v10103_v60 = vmax.f32 %v10045_v16, 0.0  ;;  %v11420_v57 = vpop.f32.mrb[144].mxu1 }
 0x772   :  { %v11421_v17 = vpop.f32.mrb[145].mxu1 }
 0x773   :  { %v10144_v25 = vadd.f32 %v10143_v39, %v10103_v60  ;;  %v11422_v2 = vadd.f32 %v11421_v17, %v11420_v57  ;;  %v11423_v35 = vpop.f32.mrb[146].mxu1 }
 0x774   :  { %v11424_v46 = vpop.f32.mrb[147].mxu1 }
 0x775   :  { %v10050_v18 = vadd.f32 %v11422_v2, %v18633_v48  ;;  %v11425_v24 = vadd.f32 %v11424_v46, %v11423_v35  ;;  %v10145_v30 = vrot.slane %v10144_v25, 4  ;;  %v11315_v35 = vld [vmem:[%s18702_s8] ss:$0 sm:$0xff] }
 0x777   :  { %v10053_v10 = vadd.f32 %v11425_v24, %v18633_v48  ;;  %v10104_v23 = vmax.f32 %v10050_v18, 0.0  ;;  %v10146_v4 = vadd.f32 %v10145_v30, %v10144_v25 }
 0x779   :  { %v10105_v22 = vmax.f32 %v10053_v10, 0.0  ;;  %v11426_v54 = vpop.f32.mrb[148].mxu1  ;;  %v10147_v20 = vrot.slane %v10146_v4, 2 }
 0x77a   :  { %v11427_v51 = vpop.f32.mrb[149].mxu1 }
 0x77b   :  { %v10151_v28 = vadd.f32 %v10105_v22, %v10104_v23  ;;  %v11428_v29 = vadd.f32 %v11427_v51, %v11426_v54  ;;  %v11429_v47 = vpop.f32.mrb[150].mxu1  ;;  %v10148_v63 = vadd.f32 %v10147_v20, %v10146_v4 }
 0x77c   :  { %v11430_v7 = vpop.f32.mrb[151].mxu1 }
 0x77d   :  { %v10058_v6 = vadd.f32 %v11428_v29, %v18633_v48  ;;  %v11431_v44 = vadd.f32 %v11430_v7, %v11429_v47  ;;  %v10149_v13 = vrot.slane %v10148_v63, 1 }
 0x77f   :  { %v10106_v52 = vmax.f32 %v10058_v6, 0.0  ;;  %v10061_v45 = vadd.f32 %v11431_v44, %v18633_v48  ;;  %v10150_v19 = vadd.f32 %v10149_v13, %v10148_v63 }
 0x781   :  { %v10152_v61 = vadd.f32 %v10151_v28, %v10106_v52  ;;  %v10107_v11 = vmax.f32 %v10061_v45, 0.0  ;;  %v11432_v21 = vpop.f32.mrb[152].mxu1  ;;  %v10167_v39 = vmul.f32 0.015625, %v10150_v19 }
 0x782   :  { %v11433_v31 = vpop.f32.mrb[153].mxu1 }
 0x783   :  { %v10153_v15 = vadd.f32 %v10152_v61, %v10107_v11  ;;  %v11434_v14 = vadd.f32 %v11433_v31, %v11432_v21  ;;  %v11435_v38 = vpop.f32.mrb[154].mxu1 }
 0x784   :  { %v11436_v26 = vpop.f32.mrb[155].mxu1 }
 0x785   :  { %v10066_v49 = vadd.f32 %v11434_v14, %v18633_v48  ;;  %v11437_v43 = vadd.f32 %v11436_v26, %v11435_v38 }
 0x787   :  { %v10108_v58 = vmax.f32 %v10066_v49, 0.0  ;;  %v10069_v33 = vadd.f32 %v11437_v43, %v18633_v48 }
 0x789   :  { %v10154_v53 = vadd.f32 %v10153_v15, %v10108_v58  ;;  %v10109_v0 = vmax.f32 %v10069_v33, 0.0  ;;  %v11438_v1 = vpop.f32.mrb[156].mxu1 }
 0x78a   :  { %v11439_v8 = vpop.f32.mrb[157].mxu1 }
 0x78b   :  { %v10155_v50 = vadd.f32 %v10154_v53, %v10109_v0  ;;  %v11440_v40 = vadd.f32 %v11439_v8, %v11438_v1  ;;  %v11441_v62 = vpop.f32.mrb[158].mxu1 }
 0x78c   :  { %v11442_v55 = vpop.f32.mrb[159].mxu1 }
 0x78d   :  { %v10074_v3 = vadd.f32 %v11440_v40, %v18633_v48  ;;  %v11443_v9 = vadd.f32 %v11442_v55, %v11441_v62 }
 0x78f   :  { %v10110_v12 = vmax.f32 %v10074_v3, 0.0  ;;  %v10077_v36 = vadd.f32 %v11443_v9, %v18633_v48  ;;  %v10178_v48 = vpack.c.bf16 %v18662_v42, %v18662_v42 }
 0x791   :  { %v10156_v56 = vadd.f32 %v10155_v50, %v10110_v12  ;;  %v10111_v37 = vmax.f32 %v10077_v36, 0.0 }
 0x793   :  { %v10157_v34 = vadd.f32 %v10156_v56, %v10111_v37 }
 0x795   :  { %v10158_v59 = vrot.slane %v10157_v34, 4 }
 0x797   :  { %v10159_v27 = vadd.f32 %v10158_v59, %v10157_v34 }
 0x799   :  { %v10160_v41 = vrot.slane %v10159_v27, 2 }
 0x79b   :  { %v10161_v5 = vadd.f32 %v10160_v41, %v10159_v27 }
 0x79d   :  { %v10162_v32 = vrot.slane %v10161_v5, 1 }
 0x79f   :  { %v10163_v16 = vadd.f32 %v10162_v32, %v10161_v5 }
 0x7a1   :  { %v10168_v60 = vmul.f32 0.015625, %v10163_v16 }
 0x7a3   :  { %v10176_v57 = vsel %vm10171_vm0, %v10168_v60, %v10167_v39 }
 0x7a4   :  { %v10179_v17 = vpack.c.bf16 %v10176_v57, %v10176_v57 }
 0x7a6   :  { %10347 = vmatprep.mubr.bf16.mxu1 %v10179_v17 }
 0x7a7   :  { %10348 = vmatmul.mubr.bf16.vlgmr.msra.gmra.mrb[160].mxu1 %v10178_v48 }
 0x87a   :  { %v11460_v25 = vpop.f32.mrb[160].mxu1 }
 0x87b   :  { %v11461_v2 = vpop.f32.mrb[161].mxu1 }
 0x87c   :  { %v11462_v46 = vadd.f32 %v11461_v2, %v11460_v25  ;;  %v11463_v18 = vpop.f32.mrb[162].mxu1 }
 0x87d   :  { %v11464_v24 = vpop.f32.mrb[163].mxu1 }
 0x87e   :  { %v10350_v10 = vadd.f32 %v11462_v46, %v11315_v35 }
 0x880   :  { %10355 = vst [vmem:[#allocation2] sm:$0x3] %v10350_v10 }
 0x881   :  { %14286 = shalt.err (!%p14283_p4)
}
 0x882   :  { %s14287_s20 = scalar_lea.hbm %s18703_s9, 32 }
 0x883   :  { %p14288_p5 = scmp.ne.s32.totalorder %s18703_s9, %s14287_s20  ;;  %p14291_p6 = scmp.lt.u32.totalorder %s14287_s20, %s18703_s9 }
 0x885   :  { %p14293_p7 = pnand %p14291_p6, %p14288_p5 }
 0x887   :  { %14296 = shalt.err (!%p14293_p7)
}
 0x888   :  { %10365 = dma.vmem_to_hbm [thread:$0]  %s10363_s17, 32, %s18703_s9, [#allocation3]  }
 0x889   :  { %14297 = dma.done.wait [#allocation3], 32  }
 0x88a   :  { %14298 = vsyncadd [#allocation3], 4294967264 }
 0x88b   :  { %10369 = vsyncpa [#allocation3], 1 }

</bundles_post_ra>
